<compile_context>
chip_gen: v7x
topology: tpu7x:2x2x1
jax: 0.10.0
libtpu: 0.0.40
codegen_flags: <defaults>
</compile_context>

<pallas_src>
import jax
import jax.numpy as jnp
from jax import lax
from jax.experimental import pallas as pl
from jax.experimental.pallas import tpu as pltpu


def _upsample_conv_kernel(x_ref, w_ref, b_ref, o_ref):
    # x_ref: (1, H+2, W+2, Cin)    bf16  zero-padded ORIGINAL-res image; block index is
    #                                    constant across row tiles -> VMEM-resident/batch.
    # w_ref: (16, Cin, Cout)       bf16  effective 2x2 sub-pixel weights, flattened as
    #                                    idx = ((s*2+t)*2+dh)*2+dw.  VMEM-resident.
    # b_ref: (1, Cout)             f32   bias, VMEM-resident.
    # o_ref: (1, 4, th_in*W, Cout) bf16  parity-planar output tile (plane p = s*2+t).
    w_in = x_ref.shape[2] - 2
    cin = x_ref.shape[3]
    m = o_ref.shape[2]
    th_in = m // w_in

    r = pl.program_id(1)
    h0 = pl.multiple_of(r * th_in, th_in)      # first padded row used by this tile

    # The 16 taps only touch 3 distinct row slabs (row offset a = s+dh in {0,1,2}):
    # load each once, slice column windows (offset b = t+dw in {0,1,2}) per use.
    rows = [x_ref[0, pl.ds(h0 + a, th_in), :, :] for a in range(3)]   # (th_in, W+2, Cin)

    bias = b_ref[...]                                                  # (1, Cout) f32
    for s in range(2):
        for t in range(2):
            acc = bias                                                 # broadcasts on add
            for dh in range(2):
                for dw in range(2):
                    win = rows[s + dh][:, t + dw:t + dw + w_in, :]     # (th_in, W, Cin)
                    idx = ((s * 2 + t) * 2 + dh) * 2 + dw
                    acc = acc + jnp.dot(win.reshape(m, cin), w_ref[idx],
                                        preferred_element_type=jnp.float32)
            o_ref[0, s * 2 + t] = acc.astype(o_ref.dtype)              # dense slab store


def _pick_row_tile(h, w, max_in_rows):
    """Largest th_in dividing H with th_in*W a multiple of 8 (or the whole image)."""
    for th in range(min(max_in_rows, h), 0, -1):
        if h % th == 0 and ((th * w) % 8 == 0 or th == h):
            return th
    return h


def upsample_conv2d(x_nchw, weight_oihw, bias, *, max_out_tile_rows=64,
                    compute_dtype=jnp.bfloat16):
    """Fused [cat x4 -> DepthToSpace(2) -> Conv2d(3x3, s=1, p=1)] forward.  NCHW API."""
    N, Cin, H, W = x_nchw.shape
    Cout = weight_oihw.shape[0]
    assert weight_oihw.shape == (Cout, Cin, 3, 3)
    Ho, Wo = 2 * H, 2 * W

    th_in = _pick_row_tile(H, W, max(1, max_out_tile_rows // 2))   # input rows / grid step
    n_t = H // th_in
    m = th_in * W

    # Only HBM-side input prep: bf16 cast BEFORE the layout transpose (half the bytes),
    # NCHW -> NHWC, 1-px zero pad at ORIGINAL resolution.
    x_nhwc = jnp.transpose(x_nchw.astype(compute_dtype), (0, 2, 3, 1))
    x_pad = jnp.pad(x_nhwc, ((0, 0), (1, 1), (1, 1), (0, 0)))

    # Sub-pixel weights: Weff[s,t,dh,dw] = sum_{kh,kw} A[s,dh,kh] * A[t,dw,kw] * W[:, :, kh, kw]
    # A[parity] maps the 3 conv taps onto the 2 original-pixel taps of that parity.
    A = jnp.array([[[1., 0., 0.], [0., 1., 1.]],
                   [[1., 1., 0.], [0., 0., 1.]]], jnp.float32)          # (parity, d, k)
    weff = jnp.einsum('sak,tbl,oikl->stabio', A, A, weight_oihw.astype(jnp.float32))
    weff = weff.reshape(16, Cin, Cout).astype(compute_dtype)           # VMEM-resident
    b2 = bias.reshape(1, Cout).astype(jnp.float32)

    flops = 2 * N * Ho * Wo * 4 * Cin * Cout            # 4 taps/output pixel (not 9)
    bytes_accessed = (x_pad.size * x_pad.dtype.itemsize
                      + weff.size * weff.dtype.itemsize
                      + b2.size * b2.dtype.itemsize
                      + N * 4 * H * W * Cout * jnp.dtype(compute_dtype).itemsize)

    out = pl.pallas_call(
        _upsample_conv_kernel,
        out_shape=jax.ShapeDtypeStruct((N, 4, H * W, Cout), compute_dtype),
        grid_spec=pltpu.PrefetchScalarGridSpec(
            num_scalar_prefetch=0,
            grid=(N, n_t),
            in_specs=[
                # Whole padded ORIGINAL-res image for batch n; constant in r -> stays
                # VMEM-resident across its row tiles (small: (H+2)(W+2)Cin bf16).
                pl.BlockSpec((1, H + 2, W + 2, Cin), lambda n, r: (n, 0, 0, 0)),
                # Effective sub-pixel weights + bias, constant index -> VMEM-resident.
                # (Could add pipeline_mode=pl.Buffered(1) to single-buffer on v7x.)
                pl.BlockSpec((16, Cin, Cout), lambda n, r: (0, 0, 0)),
                pl.BlockSpec((1, Cout), lambda n, r: (0, 0)),
            ],
            out_specs=pl.BlockSpec((1, 4, m, Cout), lambda n, r: (n, 0, r, 0)),
        ),
        compiler_params=pltpu.CompilerParams(
            dimension_semantics=("parallel", "parallel")),
        cost_estimate=pl.CostEstimate(flops=flops, transcendentals=0,
                                      bytes_accessed=bytes_accessed),
    )(x_pad, weff, b2)

    # Parity-planar (N, 2, 2, H, W, Cout) -> NCHW.  This single fused transpose+reshape
    # both interleaves the parities AND restores the PyTorch NCHW layout (one HBM pass;
    # drop / replace with an NHWC reshuffle if the consumer accepts NHWC).
    out = out.reshape(N, 2, 2, H, W, Cout)                # (n, s, t, i, j, c)
    out = jnp.transpose(out, (0, 5, 3, 1, 4, 2))          # (n, c, i, s, j, t)
    return out.reshape(N, Cout, Ho, Wo).astype(jnp.float32)


if __name__ == "__main__":
    # Small shapes consistent with the module: x (2, 4, 16, 16), out_dim = 8.
    N, Cin, H, W = 2, 4, 16, 16
    Cout = 8

    key = jax.random.PRNGKey(0)
    kx, kw, kb = jax.random.split(key, 3)
    x = jax.random.normal(kx, (N, Cin, H, W), jnp.float32)
    weight = 0.1 * jax.random.normal(kw, (Cout, Cin, 3, 3), jnp.float32)
    bias = 0.1 * jax.random.normal(kb, (Cout,), jnp.float32)

    out = upsample_conv2d(x, weight, bias)
    out = jax.block_until_ready(out)
    assert out.shape == (N, Cout, 2 * H, 2 * W), out.shape

    # Reference (f32): cat x4 + DepthToSpace(2) on identical copies == 2x nearest-
    # neighbour upsample, then 3x3 conv with padding 1, plus bias.
    x_up = jnp.repeat(jnp.repeat(x, 2, axis=2), 2, axis=3)
    ref = lax.conv_general_dilated(
        x_up, weight, window_strides=(1, 1), padding=((1, 1), (1, 1)),
        dimension_numbers=("NCHW", "OIHW", "NCHW"))
    ref = ref + bias[None, :, None, None]

    err = float(jnp.max(jnp.abs(out - ref)))
    # Kernel computes in bf16 (inputs, pre-summed weights, stored output) with f32
    # accumulation; a genuine tap/parity bug would give O(0.1-1) errors.
    assert err < 5e-2, err

    print("KERNEL_OK")
</pallas_src>

<mosaic_0001>
module attributes {stable_mosaic.version = 11 : i64} {
  func.func @_upsample_conv_kernel(%arg0: i32, %arg1: i32, %arg2: memref<1x18x18x4xbf16, #tpu.memory_space<vmem>>, %arg3: memref<16x4x8xbf16, #tpu.memory_space<vmem>>, %arg4: memref<1x8xf32, #tpu.memory_space<vmem>>, %arg5: memref<1x4x256x8xbf16, #tpu.memory_space<vmem>>) attributes {dimension_semantics = [#tpu.dimension_semantics<parallel>, #tpu.dimension_semantics<parallel>], iteration_bounds = array<i64: 2, 1>, scalar_prefetch = 0 : i64, scratch_operands = 0 : i64, tpu.core_type = #tpu.core_type<tc>, window_params = [{transform_indices = @transform_0, window_bounds = array<i64: 1, 18, 18, 4>}, {pipeline_mode = #tpu.pipeline_mode<synchronous>, transform_indices = @transform_1, window_bounds = array<i64: 16, 4, 8>}, {pipeline_mode = #tpu.pipeline_mode<synchronous>, transform_indices = @transform_2, window_bounds = array<i64: 1, 8>}, {transform_indices = @transform_3, window_bounds = array<i64: 1, 4, 256, 8>}]} {
    %c16_i32 = arith.constant 16 : i32
    %0 = arith.muli %arg1, %c16_i32 : i32
    %1 = tpu.assume_multiple %0, 16 : i32
    %c0_i32 = arith.constant 0 : i32
    %2 = arith.addi %1, %c0_i32 : i32
    %c0 = arith.constant 0 : index
    %3 = arith.index_cast %2 : i32 to index
    %c0_0 = arith.constant 0 : index
    %c0_1 = arith.constant 0 : index
    %4 = vector.load %arg2[%c0, %3, %c0_0, %c0_1] : memref<1x18x18x4xbf16, #tpu.memory_space<vmem>>, vector<1x16x18x4xbf16>
    %5 = vector.shape_cast %4 : vector<1x16x18x4xbf16> to vector<16x18x4xbf16>
    %c1_i32 = arith.constant 1 : i32
    %6 = arith.addi %1, %c1_i32 : i32
    %c0_2 = arith.constant 0 : index
    %7 = arith.index_cast %6 : i32 to index
    %c0_3 = arith.constant 0 : index
    %c0_4 = arith.constant 0 : index
    %8 = vector.load %arg2[%c0_2, %7, %c0_3, %c0_4] : memref<1x18x18x4xbf16, #tpu.memory_space<vmem>>, vector<1x16x18x4xbf16>
    %9 = vector.shape_cast %8 : vector<1x16x18x4xbf16> to vector<16x18x4xbf16>
    %c2_i32 = arith.constant 2 : i32
    %10 = arith.addi %1, %c2_i32 : i32
    %c0_5 = arith.constant 0 : index
    %11 = arith.index_cast %10 : i32 to index
    %c0_6 = arith.constant 0 : index
    %c0_7 = arith.constant 0 : index
    %12 = vector.load %arg2[%c0_5, %11, %c0_6, %c0_7] : memref<1x18x18x4xbf16, #tpu.memory_space<vmem>>, vector<1x16x18x4xbf16>
    %13 = vector.shape_cast %12 : vector<1x16x18x4xbf16> to vector<16x18x4xbf16>
    %c0_8 = arith.constant 0 : index
    %c0_9 = arith.constant 0 : index
    %14 = vector.load %arg4[%c0_8, %c0_9] : memref<1x8xf32, #tpu.memory_space<vmem>>, vector<1x8xf32>
    %15 = vector.extract_strided_slice %5 {offsets = [0, 0, 0], sizes = [16, 16, 4], strides = [1, 1, 1]} : vector<16x18x4xbf16> to vector<16x16x4xbf16>
    %16 = vector.shape_cast %15 : vector<16x16x4xbf16> to vector<256x4xbf16>
    %c0_10 = arith.constant 0 : index
    %c0_11 = arith.constant 0 : index
    %c0_12 = arith.constant 0 : index
    %17 = vector.load %arg3[%c0_10, %c0_11, %c0_12] : memref<16x4x8xbf16, #tpu.memory_space<vmem>>, vector<1x4x8xbf16>
    %18 = vector.shape_cast %17 : vector<1x4x8xbf16> to vector<4x8xbf16>
    %cst = arith.constant dense<0.000000e+00> : vector<256x8xf32>
    %19 = tpu.matmul %16, %18, %cst {dimension_numbers = #tpu.dot_dimension_numbers<[1], [0], [0], [1], [0, 0, 1, 1], [], []>} : vector<256x4xbf16>, vector<4x8xbf16>, vector<256x8xf32> -> vector<256x8xf32>
    %20 = vector.broadcast %14 : vector<1x8xf32> to vector<256x8xf32>
    %21 = arith.addf %20, %19 : vector<256x8xf32>
    %22 = vector.extract_strided_slice %5 {offsets = [0, 1, 0], sizes = [16, 16, 4], strides = [1, 1, 1]} : vector<16x18x4xbf16> to vector<16x16x4xbf16>
    %23 = vector.shape_cast %22 : vector<16x16x4xbf16> to vector<256x4xbf16>
    %c1 = arith.constant 1 : index
    %c0_13 = arith.constant 0 : index
    %c0_14 = arith.constant 0 : index
    %24 = vector.load %arg3[%c1, %c0_13, %c0_14] : memref<16x4x8xbf16, #tpu.memory_space<vmem>>, vector<1x4x8xbf16>
    %25 = vector.shape_cast %24 : vector<1x4x8xbf16> to vector<4x8xbf16>
    %cst_15 = arith.constant dense<0.000000e+00> : vector<256x8xf32>
    %26 = tpu.matmul %23, %25, %cst_15 {dimension_numbers = #tpu.dot_dimension_numbers<[1], [0], [0], [1], [0, 0, 1, 1], [], []>} : vector<256x4xbf16>, vector<4x8xbf16>, vector<256x8xf32> -> vector<256x8xf32>
    %27 = arith.addf %21, %26 : vector<256x8xf32>
    %28 = vector.extract_strided_slice %9 {offsets = [0, 0, 0], sizes = [16, 16, 4], strides = [1, 1, 1]} : vector<16x18x4xbf16> to vector<16x16x4xbf16>
    %29 = vector.shape_cast %28 : vector<16x16x4xbf16> to vector<256x4xbf16>
    %c2 = arith.constant 2 : index
    %c0_16 = arith.constant 0 : index
    %c0_17 = arith.constant 0 : index
    %30 = vector.load %arg3[%c2, %c0_16, %c0_17] : memref<16x4x8xbf16, #tpu.memory_space<vmem>>, vector<1x4x8xbf16>
    %31 = vector.shape_cast %30 : vector<1x4x8xbf16> to vector<4x8xbf16>
    %cst_18 = arith.constant dense<0.000000e+00> : vector<256x8xf32>
    %32 = tpu.matmul %29, %31, %cst_18 {dimension_numbers = #tpu.dot_dimension_numbers<[1], [0], [0], [1], [0, 0, 1, 1], [], []>} : vector<256x4xbf16>, vector<4x8xbf16>, vector<256x8xf32> -> vector<256x8xf32>
    %33 = arith.addf %27, %32 : vector<256x8xf32>
    %34 = vector.extract_strided_slice %9 {offsets = [0, 1, 0], sizes = [16, 16, 4], strides = [1, 1, 1]} : vector<16x18x4xbf16> to vector<16x16x4xbf16>
    %35 = vector.shape_cast %34 : vector<16x16x4xbf16> to vector<256x4xbf16>
    %c3 = arith.constant 3 : index
    %c0_19 = arith.constant 0 : index
    %c0_20 = arith.constant 0 : index
    %36 = vector.load %arg3[%c3, %c0_19, %c0_20] : memref<16x4x8xbf16, #tpu.memory_space<vmem>>, vector<1x4x8xbf16>
    %37 = vector.shape_cast %36 : vector<1x4x8xbf16> to vector<4x8xbf16>
    %cst_21 = arith.constant dense<0.000000e+00> : vector<256x8xf32>
    %38 = tpu.matmul %35, %37, %cst_21 {dimension_numbers = #tpu.dot_dimension_numbers<[1], [0], [0], [1], [0, 0, 1, 1], [], []>} : vector<256x4xbf16>, vector<4x8xbf16>, vector<256x8xf32> -> vector<256x8xf32>
    %39 = arith.addf %33, %38 : vector<256x8xf32>
    %40 = arith.truncf %39 : vector<256x8xf32> to vector<256x8xbf16>
    %c0_22 = arith.constant 0 : index
    %c0_23 = arith.constant 0 : index
    %c0_24 = arith.constant 0 : index
    %c0_25 = arith.constant 0 : index
    %41 = vector.load %arg5[%c0_22, %c0_23, %c0_24, %c0_25] : memref<1x4x256x8xbf16, #tpu.memory_space<vmem>>, vector<1x1x256x8xbf16>
    %42 = vector.shape_cast %41 : vector<1x1x256x8xbf16> to vector<256x8xbf16>
    %43 = vector.shape_cast %40 : vector<256x8xbf16> to vector<1x1x256x8xbf16>
    tpu.vector_store %arg5[%c0_22, %c0_23, %c0_24, %c0_25], %43 {strides = array<i32>} : memref<1x4x256x8xbf16, #tpu.memory_space<vmem>>, vector<1x1x256x8xbf16>,
    %44 = vector.extract_strided_slice %5 {offsets = [0, 1, 0], sizes = [16, 16, 4], strides = [1, 1, 1]} : vector<16x18x4xbf16> to vector<16x16x4xbf16>
    %45 = vector.shape_cast %44 : vector<16x16x4xbf16> to vector<256x4xbf16>
    %c4 = arith.constant 4 : index
    %c0_26 = arith.constant 0 : index
    %c0_27 = arith.constant 0 : index
    %46 = vector.load %arg3[%c4, %c0_26, %c0_27] : memref<16x4x8xbf16, #tpu.memory_space<vmem>>, vector<1x4x8xbf16>
    %47 = vector.shape_cast %46 : vector<1x4x8xbf16> to vector<4x8xbf16>
    %cst_28 = arith.constant dense<0.000000e+00> : vector<256x8xf32>
    %48 = tpu.matmul %45, %47, %cst_28 {dimension_numbers = #tpu.dot_dimension_numbers<[1], [0], [0], [1], [0, 0, 1, 1], [], []>} : vector<256x4xbf16>, vector<4x8xbf16>, vector<256x8xf32> -> vector<256x8xf32>
    %49 = vector.broadcast %14 : vector<1x8xf32> to vector<256x8xf32>
    %50 = arith.addf %49, %48 : vector<256x8xf32>
    %51 = vector.extract_strided_slice %5 {offsets = [0, 2, 0], sizes = [16, 16, 4], strides = [1, 1, 1]} : vector<16x18x4xbf16> to vector<16x16x4xbf16>
    %52 = vector.shape_cast %51 : vector<16x16x4xbf16> to vector<256x4xbf16>
    %c5 = arith.constant 5 : index
    %c0_29 = arith.constant 0 : index
    %c0_30 = arith.constant 0 : index
    %53 = vector.load %arg3[%c5, %c0_29, %c0_30] : memref<16x4x8xbf16, #tpu.memory_space<vmem>>, vector<1x4x8xbf16>
    %54 = vector.shape_cast %53 : vector<1x4x8xbf16> to vector<4x8xbf16>
    %cst_31 = arith.constant dense<0.000000e+00> : vector<256x8xf32>
    %55 = tpu.matmul %52, %54, %cst_31 {dimension_numbers = #tpu.dot_dimension_numbers<[1], [0], [0], [1], [0, 0, 1, 1], [], []>} : vector<256x4xbf16>, vector<4x8xbf16>, vector<256x8xf32> -> vector<256x8xf32>
    %56 = arith.addf %50, %55 : vector<256x8xf32>
    %57 = vector.extract_strided_slice %9 {offsets = [0, 1, 0], sizes = [16, 16, 4], strides = [1, 1, 1]} : vector<16x18x4xbf16> to vector<16x16x4xbf16>
    %58 = vector.shape_cast %57 : vector<16x16x4xbf16> to vector<256x4xbf16>
    %c6 = arith.constant 6 : index
    %c0_32 = arith.constant 0 : index
    %c0_33 = arith.constant 0 : index
    %59 = vector.load %arg3[%c6, %c0_32, %c0_33] : memref<16x4x8xbf16, #tpu.memory_space<vmem>>, vector<1x4x8xbf16>
    %60 = vector.shape_cast %59 : vector<1x4x8xbf16> to vector<4x8xbf16>
    %cst_34 = arith.constant dense<0.000000e+00> : vector<256x8xf32>
    %61 = tpu.matmul %58, %60, %cst_34 {dimension_numbers = #tpu.dot_dimension_numbers<[1], [0], [0], [1], [0, 0, 1, 1], [], []>} : vector<256x4xbf16>, vector<4x8xbf16>, vector<256x8xf32> -> vector<256x8xf32>
    %62 = arith.addf %56, %61 : vector<256x8xf32>
    %63 = vector.extract_strided_slice %9 {offsets = [0, 2, 0], sizes = [16, 16, 4], strides = [1, 1, 1]} : vector<16x18x4xbf16> to vector<16x16x4xbf16>
    %64 = vector.shape_cast %63 : vector<16x16x4xbf16> to vector<256x4xbf16>
    %c7 = arith.constant 7 : index
    %c0_35 = arith.constant 0 : index
    %c0_36 = arith.constant 0 : index
    %65 = vector.load %arg3[%c7, %c0_35, %c0_36] : memref<16x4x8xbf16, #tpu.memory_space<vmem>>, vector<1x4x8xbf16>
    %66 = vector.shape_cast %65 : vector<1x4x8xbf16> to vector<4x8xbf16>
    %cst_37 = arith.constant dense<0.000000e+00> : vector<256x8xf32>
    %67 = tpu.matmul %64, %66, %cst_37 {dimension_numbers = #tpu.dot_dimension_numbers<[1], [0], [0], [1], [0, 0, 1, 1], [], []>} : vector<256x4xbf16>, vector<4x8xbf16>, vector<256x8xf32> -> vector<256x8xf32>
    %68 = arith.addf %62, %67 : vector<256x8xf32>
    %69 = arith.truncf %68 : vector<256x8xf32> to vector<256x8xbf16>
    %c0_38 = arith.constant 0 : index
    %c1_39 = arith.constant 1 : index
    %c0_40 = arith.constant 0 : index
    %c0_41 = arith.constant 0 : index
    %70 = vector.load %arg5[%c0_38, %c1_39, %c0_40, %c0_41] : memref<1x4x256x8xbf16, #tpu.memory_space<vmem>>, vector<1x1x256x8xbf16>
    %71 = vector.shape_cast %70 : vector<1x1x256x8xbf16> to vector<256x8xbf16>
    %72 = vector.shape_cast %69 : vector<256x8xbf16> to vector<1x1x256x8xbf16>
    tpu.vector_store %arg5[%c0_38, %c1_39, %c0_40, %c0_41], %72 {strides = array<i32>} : memref<1x4x256x8xbf16, #tpu.memory_space<vmem>>, vector<1x1x256x8xbf16>,
    %73 = vector.extract_strided_slice %9 {offsets = [0, 0, 0], sizes = [16, 16, 4], strides = [1, 1, 1]} : vector<16x18x4xbf16> to vector<16x16x4xbf16>
    %74 = vector.shape_cast %73 : vector<16x16x4xbf16> to vector<256x4xbf16>
    %c8 = arith.constant 8 : index
    %c0_42 = arith.constant 0 : index
    %c0_43 = arith.constant 0 : index
    %75 = vector.load %arg3[%c8, %c0_42, %c0_43] : memref<16x4x8xbf16, #tpu.memory_space<vmem>>, vector<1x4x8xbf16>
    %76 = vector.shape_cast %75 : vector<1x4x8xbf16> to vector<4x8xbf16>
    %cst_44 = arith.constant dense<0.000000e+00> : vector<256x8xf32>
    %77 = tpu.matmul %74, %76, %cst_44 {dimension_numbers = #tpu.dot_dimension_numbers<[1], [0], [0], [1], [0, 0, 1, 1], [], []>} : vector<256x4xbf16>, vector<4x8xbf16>, vector<256x8xf32> -> vector<256x8xf32>
    %78 = vector.broadcast %14 : vector<1x8xf32> to vector<256x8xf32>
    %79 = arith.addf %78, %77 : vector<256x8xf32>
    %80 = vector.extract_strided_slice %9 {offsets = [0, 1, 0], sizes = [16, 16, 4], strides = [1, 1, 1]} : vector<16x18x4xbf16> to vector<16x16x4xbf16>
    %81 = vector.shape_cast %80 : vector<16x16x4xbf16> to vector<256x4xbf16>
    %c9 = arith.constant 9 : index
    %c0_45 = arith.constant 0 : index
    %c0_46 = arith.constant 0 : index
    %82 = vector.load %arg3[%c9, %c0_45, %c0_46] : memref<16x4x8xbf16, #tpu.memory_space<vmem>>, vector<1x4x8xbf16>
    %83 = vector.shape_cast %82 : vector<1x4x8xbf16> to vector<4x8xbf16>
    %cst_47 = arith.constant dense<0.000000e+00> : vector<256x8xf32>
    %84 = tpu.matmul %81, %83, %cst_47 {dimension_numbers = #tpu.dot_dimension_numbers<[1], [0], [0], [1], [0, 0, 1, 1], [], []>} : vector<256x4xbf16>, vector<4x8xbf16>, vector<256x8xf32> -> vector<256x8xf32>
    %85 = arith.addf %79, %84 : vector<256x8xf32>
    %86 = vector.extract_strided_slice %13 {offsets = [0, 0, 0], sizes = [16, 16, 4], strides = [1, 1, 1]} : vector<16x18x4xbf16> to vector<16x16x4xbf16>
    %87 = vector.shape_cast %86 : vector<16x16x4xbf16> to vector<256x4xbf16>
    %c10 = arith.constant 10 : index
    %c0_48 = arith.constant 0 : index
    %c0_49 = arith.constant 0 : index
    %88 = vector.load %arg3[%c10, %c0_48, %c0_49] : memref<16x4x8xbf16, #tpu.memory_space<vmem>>, vector<1x4x8xbf16>
    %89 = vector.shape_cast %88 : vector<1x4x8xbf16> to vector<4x8xbf16>
    %cst_50 = arith.constant dense<0.000000e+00> : vector<256x8xf32>
    %90 = tpu.matmul %87, %89, %cst_50 {dimension_numbers = #tpu.dot_dimension_numbers<[1], [0], [0], [1], [0, 0, 1, 1], [], []>} : vector<256x4xbf16>, vector<4x8xbf16>, vector<256x8xf32> -> vector<256x8xf32>
    %91 = arith.addf %85, %90 : vector<256x8xf32>
    %92 = vector.extract_strided_slice %13 {offsets = [0, 1, 0], sizes = [16, 16, 4], strides = [1, 1, 1]} : vector<16x18x4xbf16> to vector<16x16x4xbf16>
    %93 = vector.shape_cast %92 : vector<16x16x4xbf16> to vector<256x4xbf16>
    %c11 = arith.constant 11 : index
    %c0_51 = arith.constant 0 : index
    %c0_52 = arith.constant 0 : index
    %94 = vector.load %arg3[%c11, %c0_51, %c0_52] : memref<16x4x8xbf16, #tpu.memory_space<vmem>>, vector<1x4x8xbf16>
    %95 = vector.shape_cast %94 : vector<1x4x8xbf16> to vector<4x8xbf16>
    %cst_53 = arith.constant dense<0.000000e+00> : vector<256x8xf32>
    %96 = tpu.matmul %93, %95, %cst_53 {dimension_numbers = #tpu.dot_dimension_numbers<[1], [0], [0], [1], [0, 0, 1, 1], [], []>} : vector<256x4xbf16>, vector<4x8xbf16>, vector<256x8xf32> -> vector<256x8xf32>
    %97 = arith.addf %91, %96 : vector<256x8xf32>
    %98 = arith.truncf %97 : vector<256x8xf32> to vector<256x8xbf16>
    %c0_54 = arith.constant 0 : index
    %c2_55 = arith.constant 2 : index
    %c0_56 = arith.constant 0 : index
    %c0_57 = arith.constant 0 : index
    %99 = vector.load %arg5[%c0_54, %c2_55, %c0_56, %c0_57] : memref<1x4x256x8xbf16, #tpu.memory_space<vmem>>, vector<1x1x256x8xbf16>
    %100 = vector.shape_cast %99 : vector<1x1x256x8xbf16> to vector<256x8xbf16>
    %101 = vector.shape_cast %98 : vector<256x8xbf16> to vector<1x1x256x8xbf16>
    tpu.vector_store %arg5[%c0_54, %c2_55, %c0_56, %c0_57], %101 {strides = array<i32>} : memref<1x4x256x8xbf16, #tpu.memory_space<vmem>>, vector<1x1x256x8xbf16>,
    %102 = vector.extract_strided_slice %9 {offsets = [0, 1, 0], sizes = [16, 16, 4], strides = [1, 1, 1]} : vector<16x18x4xbf16> to vector<16x16x4xbf16>
    %103 = vector.shape_cast %102 : vector<16x16x4xbf16> to vector<256x4xbf16>
    %c12 = arith.constant 12 : index
    %c0_58 = arith.constant 0 : index
    %c0_59 = arith.constant 0 : index
    %104 = vector.load %arg3[%c12, %c0_58, %c0_59] : memref<16x4x8xbf16, #tpu.memory_space<vmem>>, vector<1x4x8xbf16>
    %105 = vector.shape_cast %104 : vector<1x4x8xbf16> to vector<4x8xbf16>
    %cst_60 = arith.constant dense<0.000000e+00> : vector<256x8xf32>
    %106 = tpu.matmul %103, %105, %cst_60 {dimension_numbers = #tpu.dot_dimension_numbers<[1], [0], [0], [1], [0, 0, 1, 1], [], []>} : vector<256x4xbf16>, vector<4x8xbf16>, vector<256x8xf32> -> vector<256x8xf32>
    %107 = vector.broadcast %14 : vector<1x8xf32> to vector<256x8xf32>
    %108 = arith.addf %107, %106 : vector<256x8xf32>
    %109 = vector.extract_strided_slice %9 {offsets = [0, 2, 0], sizes = [16, 16, 4], strides = [1, 1, 1]} : vector<16x18x4xbf16> to vector<16x16x4xbf16>
    %110 = vector.shape_cast %109 : vector<16x16x4xbf16> to vector<256x4xbf16>
    %c13 = arith.constant 13 : index
    %c0_61 = arith.constant 0 : index
    %c0_62 = arith.constant 0 : index
    %111 = vector.load %arg3[%c13, %c0_61, %c0_62] : memref<16x4x8xbf16, #tpu.memory_space<vmem>>, vector<1x4x8xbf16>
    %112 = vector.shape_cast %111 : vector<1x4x8xbf16> to vector<4x8xbf16>
    %cst_63 = arith.constant dense<0.000000e+00> : vector<256x8xf32>
    %113 = tpu.matmul %110, %112, %cst_63 {dimension_numbers = #tpu.dot_dimension_numbers<[1], [0], [0], [1], [0, 0, 1, 1], [], []>} : vector<256x4xbf16>, vector<4x8xbf16>, vector<256x8xf32> -> vector<256x8xf32>
    %114 = arith.addf %108, %113 : vector<256x8xf32>
    %115 = vector.extract_strided_slice %13 {offsets = [0, 1, 0], sizes = [16, 16, 4], strides = [1, 1, 1]} : vector<16x18x4xbf16> to vector<16x16x4xbf16>
    %116 = vector.shape_cast %115 : vector<16x16x4xbf16> to vector<256x4xbf16>
    %c14 = arith.constant 14 : index
    %c0_64 = arith.constant 0 : index
    %c0_65 = arith.constant 0 : index
    %117 = vector.load %arg3[%c14, %c0_64, %c0_65] : memref<16x4x8xbf16, #tpu.memory_space<vmem>>, vector<1x4x8xbf16>
    %118 = vector.shape_cast %117 : vector<1x4x8xbf16> to vector<4x8xbf16>
    %cst_66 = arith.constant dense<0.000000e+00> : vector<256x8xf32>
    %119 = tpu.matmul %116, %118, %cst_66 {dimension_numbers = #tpu.dot_dimension_numbers<[1], [0], [0], [1], [0, 0, 1, 1], [], []>} : vector<256x4xbf16>, vector<4x8xbf16>, vector<256x8xf32> -> vector<256x8xf32>
    %120 = arith.addf %114, %119 : vector<256x8xf32>
    %121 = vector.extract_strided_slice %13 {offsets = [0, 2, 0], sizes = [16, 16, 4], strides = [1, 1, 1]} : vector<16x18x4xbf16> to vector<16x16x4xbf16>
    %122 = vector.shape_cast %121 : vector<16x16x4xbf16> to vector<256x4xbf16>
    %c15 = arith.constant 15 : index
    %c0_67 = arith.constant 0 : index
    %c0_68 = arith.constant 0 : index
    %123 = vector.load %arg3[%c15, %c0_67, %c0_68] : memref<16x4x8xbf16, #tpu.memory_space<vmem>>, vector<1x4x8xbf16>
    %124 = vector.shape_cast %123 : vector<1x4x8xbf16> to vector<4x8xbf16>
    %cst_69 = arith.constant dense<0.000000e+00> : vector<256x8xf32>
    %125 = tpu.matmul %122, %124, %cst_69 {dimension_numbers = #tpu.dot_dimension_numbers<[1], [0], [0], [1], [0, 0, 1, 1], [], []>} : vector<256x4xbf16>, vector<4x8xbf16>, vector<256x8xf32> -> vector<256x8xf32>
    %126 = arith.addf %120, %125 : vector<256x8xf32>
    %127 = arith.truncf %126 : vector<256x8xf32> to vector<256x8xbf16>
    %c0_70 = arith.constant 0 : index
    %c3_71 = arith.constant 3 : index
    %c0_72 = arith.constant 0 : index
    %c0_73 = arith.constant 0 : index
    %128 = vector.load %arg5[%c0_70, %c3_71, %c0_72, %c0_73] : memref<1x4x256x8xbf16, #tpu.memory_space<vmem>>, vector<1x1x256x8xbf16>
    %129 = vector.shape_cast %128 : vector<1x1x256x8xbf16> to vector<256x8xbf16>
    %130 = vector.shape_cast %127 : vector<256x8xbf16> to vector<1x1x256x8xbf16>
    tpu.vector_store %arg5[%c0_70, %c3_71, %c0_72, %c0_73], %130 {strides = array<i32>} : memref<1x4x256x8xbf16, #tpu.memory_space<vmem>>, vector<1x1x256x8xbf16>,
    return
  }
  func.func @transform_0(%arg0: i32, %arg1: i32) -> (i32, i32, i32, i32) {
    %c0_i32 = arith.constant 0 : i32
    %c0_i32_0 = arith.constant 0 : i32
    %c0_i32_1 = arith.constant 0 : i32
    %c0_i32_2 = arith.constant 0 : i32
    return %arg0, %c0_i32, %c0_i32_0, %c0_i32_1 : i32, i32, i32, i32
  }
  func.func @transform_1(%arg0: i32, %arg1: i32) -> (i32, i32, i32) {
    %c0_i32 = arith.constant 0 : i32
    %c0_i32_0 = arith.constant 0 : i32
    %c0_i32_1 = arith.constant 0 : i32
    %c0_i32_2 = arith.constant 0 : i32
    return %c0_i32, %c0_i32_0, %c0_i32_1 : i32, i32, i32
  }
  func.func @transform_2(%arg0: i32, %arg1: i32) -> (i32, i32) {
    %c0_i32 = arith.constant 0 : i32
    %c0_i32_0 = arith.constant 0 : i32
    %c0_i32_1 = arith.constant 0 : i32
    return %c0_i32, %c0_i32_0 : i32, i32
  }
  func.func @transform_3(%arg0: i32, %arg1: i32) -> (i32, i32, i32, i32) {
    %c0_i32 = arith.constant 0 : i32
    %c0_i32_0 = arith.constant 0 : i32
    %c0_i32_1 = arith.constant 0 : i32
    return %arg0, %c0_i32, %arg1, %c0_i32_0 : i32, i32, i32, i32
  }
}

</mosaic_0001>

<bundles_post_ra>
// kernel: tpu_custom_call.1
= control target key start
LH: loop header
LB: loop body
LE: loop exit
PB: predicated region body
PF: predicated region fallthrough
CT: control target
= control target key end

     0   :  { %s9181_s12 = smov 0   ;;  %s9183_s13 = smov 0   ;;  %s12103_s0 = inlined_call_operand.vmem [shape: bf16[2,18,18,4], index: 0, kind: input, shape index: {}]   ;;  %s12104_s1 = inlined_call_operand.vmem [shape: bf16[16,4,8], index: 1, kind: input, shape index: {}]   ;;  %s12105_s2 = inlined_call_operand.vmem [shape: f32[1,8], index: 2, kind: input, shape index: {}]   ;;  %s12106_s3 = inlined_call_operand.vmem [shape: bf16[2,4,256,8], index: 3, kind: output, shape index: {}]  }
   0x1   :  { %s9185_s14 = smov 0  }
   0x2 LB: > { %s25_s15 = sadd.s32 1, %s9155_s13  ;;  %p6768_p0 = scmp.ge.s32.totalorder %s9159_s14, 1  ;;  %s9159_s14 = sphi %s9185_s14, %s13_s14   ;;  %s9155_s13 = sphi %s9183_s13, %s12368_s13   ;;  %s9151_s12 = sphi %s9181_s12, %s12367_s12  }
   0x3   : > { %p27_p1 = scmp.ge.s32.totalorder %s25_s15, 2  ;;  %p151_p2 = scmp.lt.s32.totalorder %s9159_s14, 3 }
   0x5   : > { %s12370_s15 = smov (%p27_p1, %s25_s15), 0  ;;  %p152_p3 = pnand %p6768_p0, %p151_p2 }
   0x7   : > { %155 = sbr.rel (%p152_p3) target bundleno = 770 (0x302), region = 32 }
   0xe   : > { %v352_v0 = vld [vmem:[%s12104_s1] sm:$0x3]  ;;  %vm482_vm0 = vcmask 1041408   ;;  %p179_p4 = scmp.lt.s32.totalorder %s9151_s12, 1  ;;  %v7032_v2 = vld [vmem:[%s12104_s1 + $0x8] sm:$0x3] }
   0xf   : > { %9015 = vmatprep.subr.msk.bf16.mxu0 %vm482_vm0, %v352_v0  ;;  %v484_v1 = vsel %vm482_vm0, %v352_v0, 0  ;;  %v6901_v3 = vld [vmem:[%s12104_s1 + $0x2] sm:$0x3]  ;;  %9019 = vmatprep.subr.msk.bf16.mxu1 %vm482_vm0, %v7032_v2  ;;  %v2534_v4 = vsel %vm482_vm0, %v7032_v2, 0  ;;  %v7065_v5 = vld [vmem:[%s12104_s1 + $0xa] sm:$0x3] }
  0x10   : > { %7960 = vmatpush3.bf16.msra.mxu0 %v484_v1  ;;  %s12372_s12 = smov (!%p179_p4, %s9151_s12), 1  ;;  %8096 = vmatpush3.bf16.msra.mxu1 %v2534_v4  ;;  %v6934_v6 = vld [vmem:[%s12104_s1 + $0x4] sm:$0x3]  ;;  %vm433_vm1 = vcmask 31744   ;;  %vm685_vm2 = vsmask.f32 3328 }
  0x11   : > { %9016 = vmatprep.subr.msk.bf16.mxu0 %vm482_vm0, %v6901_v3  ;;  %s9031_s26 = smul.u32 216, %s12372_s12  ;;  %9020 = vmatprep.subr.msk.bf16.mxu1 %vm482_vm0, %v7065_v5  ;;  %vm686_vm3 = vsmask.f32 7440  ;;  %v1171_v7 = vsel %vm482_vm0, %v6901_v3, 0  ;;  %v9230_v8 = vsel %vm482_vm0, %v7065_v5, 0  ;;  %v9233_v9 = vsel %vm482_vm0, %v6934_v6, 0 }
  0x12   : > { %vm9310_vm4 = vmor %vm685_vm2, %vm686_vm3  ;;  %vm2745_vm5 = vcmask 1042432   ;;  %vm2746_vm6 = vcmask 1046532   ;;  %vm2498_vm8 = vcmask 60416   ;;  %s7558_s5 = sshll.u32 %s12372_s12, 9 }
  0x13   : > { %s9226_s29 = scalar_lea.vmem %s12103_s0, %s9031_s26  ;;  %vm9697_vm7 = vmor %vm2745_vm5, %vm2746_vm6  ;;  %s11275_s7 = scalar_lea.vmem %s12106_s3, %s7558_s5 }
  0x14   : > { %v9236_v10 = vld [vmem:[%s9226_s29] sm:$0xf]  ;;  %v9239_v11 = vld [vmem:[%s9226_s29 + $0x4] sm:$0xf]  ;;  %v9242_v12 = vld [vmem:[%s9226_s29 + $0xc] sm:$0xf] }
  0x15   : > { %v6868_v13 = vcombine.low %v9236_v10, %v9239_v11  ;;  %v689_v14 = vshrl.u32 %v9236_v10, 16  ;;  %v692_v15 = vshll.u32 %v9236_v10, 16  ;;  %v702_v16 = vshrl.u32 %v9239_v11, 16  ;;  %v9250_v17 = vld [vmem:[%s9226_s29 + $0x10] sm:$0xf] }
  0x16   : > { %v12108_v19 = vrot.slane %v9239_v11, 5  ;;  %v6869_v20 = vcombine.low %v9242_v12, %v9250_v17  ;;  %v713_v21 = vshrl.u32 %v9242_v12, 16  ;;  %v9258_v22 = vld [vmem:[%s9226_s29 + $0x18] sm:$0xf]  ;;  %v716_v23 = vshll.u32 %v9242_v12, 16 }
  0x17   : > { %7961 = vmatprep.mubr.msk.bf16.mxu0 %vm433_vm1, %v6868_v13  ;;  %v726_v24 = vshrl.u32 %v9250_v17, 16  ;;  %v12107_v26 = vrot.slane %v9250_v17, 5  ;;  %v9266_v27 = vld [vmem:[%s9226_s29 + $0x1c] sm:$0xf]  ;;  %v737_v30 = vshrl.u32 %v9258_v22, 16  ;;  %v740_v31 = vshll.u32 %v9258_v22, 16 }
  0x18   : > { %v9270_v28 = vrot.slane %v12108_v19, 4  ;;  %7962 = vmatmul.mubr.msk.bf16.vlgmr.msra.gmra.mrb[0].mxu0 %vm433_vm1, %v6869_v20  ;;  %v6870_v29 = vcombine.low %v9258_v22, %v9266_v27  ;;  %v9278_v32 = vld [vmem:[%s9226_s29 + $0x24] sm:$0xf]  ;;  %v750_v34 = vshrl.u32 %v9266_v27, 16  ;;  %v9286_v35 = vld [vmem:[%s9226_s29 + $0x28] sm:$0xf] }
  0x19   : > { %v9282_v33 = vrot.slane %v12107_v26, 4  ;;  %v761_v36 = vshrl.u32 %v9278_v32, 16  ;;  %v764_v37 = vshll.u32 %v9278_v32, 16  ;;  %7994 = vmatpush3.bf16.msra.mxu0 %v1171_v7  ;;  %v6871_v38 = vcombine.low %v9278_v32, %v9286_v35  ;;  %v9295_v40 = vld [vmem:[%s9226_s29 + $0x8] sm:$0x1] }
  0x1a   : > { %7965 = vmatprep.mubr.msk.bf16.mxu0 %vm433_vm1, %v6870_v29  ;;  %v774_v39 = vshrl.u32 %v9286_v35, 16  ;;  %v691_v41 = vrot.slane %v689_v14, 4  ;;  %v694_v42 = vrot.slane %v692_v15, 5  ;;  %9017 = vmatprep.subr.msk.bf16.mxu0 %vm482_vm0, %v6934_v6  ;;  %v698_v43 = vshll.u32 %v9239_v11, 16  ;;  %v9302_v47 = vld [vmem:[%s9226_s29 + $0x14] sm:$0x1] }
  0x1b   : > { %v704_v44 = vrot.slane %v702_v16, 4  ;;  %v708_v45 = vshll.u32 %v9295_v40, 16  ;;  %v715_v49 = vrot.slane %v713_v21, 4  ;;  %v718_v50 = vrot.slane %v716_v23, 5  ;;  %v9306_v52 = vld [vmem:[%s9226_s29 + $0x30] sm:$0xf] }
  0x1c   : > { %v695_v48 = vor.u32 %v694_v42, %v691_v41  ;;  %v722_v51 = vshll.u32 %v9250_v17, 16  ;;  %v700_v54 = vrot.slane %v698_v43, 5  ;;  %v728_v56 = vrot.slane %v726_v24, 4  ;;  %v9316_v58 = vld [vmem:[%s9226_s29 + $0x34] sm:$0xf] }
  0x1d   : > { %v710_v55 = vrot.slane %v708_v45, 5  ;;  %v732_v57 = vshll.u32 %v9302_v47, 16  ;;  %v719_v60 = vor.u32 %v718_v50, %v715_v49  ;;  %v9320_v63 = vld [vmem:[%s9226_s29 + $0x3c] sm:$0xf]  ;;  %v6872_v2 = vcombine.low %v9306_v52, %v9316_v58  ;;  %v9326_v4 = vld [vmem:[%s9226_s29 + $0x40] sm:$0xf] }
  0x1e   : > { %v696_v59 = vrot.slane %v695_v48, 4  ;;  %v724_v61 = vrot.slane %v722_v51, 5  ;;  %v705_v0 = vor.u32 %v704_v44, %v700_v54  ;;  %v785_v3 = vshrl.u32 %v9306_v52, 16  ;;  %v9338_v21 = vld [vmem:[%s9226_s29 + $0x20] sm:$0x1] }
  0x1f   : > { %v734_v1 = vrot.slane %v732_v57, 5  ;;  %v720_v6 = vrot.slane %v719_v60, 4  ;;  %v788_v13 = vshll.u32 %v9306_v52, 16  ;;  %v798_v15 = vshrl.u32 %v9316_v58, 16  ;;  %v9348_v45 = vld [vmem:[%s9226_s29 + $0x2c] sm:$0x1] }
  0x20   : > { %7966 = vmatmul.mubr.msk.bf16.gmra.mrb[4].mxu0 %vm433_vm1, %v6871_v38  ;;  %v701_v5 = vsel %vm9310_vm4, %v696_v59, %v700_v54  ;;  %v729_v7 = vor.u32 %v728_v56, %v724_v61  ;;  %v706_v14 = vrot.slane %v705_v0, 4  ;;  %v6873_v16 = vcombine.low %v9320_v63, %v9326_v4  ;;  %v9356_v54 = vld [vmem:[%s9226_s29 + $0x48] sm:$0xf]  ;;  %v9359_v56 = vld [vmem:[%s9226_s29 + $0x4c] sm:$0xf] }
  0x21   : > { %7969 = vmatprep.mubr.msk.bf16.mxu0 %vm433_vm1, %v6872_v2  ;;  %v809_v20 = vshrl.u32 %v9320_v63, 16  ;;  %v725_v23 = vsel %vm9310_vm4, %v720_v6, %v724_v61  ;;  %v812_v29 = vshll.u32 %v9320_v63, 16  ;;  %v822_v38 = vshrl.u32 %v9326_v4, 16  ;;  %v9375_v0 = vld [vmem:[%s12104_s1 + $0xc] sm:$0x3] }
  0x22   : > { %v730_v24 = vrot.slane %v729_v7, 4  ;;  %v711_v41 = vsel %vm9310_vm4, %v706_v14, %v710_v55  ;;  %v739_v42 = vrot.slane %v737_v30, 4  ;;  %v742_v43 = vrot.slane %v740_v31, 5  ;;  %v9386_v6 = vld [vmem:[%s9226_s29 + $0x58] sm:$0xf] }
  0x23   : > { %v746_v44 = vshll.u32 %v9266_v27, 16  ;;  %v9350_v48 = vcombine.low %v701_v5, %v711_v41  ;;  %v752_v50 = vrot.slane %v750_v34, 4  ;;  %v756_v51 = vshll.u32 %v9338_v21, 16  ;;  %v9383_v5 = vld [vmem:[%s9226_s29 + $0x54] sm:$0xf]  ;;  %12194 = vst [vmem:[#allocation3_spill] sm:$0xff] %v9386_v6 }
  0x24   : > { %v735_v49 = vsel %vm9310_vm4, %v730_v24, %v734_v1  ;;  %v743_v30 = vor.u32 %v742_v43, %v739_v42  ;;  %v763_v57 = vrot.slane %v761_v36, 4  ;;  %v766_v34 = vrot.slane %v764_v37, 5  ;;  %12193 = vst [vmem:[#allocation2_spill] sm:$0xff] %v9383_v5  ;;  %v9439_v62 = vld [vmem:[%s9226_s29 + $0x6c] sm:$0xf] }
  0x25   : > { %v9361_v55 = vcombine.low %v725_v23, %v735_v49  ;;  %v748_v31 = vrot.slane %v746_v44, 5  ;;  %8097 = vmatprep.mubr.msk.bf16.mxu1 %vm433_vm1, %v9350_v48  ;;  %v758_v59 = vrot.slane %v756_v51, 5  ;;  %v770_v60 = vshll.u32 %v9286_v35, 16  ;;  %12198 = vst [vmem:[#allocation7_spill] sm:$0xff] %v9439_v62  ;;  %v9460_v26 = vld [vmem:[%s9226_s29 + $0x50] sm:$0x1] }
  0x26   : > { %v776_v61 = vrot.slane %v774_v39, 4  ;;  %v744_v36 = vrot.slane %v743_v30, 4  ;;  %v780_v2 = vshll.u32 %v9348_v45, 16  ;;  %v6874_v37 = vcombine.low %v9356_v54, %v9359_v56  ;;  %v9474_v18 = vld [vmem:[%s9226_s29 + $0x5c] sm:$0x1] }
  0x27   : > { %8098 = vmatmul.mubr.msk.bf16.vlgmr.msra.gmra.mrb[0].mxu1 %vm433_vm1, %v9361_v55  ;;  %v753_v1 = vor.u32 %v752_v50, %v748_v31  ;;  %v767_v39 = vor.u32 %v766_v34, %v763_v57  ;;  %v772_v7 = vrot.slane %v770_v60, 5  ;;  %v833_v14 = vshrl.u32 %v9356_v54, 16  ;;  %v9402_v50 = vld [vmem:[%s9226_s29 + $0x38] sm:$0x1]  ;;  %12200 = vst [vmem:[#allocation9_spill] sm:$0xff] %v9474_v18 }
  0x28   : > { %8130 = vmatpush3.bf16.msra.mxu1 %v9230_v8  ;;  %7970 = vmatmul.mubr.msk.bf16.gmra.mrb[8].mxu0 %vm433_vm1, %v6873_v16  ;;  %v836_v23 = vshll.u32 %v9356_v54, 16  ;;  %v749_v24 = vsel %vm9310_vm4, %v744_v36, %v748_v31  ;;  %v782_v42 = vrot.slane %v780_v2, 5  ;;  %v846_v43 = vshrl.u32 %v9359_v56, 16 }
  0x29   : > { %v754_v41 = vrot.slane %v753_v1, 4  ;;  %7973 = vmatprep.mubr.msk.bf16.mxu0 %vm433_vm1, %v6874_v37  ;;  %9021 = vmatprep.subr.msk.bf16.mxu1 %vm482_vm0, %v9375_v0  ;;  %v768_v8 = vrot.slane %v767_v39, 4  ;;  %v777_v16 = vor.u32 %v776_v61, %v772_v7  ;;  %v6875_v44 = vcombine.low %v9383_v5, %v9386_v6  ;;  %v9419_v37 = vld [vmem:[%s9226_s29 + $0x44] sm:$0x1] }
  0x2a   : > { %v857_v49 = vshrl.u32 %v9383_v5, 16  ;;  %v860_v30 = vshll.u32 %v9383_v5, 16  ;;  %v870_v31 = vshrl.u32 %v9386_v6, 16  ;;  %v787_v57 = vrot.slane %v785_v3, 4  ;;  %12195 = vst [vmem:[#allocation4_spill] sm:$0xff] %v9419_v37 }
  0x2b   : > { %v759_v51 = vsel %vm9310_vm4, %v754_v41, %v758_v59  ;;  %v773_v60 = vsel %vm9310_vm4, %v768_v8, %v772_v7  ;;  %v778_v61 = vrot.slane %v777_v16, 4  ;;  %v790_v36 = vrot.slane %v788_v13, 5  ;;  %v9429_v41 = vld [vmem:[%s9226_s29 + $0x60] sm:$0xf] }
  0x2c   : > { %v9410_v34 = vcombine.low %v749_v24, %v759_v51  ;;  %v794_v59 = vshll.u32 %v9316_v58, 16  ;;  %v800_v1 = vrot.slane %v798_v15, 4  ;;  %v804_v2 = vshll.u32 %v9402_v50, 16  ;;  %12196 = vst [vmem:[#allocation5_spill] sm:$0xff] %v9429_v41  ;;  %v9432_v15 = vld [vmem:[%s9226_s29 + $0x64] sm:$0xf] }
  0x2d   : > { %v811_v39 = vrot.slane %v809_v20, 4  ;;  %v783_v3 = vsel %vm9310_vm4, %v778_v61, %v782_v42  ;;  %v791_v7 = vor.u32 %v790_v36, %v787_v57  ;;  %v814_v13 = vrot.slane %v812_v29, 5  ;;  %12197 = vst [vmem:[#allocation6_spill] sm:$0xff] %v9432_v15  ;;  %v9444_v36 = vld [vmem:[%s9226_s29 + $0x70] sm:$0xf] }
  0x2e   : > { %8101 = vmatprep.mubr.msk.bf16.mxu1 %vm433_vm1, %v9410_v34  ;;  %v818_v24 = vshll.u32 %v9326_v4, 16  ;;  %v9434_v8 = vcombine.low %v773_v60, %v783_v3  ;;  %v796_v20 = vrot.slane %v794_v59, 5  ;;  %v806_v16 = vrot.slane %v804_v2, 5  ;;  %12199 = vst [vmem:[#allocation8_spill] sm:$0xff] %v9444_v36 }
  0x2f   : > { %v824_v51 = vrot.slane %v822_v38, 4  ;;  %v792_v42 = vrot.slane %v791_v7, 4  ;;  %v815_v57 = vor.u32 %v814_v13, %v811_v39  ;;  %v828_v61 = vshll.u32 %v9419_v37, 16 }
  0x30   : > { %7974 = vmatmul.mubr.msk.bf16.gmra.mrb[12].mxu0 %vm433_vm1, %v6875_v44  ;;  %v820_v29 = vrot.slane %v818_v24, 5  ;;  %8102 = vmatmul.mubr.msk.bf16.gmra.mrb[4].mxu1 %vm433_vm1, %v9434_v8  ;;  %v801_v60 = vor.u32 %v800_v1, %v796_v20  ;;  %v6876_v59 = vcombine.low %v9429_v41, %v9432_v15  ;;  %v881_v38 = vshrl.u32 %v9429_v41, 16 }
  0x31   : > { %v797_v44 = vsel %vm9310_vm4, %v792_v42, %v796_v20  ;;  %v816_v39 = vrot.slane %v815_v57, 4  ;;  %v830_v7 = vrot.slane %v828_v61, 5  ;;  %v894_v24 = vshrl.u32 %v9432_v15, 16 }
  0x32   : > { %v825_v3 = vor.u32 %v824_v51, %v820_v29  ;;  %v802_v13 = vrot.slane %v801_v60, 4  ;;  %7977 = vmatprep.mubr.msk.bf16.mxu0 %vm433_vm1, %v6876_v59  ;;  %v6877_v1 = vcombine.low %v9439_v62, %v9444_v36  ;;  %v905_v25 = vshrl.u32 %v9439_v62, 16 }
  0x33   : > { %v821_v20 = vsel %vm9310_vm4, %v816_v39, %v820_v29  ;;  %v908_v42 = vshll.u32 %v9439_v62, 16  ;;  %v835_v60 = vrot.slane %v833_v14, 4  ;;  %v838_v59 = vrot.slane %v836_v23, 5  ;;  %v9487_v14 = vld [vmem:[%s9226_s29 + $0x7c] sm:$0xf] }
  0x34   : > { %v826_v51 = vrot.slane %v825_v3, 4  ;;  %v807_v61 = vsel %vm9310_vm4, %v802_v13, %v806_v16  ;;  %v842_v46 = vshll.u32 %v9359_v56, 16  ;;  %v848_v39 = vrot.slane %v846_v43, 4  ;;  %v9484_v3 = vld [vmem:[%s9226_s29 + $0x78] sm:$0xf]  ;;  %12202 = vst [vmem:[#allocation11_spill] sm:$0xff] %v9487_v14 }
  0x35   : > { %v9476_v19 = vcombine.low %v797_v44, %v807_v61  ;;  %v852_v16 = vshll.u32 %v9460_v26, 16  ;;  %12201 = vst [vmem:[#allocation10_spill] sm:$0xff] %v9484_v3  ;;  %v839_v13 = vor.u32 %v838_v59, %v835_v60  ;;  %v859_v44 = vrot.slane %v857_v49, 4  ;;  %v9510_v59 = vld [vmem:[%s9226_s29 + $0x88] sm:$0xf] }
  0x36   : > { %v831_v29 = vsel %vm9310_vm4, %v826_v51, %v830_v7  ;;  %v844_v57 = vrot.slane %v842_v46, 5  ;;  %v862_v7 = vrot.slane %v860_v30, 5  ;;  %v866_v51 = vshll.u32 %v9386_v6, 16  ;;  %12205 = vst [vmem:[#allocation14_spill] sm:$0xff] %v9510_v59 }
  0x37   : > { %v9489_v23 = vcombine.low %v821_v20, %v831_v29  ;;  %8105 = vmatprep.mubr.msk.bf16.mxu1 %vm433_vm1, %v9476_v19  ;;  %v854_v43 = vrot.slane %v852_v16, 5  ;;  %v872_v20 = vrot.slane %v870_v31, 4  ;;  %v840_v46 = vrot.slane %v839_v13, 4 }
  0x38   : > { %7978 = vmatmul.mubr.msk.bf16.gmra.mrb[16].mxu0 %vm433_vm1, %v6877_v1  ;;  %v849_v61 = vor.u32 %v848_v39, %v844_v57  ;;  %v876_v49 = vshll.u32 %v9474_v18, 16  ;;  %v6878_v60 = vcombine.low %v9484_v3, %v9487_v14  ;;  %v9507_v1 = vld [vmem:[%s9226_s29 + $0x84] sm:$0xf]  ;;  %v863_v30 = vor.u32 %v862_v7, %v859_v44 }
  0x39   : > { %12203 = vst [vmem:[#allocation12_spill] sm:$0xff] %v9489_v23  ;;  %8106 = vmatmul.mubr.msk.bf16.gmra.mrb[8].mxu1 %vm433_vm1, %v9489_v23  ;;  %12204 = vst [vmem:[#allocation13_spill] sm:$0xff] %v9507_v1  ;;  %v868_v29 = vrot.slane %v866_v51, 5  ;;  %v845_v13 = vsel %vm9310_vm4, %v840_v46, %v844_v57  ;;  %v6879_v44 = vcombine.low %v9507_v1, %v9510_v59  ;;  %v9522_v51 = vld [vmem:[%s9226_s29 + $0x68] sm:$0x1]  ;;  %v890_v62 = vshll.u32 %v9432_v15, 16 }
  0x3a   : > { %v850_v39 = vrot.slane %v849_v61, 4  ;;  %v878_v2 = vrot.slane %v876_v49, 5  ;;  %7981 = vmatprep.mubr.msk.bf16.mxu0 %vm433_vm1, %v6878_v60  ;;  %v864_v18 = vrot.slane %v863_v30, 4  ;;  %12206 = vst [vmem:[#allocation15_spill] sm:$0xff] %v9522_v51  ;;  %v883_v61 = vrot.slane %v881_v38, 4 }
  0x3b   : > { %v873_v6 = vor.u32 %v872_v20, %v868_v29  ;;  %v12208_v30 = vshll.u32 %v9429_v41, 16  ;;  %v896_v16 = vrot.slane %v894_v24, 4  ;;  %v907_v38 = vrot.slane %v905_v25, 4  ;;  %v9546_v24 = vld [vmem:[%s9226_s29 + $0x90] sm:$0xf] }
  0x3c   : > { %v855_v31 = vsel %vm9310_vm4, %v850_v39, %v854_v43  ;;  %v869_v20 = vsel %vm9310_vm4, %v864_v18, %v868_v29  ;;  %v900_v43 = vshll.u32 %v9522_v51, 16  ;;  %v9537_v39 = vld [vmem:[%s9226_s29 + $0x74] sm:$0x1]  ;;  %v914_v29 = vshll.u32 %v9444_v36, 16  ;;  %v9556_v15 = vld [vmem:[%s9226_s29 + $0x9c] sm:$0xf] }
  0x3d   : > { %v9528_v49 = vcombine.low %v845_v13, %v855_v31  ;;  %v874_v60 = vrot.slane %v873_v6, 4  ;;  %v886_v7 = vrot.slane %v12208_v30, 5  ;;  %12209 = vst [vmem:[#allocation17_spill] sm:$0xff] %v9537_v39  ;;  %v910_v6 = vrot.slane %v908_v42, 5  ;;  %v9549_v13 = vld [vmem:[%s9226_s29 + $0x94] sm:$0xf] }
  0x3e   : > { %v892_v25 = vrot.slane %v890_v62, 5  ;;  %v902_v46 = vrot.slane %v900_v43, 5  ;;  %v12211_v57 = vshrl.u32 %v9444_v36, 16  ;;  %v924_v42 = vshll.u32 %v9537_v39, 16  ;;  %v9576_v39 = vld [vmem:[%s9226_s29 + $0x80] sm:$0x1] }
  0x3f   : > { %12207 = vst [vmem:[#allocation16_spill] sm:$0xff] %v9528_v49  ;;  %8109 = vmatprep.mubr.msk.bf16.mxu1 %vm433_vm1, %v9528_v49  ;;  %v879_v31 = vsel %vm9310_vm4, %v874_v60, %v878_v2  ;;  %v887_v18 = vor.u32 %v886_v7, %v883_v61  ;;  %v911_v60 = vor.u32 %v910_v6, %v907_v38  ;;  %v9560_v7 = vld [vmem:[%s9226_s29 + $0xa0] sm:$0xf]  ;;  %12212 = vst [vmem:[#allocation19_spill] sm:$0xff] %v9576_v39  ;;  %v9590_v49 = vld [vmem:[%s9226_s29 + $0x8c] sm:$0x1] }
  0x40   : > { %7982 = vmatmul.mubr.msk.bf16.gmra.mrb[20].mxu0 %vm433_vm1, %v6879_v44  ;;  %v9551_v30 = vcombine.low %v869_v20, %v879_v31  ;;  %v920_v51 = vrot.slane %v12211_v57, 4  ;;  %v916_v44 = vrot.slane %v914_v29, 5  ;;  %v897_v61 = vor.u32 %v896_v16, %v892_v25  ;;  %12215 = vst [vmem:[#allocation20_spill] sm:$0xff] %v9590_v49 }
  0x41   : > { %v888_v2 = vrot.slane %v887_v18, 4  ;;  %v6880_v62 = vcombine.low %v9546_v24, %v9549_v13  ;;  %v977_v20 = vshrl.u32 %v9546_v24, 16  ;;  %v912_v38 = vrot.slane %v911_v60, 4 }
  0x42   : > { %12210 = vst [vmem:[#allocation18_spill] sm:$0xff] %v9551_v30  ;;  %8110 = vmatmul.mubr.msk.bf16.gmra.mrb[12].mxu1 %vm433_vm1, %v9551_v30  ;;  %v921_v31 = vor.u32 %v920_v51, %v916_v44  ;;  %v926_v18 = vrot.slane %v924_v42, 5  ;;  %v898_v6 = vrot.slane %v897_v61, 4  ;;  %v990_v29 = vshrl.u32 %v9549_v13, 16 }
  0x43   : > { %v893_v43 = vsel %vm9310_vm4, %v888_v2, %v892_v25  ;;  %7985 = vmatprep.mubr.msk.bf16.mxu0 %vm433_vm1, %v6880_v62  ;;  %v6881_v16 = vcombine.low %v9556_v15, %v9560_v7  ;;  %v1001_v30 = vshrl.u32 %v9556_v15, 16  ;;  %v917_v25 = vsel %vm9310_vm4, %v912_v38, %v916_v44 }
  0x44   : > { %v922_v51 = vrot.slane %v921_v31, 4  ;;  %v903_v42 = vsel %vm9310_vm4, %v898_v6, %v902_v46  ;;  %v12213_v61 = vshrl.u32 %v9484_v3, 16  ;;  %v12214_v57 = vshll.u32 %v9484_v3, 16  ;;  %v9601_v6 = vld [vmem:[%s9226_s29 + $0xa8] sm:$0xf] }
  0x45   : > { %v938_v41 = vshll.u32 %v9487_v14, 16  ;;  %v9592_v23 = vcombine.low %v893_v43, %v903_v42  ;;  %v12217_v38 = vshrl.u32 %v9487_v14, 16  ;;  %v948_v31 = vshll.u32 %v9576_v39, 16  ;;  %12218 = vst [vmem:[#allocation22_spill] sm:$0xff] %v9601_v6 }
  0x46   : > { %v931_v62 = vrot.slane %v12213_v61, 4  ;;  %v934_v36 = vrot.slane %v12214_v57, 5  ;;  %v927_v44 = vsel %vm9310_vm4, %v922_v51, %v926_v18  ;;  %v9604_v57 = vld [vmem:[%s9226_s29 + $0xac] sm:$0xf]  ;;  %v12220_v60 = vshrl.u32 %v9507_v1, 16 }
  0x47   : > { %12216 = vst [vmem:[#allocation21_spill] sm:$0xff] %v9592_v23  ;;  %v944_v46 = vrot.slane %v12217_v38, 4  ;;  %v9606_v61 = vcombine.low %v917_v25, %v927_v44  ;;  %v940_v42 = vrot.slane %v938_v41, 5  ;;  %8113 = vmatprep.mubr.msk.bf16.mxu1 %vm433_vm1, %v9592_v23  ;;  %v12221_v51 = vshll.u32 %v9507_v1, 16  ;;  %v9626_v44 = vld [vmem:[%s9226_s29 + $0xb8] sm:$0xf] }
  0x48   : > { %7986 = vmatmul.mubr.msk.bf16.gmra.mrb[24].mxu0 %vm433_vm1, %v6881_v16  ;;  %v935_v43 = vor.u32 %v934_v36, %v931_v62  ;;  %v955_v18 = vrot.slane %v12220_v60, 4  ;;  %v950_v16 = vrot.slane %v948_v31, 5  ;;  %v962_v2 = vshll.u32 %v9510_v59, 16  ;;  %v9623_v62 = vld [vmem:[%s9226_s29 + $0xb4] sm:$0xf] }
  0x49   : > { %12219 = vst [vmem:[#allocation23_spill] sm:$0xff] %v9606_v61  ;;  %v958_v38 = vrot.slane %v12221_v51, 5  ;;  %v12222_v39 = vshrl.u32 %v9510_v59, 16  ;;  %v945_v41 = vor.u32 %v944_v46, %v940_v42  ;;  %v972_v25 = vshll.u32 %v9590_v49, 16  ;;  %12223 = vst [vmem:[#allocation24_spill] sm:$0xff] %v9623_v62 }
  0x4a   : > { %8114 = vmatmul.mubr.msk.bf16.gmra.mrb[16].mxu1 %vm433_vm1, %v9606_v61  ;;  %v936_v36 = vrot.slane %v935_v43, 4  ;;  %v6882_v60 = vcombine.low %v9601_v6, %v9604_v57  ;;  %v964_v51 = vrot.slane %v962_v2, 5  ;;  %v1025_v23 = vshrl.u32 %v9601_v6, 16 }
  0x4b   : > { %v968_v14 = vrot.slane %v12222_v39, 4  ;;  %v959_v31 = vor.u32 %v958_v38, %v955_v18  ;;  %v1028_v39 = vshll.u32 %v9601_v6, 16  ;;  %v946_v46 = vrot.slane %v945_v41, 4  ;;  %v9638_v18 = vld [vmem:[%s9226_s29 + $0x98] sm:$0x1] }
  0x4c   : > { %v941_v43 = vsel %vm9310_vm4, %v936_v36, %v940_v42  ;;  %v974_v61 = vrot.slane %v972_v25, 5  ;;  %7989 = vmatprep.mubr.msk.bf16.mxu0 %vm433_vm1, %v6882_v60  ;;  %v1038_v49 = vshrl.u32 %v9604_v57, 16  ;;  %v6883_v3 = vcombine.low %v9623_v62, %v9626_v44  ;;  %12224 = vst [vmem:[#allocation25_spill] sm:$0xff] %v9638_v18 }
  0x4d   : > { %v960_v59 = vrot.slane %v959_v31, 4  ;;  %v969_v1 = vor.u32 %v968_v14, %v964_v51  ;;  %v1049_v2 = vshrl.u32 %v9623_v62, 16  ;;  %v951_v42 = vsel %vm9310_vm4, %v946_v46, %v950_v16  ;;  %v9654_v46 = vld [vmem:[%s9226_s29 + $0xa4] sm:$0x1] }
  0x4e   : > { %v1052_v38 = vshll.u32 %v9623_v62, 16  ;;  %v979_v41 = vrot.slane %v977_v20, 4  ;;  %v9644_v25 = vcombine.low %v941_v43, %v951_v42  ;;  %v12226_v31 = vshll.u32 %v9546_v24, 16 }
  0x4f   : > { %v965_v14 = vsel %vm9310_vm4, %v960_v59, %v964_v51  ;;  %v970_v60 = vrot.slane %v969_v1, 4  ;;  %v986_v5 = vshll.u32 %v9549_v13, 16  ;;  %v992_v37 = vrot.slane %v990_v29, 4 }
  0x50   : > { %12225 = vst [vmem:[#allocation26_spill] sm:$0xff] %v9644_v25  ;;  %7990 = vmatmul.mubr.msk.bf16.gmra.mrb[28].mxu0 %vm433_vm1, %v6883_v3  ;;  %v982_v6 = vrot.slane %v12226_v31, 5  ;;  %v996_v16 = vshll.u32 %v9638_v18, 16  ;;  %v1003_v36 = vrot.slane %v1001_v30, 4  ;;  %8117 = vmatprep.mubr.msk.bf16.mxu1 %vm433_vm1, %v9644_v25  ;;  %v12227_v59 = vshll.u32 %v9556_v15, 16 }
  0x51   : > { %7995 = vmatprep.mubr.msk.bf16.mxu0 %vm433_vm1, %v9350_v48  ;;  %v975_v3 = vsel %vm9310_vm4, %v970_v60, %v974_v61  ;;  %v1010_v29 = vshll.u32 %v9560_v7, 16  ;;  %v988_v43 = vrot.slane %v986_v5, 5  ;;  %v12228_v42 = vshrl.u32 %v9560_v7, 16  ;;  %v9673_v61 = vld [vmem:[%s9226_s29 + $0xb0] sm:$0x1] }
  0x52   : > { %v983_v1 = vor.u32 %v982_v6, %v979_v41  ;;  %v1006_v20 = vrot.slane %v12227_v59, 5  ;;  %v9665_v51 = vcombine.low %v965_v14, %v975_v3  ;;  %v998_v30 = vrot.slane %v996_v16, 5 }
  0x53   : > { %v1016_v48 = vrot.slane %v12228_v42, 4  ;;  %v1012_v18 = vrot.slane %v1010_v29, 5  ;;  %v1020_v25 = vshll.u32 %v9654_v46, 16  ;;  %v993_v6 = vor.u32 %v992_v37, %v988_v43  ;;  %v9681_v37 = vld [vmem:[%s12104_s1 + $0x6] sm:$0x3] }
  0x54   : > { %v984_v31 = vrot.slane %v983_v1, 4  ;;  %v1007_v62 = vor.u32 %v1006_v20, %v1003_v36  ;;  %8118 = vmatmul.mubr.msk.bf16.gmra.mrb[20].mxu1 %vm433_vm1, %v9665_v51  ;;  %v1027_v41 = vrot.slane %v1025_v23, 4  ;;  %v1030_v60 = vrot.slane %v1028_v39, 5 }
  0x55   : > { %v1034_v14 = vshll.u32 %v9604_v57, 16  ;;  %v1017_v3 = vor.u32 %v1016_v48, %v1012_v18  ;;  %v1022_v36 = vrot.slane %v1020_v25, 5  ;;  %v994_v1 = vrot.slane %v993_v6, 4  ;;  %v9691_v48 = vld [vmem:[%s9226_s29 + $0xbc] sm:$0x1] }
  0x56   : > { %v989_v5 = vsel %vm9310_vm4, %v984_v31, %v988_v43  ;;  %v1008_v16 = vrot.slane %v1007_v62, 4  ;;  %v1031_v59 = vor.u32 %v1030_v60, %v1027_v41  ;;  %v1040_v29 = vrot.slane %v1038_v49, 4 }
  0x57   : > { %v1036_v20 = vrot.slane %v1034_v14, 5  ;;  %v1018_v39 = vrot.slane %v1017_v3, 4  ;;  %v1044_v62 = vshll.u32 %v9673_v61, 16  ;;  %v1051_v43 = vrot.slane %v1049_v2, 4 }
  0x58   : > { %v1013_v23 = vsel %vm9310_vm4, %v1008_v16, %v1012_v18  ;;  %7996 = vmatmul.mubr.msk.bf16.vlgmr.msra.gmra.mrb[0].mxu0 %vm433_vm1, %v9361_v55  ;;  %v999_v25 = vsel %vm9310_vm4, %v994_v1, %v998_v30  ;;  %v1032_v42 = vrot.slane %v1031_v59, 4  ;;  %v1054_v31 = vrot.slane %v1052_v38, 5 }
  0x59   : > { %v1041_v49 = vor.u32 %v1040_v29, %v1036_v20  ;;  %7999 = vmatprep.mubr.msk.bf16.mxu0 %vm433_vm1, %v9410_v34  ;;  %8028 = vmatpush3.bf16.msra.mxu0 %v9233_v9  ;;  %v9702_v55 = vcombine.low %v989_v5, %v999_v25  ;;  %v1023_v2 = vsel %vm9310_vm4, %v1018_v39, %v1022_v36  ;;  %v1046_v30 = vrot.slane %v1044_v62, 5 }
  0x5a   : > { %v1058_v6 = vshll.u32 %v9626_v44, 16  ;;  %9018 = vmatprep.subr.msk.bf16.mxu0 %vm482_vm0, %v9681_v37  ;;  %v9709_v34 = vcombine.low %v1013_v23, %v1023_v2  ;;  %v1037_v38 = vsel %vm9310_vm4, %v1032_v42, %v1036_v20  ;;  %v1055_v60 = vor.u32 %v1054_v31, %v1051_v43 }
  0x5b   : > { %v1042_v41 = vrot.slane %v1041_v49, 4  ;;  %8121 = vmatprep.mubr.msk.bf16.mxu1 %vm433_vm1, %v9702_v55  ;;  %v12231_v14 = vshrl.u32 %v9626_v44, 16  ;;  %v1068_v16 = vshll.u32 %v9691_v48, 16  ;;  %v12232_v3 = vrot.slane %v9239_v11, 5 }
  0x5c   : > { %v1060_v9 = vrot.slane %v1058_v6, 5  ;;  %v12233_v36 = vrot.slane %v9236_v10, 9  ;;  %8122 = vmatmul.mubr.msk.bf16.gmra.mrb[24].mxu1 %vm433_vm1, %v9709_v34  ;;  %v1056_v20 = vrot.slane %v1055_v60, 4  ;;  %v12234_v29 = vrot.slane %v9295_v40, 5 }
  0x5d   : > { %v1064_v5 = vrot.slane %v12231_v14, 4  ;;  %v1047_v59 = vsel %vm9310_vm4, %v1042_v41, %v1046_v30  ;;  %v12235_v11 = vrot.slane %v9250_v17, 5  ;;  %v12236_v10 = vrot.slane %v9242_v12, 9 }
  0x5e   : > { %v2751_v1 = vsel %vm9697_vm7, %v12233_v36, %v12232_v3  ;;  %v2754_v23 = vsel %vm9697_vm7, %v9270_v28, %v12234_v29  ;;  %v9741_v62 = vcombine.low %v1037_v38, %v1047_v59  ;;  %v1070_v25 = vrot.slane %v1068_v16, 5  ;;  %v12238_v59 = vld [vmem:[#allocation4_spill] sm:$0xff] }
  0x5f   : > { %v9739_v39 = vsel %vm9697_vm7, %v12236_v10, %v12235_v11  ;;  %v1065_v43 = vor.u32 %v1064_v5, %v1060_v9  ;;  %v7066_v42 = vcombine.low %v2751_v1, %v2754_v23  ;;  %v1061_v40 = vsel %vm9310_vm4, %v1056_v20, %v1060_v9  ;;  %v12240_v23 = vld [vmem:[#allocation12_spill] sm:$0xff] }
  0x60   : > { %v12237_v49 = vrot.slane %v9302_v47, 5  ;;  %v7051_v12 = vrot.slane %v9258_v22, 9  ;;  %v2764_v28 = vrot.slane %v9266_v27, 5  ;;  %8125 = vmatprep.mubr.msk.bf16.mxu1 %vm433_vm1, %v9741_v62  ;;  %8000 = vmatmul.mubr.msk.bf16.gmra.mrb[4].mxu0 %vm433_vm1, %v9434_v8  ;;  %v2767_v30 = vrot.slane %v9338_v21, 5 }
  0x61   : > { %v1066_v31 = vrot.slane %v1065_v43, 4  ;;  %v7052_v47 = vrot.slane %v9278_v32, 9  ;;  %8003 = vmatprep.mubr.msk.bf16.mxu0 %vm433_vm1, %v9476_v19  ;;  %v2774_v6 = vrot.slane %v9348_v45, 5  ;;  %v7053_v38 = vrot.slane %v9306_v52, 9 }
  0x62   : > { %v2761_v17 = vsel %vm9697_vm7, %v9282_v33, %v12237_v49  ;;  %v2765_v22 = vsel %vm9697_vm7, %v7051_v12, %v2764_v28  ;;  %v2766_v27 = vrot.slane %v2764_v28, 4  ;;  %v2771_v33 = vrot.slane %v9286_v35, 5  ;;  %v12246_v28 = vld [vmem:[#allocation15_spill] sm:$0xff] }
  0x63   : > { %v7067_v2 = vcombine.low %v9739_v39, %v2761_v17  ;;  %v1071_v8 = vsel %vm9310_vm4, %v1066_v31, %v1070_v25  ;;  %v2778_v21 = vrot.slane %v9316_v58, 5  ;;  %v2781_v32 = vrot.slane %v9402_v50, 5  ;;  %v12243_v25 = vld [vmem:[#allocation16_spill] sm:$0xff]  ;;  %v12245_v17 = vld [vmem:[#allocation6_spill] sm:$0xff] }
  0x64   : > { %v9770_v41 = vcombine.low %v1061_v40, %v1071_v8  ;;  %v2768_v19 = vsel %vm9697_vm7, %v2766_v27, %v2767_v30  ;;  %v2773_v60 = vrot.slane %v2771_v33, 4  ;;  %v3157_v35 = vsel %vm482_vm0, %v9375_v0, 0  ;;  %v12244_v40 = vld [vmem:[#allocation5_spill] sm:$0xff] }
  0x65   : > { %v9778_v45 = vsel %vm9697_vm7, %v7052_v47, %v2771_v33  ;;  %v2780_v9 = vrot.slane %v2778_v21, 4  ;;  %v7068_v52 = vcombine.low %v2765_v22, %v2768_v19  ;;  %v9788_v50 = vsel %vm9697_vm7, %v7053_v38, %v2778_v21  ;;  %v12247_v38 = vld [vmem:[#allocation7_spill] sm:$0xff]  ;;  %v12248_v19 = vld [vmem:[#allocation8_spill] sm:$0xff] }
  0x66   : > { %8126 = vmatmul.mubr.msk.bf16.gmra.mrb[28].mxu1 %vm433_vm1, %v9770_v41  ;;  %v9784_v58 = vsel %vm9697_vm7, %v2773_v60, %v2774_v6  ;;  %v7055_v14 = vrot.slane %v9356_v54, 9  ;;  %v2785_v5 = vrot.slane %v9326_v4, 5  ;;  %v2792_v16 = vrot.slane %v9359_v56, 5  ;;  %v12239_v54 = vld [vmem:[#allocation2_spill] sm:$0xff]  ;;  %v12241_v56 = vld [vmem:[#allocation3_spill] sm:$0xff] }
  0x67   : > { %8131 = vmatprep.mubr.msk.bf16.mxu1 %vm433_vm1, %v7066_v42  ;;  %v9794_v0 = vsel %vm9697_vm7, %v2780_v9, %v2781_v32  ;;  %v2795_v3 = vrot.slane %v9460_v26, 5  ;;  %v7069_v36 = vcombine.low %v9778_v45, %v9784_v58  ;;  %v7054_v1 = vrot.slane %v9320_v63, 9  ;;  %v12242_v26 = vld [vmem:[#allocation9_spill] sm:$0xff] }
  0x68   : > { %v2788_v20 = vrot.slane %v12238_v59, 5  ;;  %v7056_v29 = vrot.slane %v12239_v54, 9  ;;  %8004 = vmatmul.mubr.msk.bf16.gmra.mrb[8].mxu0 %vm433_vm1, %v12240_v23  ;;  %v9808_v11 = vsel %vm9697_vm7, %v7055_v14, %v2792_v16  ;;  %v2794_v10 = vrot.slane %v2792_v16, 4  ;;  %v12249_v9 = vld [vmem:[#allocation17_spill] sm:$0xff]  ;;  %v12250_v14 = vld [vmem:[#allocation10_spill] sm:$0xff] }
  0x69   : > { %v2799_v39 = vrot.slane %v12241_v56, 5  ;;  %v2802_v43 = vrot.slane %v12242_v26, 5  ;;  %8007 = vmatprep.mubr.msk.bf16.mxu0 %vm433_vm1, %v12243_v25  ;;  %v7070_v42 = vcombine.low %v9788_v50, %v9794_v0  ;;  %v7057_v49 = vrot.slane %v12244_v40, 9  ;;  %v9846_v16 = vld [vmem:[%s12104_s1 + $0xe] sm:$0x3] }
  0x6a   : > { %v2806_v12 = vrot.slane %v12245_v17, 5  ;;  %v2809_v31 = vrot.slane %v12246_v28, 5  ;;  %v2787_v30 = vrot.slane %v2785_v5, 4  ;;  %v9823_v47 = vsel %vm9697_vm7, %v2794_v10, %v2795_v3  ;;  %v12252_v10 = vld [vmem:[#allocation19_spill] sm:$0xff]  ;;  %v12254_v17 = vld [vmem:[#allocation14_spill] sm:$0xff] }
  0x6b   : > { %v9827_v22 = vsel %vm9697_vm7, %v7056_v29, %v2799_v39  ;;  %v2801_v27 = vrot.slane %v2799_v39, 4  ;;  %v7072_v33 = vcombine.low %v9808_v11, %v9823_v47  ;;  %v7058_v21 = vrot.slane %v12247_v38, 9  ;;  %v12251_v29 = vld [vmem:[#allocation11_spill] sm:$0xff]  ;;  %v12257_v38 = vld [vmem:[#allocation25_spill] sm:$0xff] }
  0x6c   : > { %v9833_v6 = vsel %vm9697_vm7, %v7057_v49, %v2806_v12  ;;  %v2808_v8 = vrot.slane %v2806_v12, 4  ;;  %v2813_v60 = vrot.slane %v12248_v19, 5  ;;  %v2816_v50 = vrot.slane %v12249_v9, 5  ;;  %v12258_v19 = vld [vmem:[#allocation21_spill] sm:$0xff] }
  0x6d   : > { %v9838_v32 = vsel %vm9697_vm7, %v2801_v27, %v2802_v43  ;;  %v7059_v0 = vrot.slane %v12250_v14, 9  ;;  %v2820_v23 = vrot.slane %v12251_v29, 5  ;;  %v2823_v56 = vrot.slane %v12252_v10, 5  ;;  %v12253_v43 = vld [vmem:[#allocation13_spill] sm:$0xff] }
  0x6e   : > { %8132 = vmatmul.mubr.msk.bf16.vlgmr.msra.gmra.mrb[0].mxu1 %vm433_vm1, %v7067_v2  ;;  %v7073_v3 = vcombine.low %v9827_v22, %v9838_v32  ;;  %v9853_v54 = vsel %vm9697_vm7, %v2808_v8, %v2809_v31  ;;  %v9862_v2 = vsel %vm9697_vm7, %v7058_v21, %v2813_v60  ;;  %v2815_v26 = vrot.slane %v2813_v60, 4  ;;  %v10029_v22 = vld [vmem:[%s9226_s29 + $0x34] sm:$0xf] }
  0x6f   : > { %8164 = vmatpush3.bf16.msra.mxu1 %v3157_v35  ;;  %8135 = vmatprep.mubr.msk.bf16.mxu1 %vm433_vm1, %v7068_v52  ;;  %v7074_v39 = vcombine.low %v9833_v6, %v9853_v54  ;;  %v7060_v25 = vrot.slane %v12253_v43, 9  ;;  %v9867_v40 = vsel %vm9697_vm7, %v7059_v0, %v2820_v23  ;;  %v2822_v49 = vrot.slane %v2820_v23, 4  ;;  %v12255_v35 = vld [vmem:[#allocation20_spill] sm:$0xff]  ;;  %v12256_v52 = vld [vmem:[#allocation18_spill] sm:$0xff]  ;;  %12271 = vst [vmem:[#allocation15_spill] sm:$0xff] %v10029_v22 }
  0x70   : > { %v2827_v12 = vrot.slane %v12254_v17, 5  ;;  %v2830_v28 = vrot.slane %v12255_v35, 5  ;;  %9022 = vmatprep.subr.msk.bf16.mxu1 %vm482_vm0, %v9846_v16  ;;  %8008 = vmatmul.mubr.msk.bf16.gmra.mrb[12].mxu0 %vm433_vm1, %v12256_v52  ;;  %v9877_v31 = vsel %vm9697_vm7, %v2815_v26, %v2816_v50  ;;  %v7061_v27 = vrot.slane %v9546_v24, 9  ;;  %v12260_v17 = vld [vmem:[#allocation23_spill] sm:$0xff] }
  0x71   : > { %v2834_v8 = vrot.slane %v9549_v13, 5  ;;  %v2837_v21 = vrot.slane %v12257_v38, 5  ;;  %8011 = vmatprep.mubr.msk.bf16.mxu0 %vm433_vm1, %v12258_v19  ;;  %v7075_v60 = vcombine.low %v9862_v2, %v9877_v31  ;;  %v9888_v9 = vsel %vm9697_vm7, %v2822_v49, %v2823_v56  ;;  %v9979_v38 = vld [vmem:[%s9226_s29 + $0x10] sm:$0xf]  ;;  %v9987_v19 = vld [vmem:[%s9226_s29 + $0x1c] sm:$0xf] }
  0x72   : > { %v9892_v50 = vsel %vm9697_vm7, %v7060_v25, %v2827_v12  ;;  %v2829_v14 = vrot.slane %v2827_v12, 4  ;;  %v7076_v24 = vcombine.low %v9867_v40, %v9888_v9  ;;  %v7062_v29 = vrot.slane %v9556_v15, 9  ;;  %v12262_v12 = vld [vmem:[#allocation26_spill] sm:$0xff]  ;;  %12264 = vst [vmem:[#allocation2_spill] sm:$0xff] %v9987_v19  ;;  %v10099_v40 = vld [vmem:[%s9226_s29 + $0x48] sm:$0xf] }
  0x73   : > { %v9898_v13 = vsel %vm9697_vm7, %v7061_v27, %v2834_v8  ;;  %v2836_v0 = vrot.slane %v2834_v8, 4  ;;  %v2841_v10 = vrot.slane %v9560_v7, 5  ;;  %v2844_v56 = vrot.slane %v9654_v46, 5  ;;  %v9976_v8 = vld [vmem:[%s9226_s29 + $0xc] sm:$0xf]  ;;  %12279 = vst [vmem:[#allocation14_spill] sm:$0xff] %v10099_v40 }
  0x74   : > { %v9903_v23 = vsel %vm9697_vm7, %v2829_v14, %v2830_v28  ;;  %v2786_v25 = vsel %vm9697_vm7, %v7054_v1, %v2785_v5  ;;  %v2789_v45 = vsel %vm9697_vm7, %v2787_v30, %v2788_v20  ;;  %v2851_v4 = vrot.slane %v9673_v61, 5  ;;  %v12261_v5 = vld [vmem:[#allocation24_spill] sm:$0xff]  ;;  %v9992_v14 = vld [vmem:[%s9226_s29 + $0x24] sm:$0xf]  ;;  %v10069_v27 = vld [vmem:[%s9226_s29 + $0x40] sm:$0xf] }
  0x75   : > { %v7077_v26 = vcombine.low %v9892_v50, %v9903_v23  ;;  %v9911_v43 = vsel %vm9697_vm7, %v2836_v0, %v2837_v21  ;;  %v9921_v7 = vsel %vm9697_vm7, %v7062_v29, %v2841_v10  ;;  %v2843_v46 = vrot.slane %v2841_v10, 4  ;;  %v9982_v21 = vld [vmem:[%s9226_s29 + $0x18] sm:$0xf]  ;;  %12265 = vst [vmem:[#allocation12_spill] sm:$0xff] %v9992_v14  ;;  %v9999_v29 = vld [vmem:[%s9226_s29 + $0x28] sm:$0xf] }
  0x76   : > { %8136 = vmatmul.mubr.msk.bf16.gmra.mrb[4].mxu1 %vm433_vm1, %v7069_v36  ;;  %v12259_v36 = vld [vmem:[#allocation22_spill] sm:$0xff]  ;;  %v7064_v1 = vrot.slane %v12261_v5, 9  ;;  %v2855_v59 = vrot.slane %v9626_v44, 5  ;;  %v2858_v20 = vrot.slane %v9691_v48, 5  ;;  %v7071_v30 = vcombine.low %v2786_v25, %v2789_v45  ;;  %12263 = vst [vmem:[#allocation4_spill] sm:$0xff] %v9982_v21  ;;  %12266 = vst [vmem:[#allocation3_spill] sm:$0xff] %v9999_v29 }
  0x77   : > { %8139 = vmatprep.mubr.msk.bf16.mxu1 %vm433_vm1, %v7070_v42  ;;  %v9936_v58 = vsel %vm9697_vm7, %v2843_v46, %v2844_v56  ;;  %v7063_v49 = vrot.slane %v12259_v36, 9  ;;  %v2848_v42 = vrot.slane %v9604_v57, 5  ;;  %v1693_v11 = vshrl.u32 %v9976_v8, 16  ;;  %v10022_v36 = vld [vmem:[%s9226_s29 + $0x30] sm:$0xf]  ;;  %12275 = vst [vmem:[#allocation10_spill] sm:$0xff] %v10069_v27 }
  0x78   : > { %8012 = vmatmul.mubr.msk.bf16.gmra.mrb[16].mxu0 %vm433_vm1, %v12260_v17  ;;  %v9956_v35 = vsel %vm9697_vm7, %v7064_v1, %v2855_v59  ;;  %v2857_v28 = vrot.slane %v2855_v59, 4  ;;  %v1696_v47 = vshll.u32 %v9976_v8, 16  ;;  %v1717_v0 = vshrl.u32 %v9982_v21, 16  ;;  %12270 = vst [vmem:[#allocation6_spill] sm:$0xff] %v10022_v36 }
  0x79   : > { %8015 = vmatprep.mubr.msk.bf16.mxu0 %vm433_vm1, %v12262_v12  ;;  %v9952_v57 = vsel %vm9697_vm7, %v7063_v49, %v2848_v42  ;;  %v2850_v61 = vrot.slane %v2848_v42, 4  ;;  %v1730_v10 = vshrl.u32 %v9987_v19, 16  ;;  %v1726_v56 = vshll.u32 %v9987_v19, 16 }
  0x7a   : > { %v9966_v52 = vsel %vm9697_vm7, %v2857_v28, %v2858_v20  ;;  %v10011_v46 = vcombine.low %v9976_v8, %v9979_v38  ;;  %v10015_v25 = vcombine.low %v9982_v21, %v9987_v19  ;;  %v10019_v45 = vcombine.low %v9992_v14, %v9999_v29 }
  0x7b   : > { %v9960_v44 = vsel %vm9697_vm7, %v2850_v61, %v2851_v4  ;;  %v1695_v32 = vrot.slane %v1693_v11, 4  ;;  %v1719_v42 = vrot.slane %v1717_v0, 4  ;;  %v10032_v4 = vld [vmem:[%s9226_s29 + $0x14] sm:$0x1]  ;;  %v10036_v1 = vrot.slane %v1726_v56, 5 }
  0x7c   : > { %12267 = vst [vmem:[#allocation9_spill] sm:$0xff] %v10011_v46  ;;  %12268 = vst [vmem:[#allocation16_spill] sm:$0xff] %v10015_v25  ;;  %v1732_v59 = vrot.slane %v1730_v10, 4  ;;  %v1741_v6 = vshrl.u32 %v9992_v14, 16  ;;  %v1744_v54 = vshll.u32 %v9992_v14, 16  ;;  %v1768_v20 = vshll.u32 %v10022_v36, 16 }
  0x7d   : > { %12269 = vst [vmem:[#allocation5_spill] sm:$0xff] %v10019_v45  ;;  %v1754_v12 = vshrl.u32 %v9999_v29, 16  ;;  %v1778_v61 = vshrl.u32 %v10029_v22, 16  ;;  %v1774_v28 = vshll.u32 %v10029_v22, 16  ;;  %v10055_v11 = vcombine.low %v10022_v36, %v10029_v22  ;;  %v10066_v56 = vld [vmem:[%s9226_s29 + $0x3c] sm:$0xf] }
  0x7e   : > { %8140 = vmatmul.mubr.msk.bf16.gmra.mrb[8].mxu1 %vm433_vm1, %v7071_v30  ;;  %v10045_v30 = vld [vmem:[%s9226_s29 + $0x20] sm:$0x1]  ;;  %v10060_v0 = vsel %vm482_vm0, %v9681_v37, 0  ;;  %v1733_v10 = vor.u32 %v1732_v59, %v10036_v1  ;;  %12274 = vst [vmem:[#allocation17_spill] sm:$0xff] %v10066_v56  ;;  %v1743_v48 = vrot.slane %v1741_v6, 4  ;;  %v1770_v63 = vrot.slane %v1768_v20, 5 }
  0x7f   : > { %8143 = vmatprep.mubr.msk.bf16.mxu1 %vm433_vm1, %v7072_v33  ;;  %v1706_v33 = vshrl.u32 %v9979_v38, 16  ;;  %12272 = vst [vmem:[#allocation7_spill] sm:$0xff] %v10045_v30  ;;  %12273 = vst [vmem:[#allocation8_spill] sm:$0xff] %v10055_v11  ;;  %v10076_v37 = vld [vmem:[%s9226_s29 + $0x2c] sm:$0x1]  ;;  %v1780_v59 = vrot.slane %v1778_v61, 4  ;;  %v10092_v31 = vcombine.low %v10066_v56, %v10069_v27 }
  0x80   : > { %8016 = vmatmul.mubr.msk.bf16.gmra.mrb[20].mxu0 %vm433_vm1, %v9665_v51  ;;  %v1720_v51 = vshll.u32 %v9982_v21, 16  ;;  %12276 = vst [vmem:[#allocation11_spill] sm:$0xff] %v10076_v37  ;;  %v10088_v2 = vsel %vm482_vm0, %v9846_v16, 0  ;;  %v1789_v61 = vshrl.u32 %v10066_v56, 16  ;;  %v1734_v9 = vrot.slane %v1733_v10, 4 }
  0x81   : > { %8019 = vmatprep.mubr.msk.bf16.mxu0 %vm433_vm1, %v9702_v55  ;;  %v1702_v55 = vshll.u32 %v9979_v38, 16  ;;  %v1708_v49 = vrot.slane %v1706_v33, 4  ;;  %v1712_v33 = vshll.u32 %v10032_v4, 16  ;;  %12277 = vst [vmem:[#allocation19_spill] sm:$0xff] %v10092_v31  ;;  %v1816_v10 = vshll.u32 %v10099_v40, 16 }
  0x82   : > { %v1722_v5 = vrot.slane %v1720_v51, 5  ;;  %v1798_v50 = vshll.u32 %v10069_v27, 16  ;;  %v10387_v14 = vld [vmem:[%s9226_s29 + $0x8c] sm:$0x1] }
  0x83   : > { %v10034_v17 = vrot.slane %v1702_v55, 5  ;;  %v1736_v55 = vshll.u32 %v10045_v30, 16  ;;  %12311 = vst [vmem:[#allocation46_spill] sm:$0xff] %v10387_v14 }
  0x84   : > { %v1723_v51 = vor.u32 %v1722_v5, %v1719_v42  ;;  %v1756_v42 = vrot.slane %v1754_v12, 4  ;;  %v10080_v5 = vrot.slane %v1774_v28, 5 }
  0x85   : > { %v1738_v12 = vrot.slane %v1736_v55, 5 }
  0x86   : > { %8144 = vmatmul.mubr.msk.bf16.gmra.mrb[12].mxu1 %vm433_vm1, %v7073_v3  ;;  %v1698_v3 = vrot.slane %v1696_v47, 5  ;;  %v1724_v20 = vrot.slane %v1723_v51, 4  ;;  %v1802_v51 = vshrl.u32 %v10069_v27, 16 }
  0x87   : > { %8147 = vmatprep.mubr.msk.bf16.mxu1 %vm433_vm1, %v7074_v39  ;;  %v1765_v39 = vshrl.u32 %v10022_v36, 16 }
  0x88   : > { %8020 = vmatmul.mubr.msk.bf16.gmra.mrb[24].mxu0 %vm433_vm1, %v9709_v34  ;;  %v1750_v34 = vshll.u32 %v9999_v29, 16  ;;  %v1699_v47 = vor.u32 %v1698_v3, %v1695_v32  ;;  %v1746_v32 = vrot.slane %v1744_v54, 5  ;;  %v1714_v54 = vrot.slane %v1712_v33, 5 }
  0x89   : > { %8023 = vmatprep.mubr.msk.bf16.mxu0 %vm433_vm1, %v9741_v62  ;;  %v1709_v62 = vor.u32 %v1708_v49, %v10034_v17  ;;  %v1767_v3 = vrot.slane %v1765_v39, 4  ;;  %v1952_v29 = vshll.u32 %v10387_v14, 16 }
  0x8a   : > { %v10078_v49 = vrot.slane %v1750_v34, 5  ;;  %v1700_v6 = vrot.slane %v1699_v47, 4  ;;  %v1747_v16 = vor.u32 %v1746_v32, %v1743_v48  ;;  %v1760_v34 = vshll.u32 %v10076_v37, 16 }
  0x8b   : > { %v1710_v39 = vrot.slane %v1709_v62, 4  ;;  %v1771_v28 = vor.u32 %v1770_v63, %v1767_v3  ;;  %v1792_v47 = vshll.u32 %v10066_v56, 16  ;;  %v1781_v62 = vor.u32 %v1780_v59, %v10080_v5 }
  0x8c   : > { %v1757_v33 = vor.u32 %v1756_v42, %v10078_v49  ;;  %v1705_v48 = vsel %vm9310_vm4, %v1700_v6, %v10034_v17  ;;  %v1813_v63 = vshrl.u32 %v10099_v40, 16  ;;  %v1729_v32 = vsel %vm9310_vm4, %v1724_v20, %v10036_v1  ;;  %v10130_v42 = vld [vmem:[%s9226_s29 + $0x54] sm:$0xf] }
  0x8d   : > { %v1715_v55 = vsel %vm9310_vm4, %v1710_v39, %v1714_v54  ;;  %v1739_v59 = vsel %vm9310_vm4, %v1734_v9, %v1738_v12  ;;  %v1748_v6 = vrot.slane %v1747_v16, 4  ;;  %v1762_v15 = vrot.slane %v1760_v34, 5  ;;  %v10135_v39 = vld [vmem:[%s9226_s29 + $0x58] sm:$0xf]  ;;  %v10146_v12 = vld [vmem:[%s9226_s29 + $0x60] sm:$0xf] }
  0x8e   : > { %8148 = vmatmul.mubr.msk.bf16.gmra.mrb[16].mxu1 %vm433_vm1, %v7075_v60  ;;  %v10095_v60 = vld [vmem:[%s9226_s29 + $0x38] sm:$0x1]  ;;  %v1772_v54 = vrot.slane %v1771_v28, 4  ;;  %v1758_v1 = vrot.slane %v1757_v33, 4  ;;  %v1782_v20 = vrot.slane %v1781_v62, 4  ;;  %v12282_v56 = vcombine.low %v9898_v13, %v9911_v43 }
  0x8f   : > { %8151 = vmatprep.mubr.msk.bf16.mxu1 %vm433_vm1, %v7076_v24  ;;  %12278 = vst [vmem:[#allocation13_spill] sm:$0xff] %v10095_v60  ;;  %v10104_v24 = vld [vmem:[%s9226_s29 + $0x4c] sm:$0xf]  ;;  %v10149_v9 = vld [vmem:[%s9226_s29 + $0x44] sm:$0x1]  ;;  %v1794_v16 = vrot.slane %v1792_v47, 5  ;;  %v10154_v28 = vcombine.low %v1729_v32, %v1739_v59  ;;  %v1753_v47 = vsel %vm9310_vm4, %v1748_v6, %v10078_v49 }
  0x90   : > { %8024 = vmatmul.mubr.msk.bf16.gmra.mrb[28].mxu0 %vm433_vm1, %v9770_v41  ;;  %12280 = vst [vmem:[#allocation20_spill] sm:$0xff] %v10104_v24  ;;  %v1784_v41 = vshll.u32 %v10095_v60, 16  ;;  %v10126_v3 = vcombine.low %v10099_v40, %v10104_v24  ;;  %v1826_v17 = vshrl.u32 %v10104_v24, 16  ;;  %v1791_v40 = vrot.slane %v1789_v61, 4  ;;  %12283 = vst [vmem:[#allocation25_spill] sm:$0xff] %v10149_v9 }
  0x91   : > { %8029 = vmatprep.mubr.msk.bf16.mxu0 %vm433_vm1, %v10011_v46  ;;  %v1815_v23 = vrot.slane %v1813_v63, 4  ;;  %v1818_v34 = vrot.slane %v1816_v10, 5  ;;  %12285 = vst [vmem:[#allocation22_spill] sm:$0xff] %v10154_v28  ;;  %v10158_v61 = vcombine.low %v10130_v42, %v10135_v39  ;;  %v10161_v13 = vld [vmem:[%s9226_s29 + $0x64] sm:$0xf]  ;;  %v1822_v43 = vshll.u32 %v10104_v24, 16 }
  0x92   : > { %12281 = vst [vmem:[#allocation18_spill] sm:$0xff] %v10126_v3  ;;  %v1786_v46 = vrot.slane %v1784_v41, 5  ;;  %v1837_v33 = vshrl.u32 %v10130_v42, 16  ;;  %v1840_v62 = vshll.u32 %v10130_v42, 16  ;;  %v1850_v41 = vshrl.u32 %v10135_v39, 16 }
  0x93   : > { %12286 = vst [vmem:[#allocation23_spill] sm:$0xff] %v10158_v61  ;;  %v1763_v63 = vsel %vm9310_vm4, %v1758_v1, %v1762_v15  ;;  %v1777_v49 = vsel %vm9310_vm4, %v1772_v54, %v10080_v5  ;;  %v1804_v10 = vrot.slane %v1802_v51, 4  ;;  %v1795_v59 = vor.u32 %v1794_v16, %v1791_v40  ;;  %v10206_v54 = vld [vmem:[%s9226_s29 + $0x70] sm:$0xf] }
  0x94   : > { %v1787_v32 = vsel %vm9310_vm4, %v1782_v20, %v1786_v46  ;;  %v10191_v6 = vrot.slane %v1798_v50, 5  ;;  %v10200_v15 = vcombine.low %v10146_v12, %v10161_v13  ;;  %v1828_v5 = vrot.slane %v1826_v17, 4 }
  0x95   : > { %v10208_v46 = vcombine.low %v1753_v47, %v1763_v63  ;;  %v1861_v40 = vshrl.u32 %v10146_v12, 16  ;;  %v1864_v1 = vshll.u32 %v10146_v12, 16  ;;  %v1874_v20 = vshrl.u32 %v10161_v13, 16 }
  0x96   : > { %8152 = vmatmul.mubr.msk.bf16.gmra.mrb[20].mxu1 %vm433_vm1, %v7077_v26  ;;  %v10152_v26 = vcombine.low %v1705_v48, %v1715_v55  ;;  %v10178_v48 = vld [vmem:[%s9226_s29 + $0x50] sm:$0x1]  ;;  %v1808_v55 = vshll.u32 %v10149_v9, 16  ;;  %12288 = vst [vmem:[#allocation26_spill] sm:$0xff] %v10200_v15  ;;  %v12290_v16 = vcombine.low %v9921_v7, %v9936_v58  ;;  %v10217_v17 = vcombine.low %v1777_v49, %v1787_v32 }
  0x97   : > { %8155 = vmatprep.mubr.msk.bf16.mxu1 %vm433_vm1, %v12282_v56  ;;  %v10167_v56 = vld [vmem:[%s12104_s1 + $0x10] sm:$0x3]  ;;  %12287 = vst [vmem:[#allocation24_spill] sm:$0xff] %v10178_v48  ;;  %v1832_v51 = vshll.u32 %v10178_v48, 16  ;;  %12289 = vst [vmem:[#allocation27_spill] sm:$0xff] %v10208_v46  ;;  %v10227_v47 = vrot.slane %v1795_v59, 4  ;;  %v1805_v7 = vor.u32 %v1804_v10, %v10191_v6  ;;  %v12295_v60 = vcombine.low %v9956_v35, %v9966_v52 }
  0x98   : > { %12284 = vst [vmem:[#allocation21_spill] sm:$0xff] %v10152_v26  ;;  %8030 = vmatmul.mubr.msk.bf16.vlgmr.msra.gmra.mrb[0].mxu0 %vm433_vm1, %v10015_v25  ;;  %v10194_v25 = vld [vmem:[%s9226_s29 + $0x6c] sm:$0xf]  ;;  %12291 = vst [vmem:[#allocation28_spill] sm:$0xff] %v10217_v17  ;;  %v10219_v50 = vrot.slane %v1808_v55, 5  ;;  %v1839_v10 = vrot.slane %v1837_v33, 4 }
  0x99   : > { %8033 = vmatprep.mubr.msk.bf16.mxu0 %vm433_vm1, %v10019_v45  ;;  %8062 = vmatpush3.bf16.msra.mxu0 %v10060_v0  ;;  %v1819_v45 = vor.u32 %v1818_v34, %v1815_v23  ;;  %v10202_v0 = vrot.slane %v1822_v43, 5  ;;  %v1846_v23 = vshll.u32 %v10135_v39, 16  ;;  %v1870_v34 = vshll.u32 %v10161_v13, 16  ;;  %v10254_v48 = vld [vmem:[%s9226_s29 + $0x68] sm:$0x1] }
  0x9a   : > { %9023 = vmatprep.subr.msk.bf16.mxu0 %vm482_vm0, %v10167_v56  ;;  %v12292_v43 = vcombine.low %v9952_v57, %v9960_v44  ;;  %v10234_v63 = vcombine.low %v10194_v25, %v10206_v54  ;;  %v10237_v55 = vrot.slane %v1832_v51, 5  ;;  %v1885_v32 = vshrl.u32 %v10194_v25, 16  ;;  %v10242_v44 = vld [vmem:[%s9226_s29 + $0x78] sm:$0xf] }
  0x9b   : > { %v10230_v58 = vrot.slane %v1819_v45, 4  ;;  %v1829_v49 = vor.u32 %v1828_v5, %v10202_v0  ;;  %v1888_v57 = vshll.u32 %v10194_v25, 16  ;;  %v10247_v45 = vld [vmem:[%s9226_s29 + $0x5c] sm:$0x1]  ;;  %v1842_v59 = vrot.slane %v1840_v62, 5 }
  0x9c   : > { %12293 = vst [vmem:[#allocation29_spill] sm:$0xff] %v10234_v63  ;;  %v10251_v5 = vrot.slane %v1846_v23, 5  ;;  %v1852_v51 = vrot.slane %v1850_v41, 4  ;;  %v10256_v24 = vrot.slane %v1870_v34, 5  ;;  %v1876_v9 = vrot.slane %v1874_v20, 4 }
  0x9d   : > { %v1801_v33 = vsel %vm9310_vm4, %v10227_v47, %v10191_v6  ;;  %v1898_v62 = vshrl.u32 %v10206_v54, 16  ;;  %v1825_v41 = vsel %vm9310_vm4, %v10230_v58, %v10202_v0  ;;  %v10269_v23 = vld [vmem:[%s9226_s29 + $0x7c] sm:$0xf]  ;;  %v1909_v20 = vshrl.u32 %v10242_v44, 16 }
  0x9e   : > { %8156 = vmatmul.mubr.msk.bf16.gmra.mrb[24].mxu1 %vm433_vm1, %v12290_v16  ;;  %v1863_v16 = vrot.slane %v1861_v40, 4  ;;  %v1894_v40 = vshll.u32 %v10206_v54, 16  ;;  %12294 = vst [vmem:[#allocation30_spill] sm:$0xff] %v10269_v23  ;;  %v1856_v34 = vshll.u32 %v10247_v45, 16  ;;  %v1843_v6 = vor.u32 %v1842_v59, %v1839_v10 }
  0x9f   : > { %8159 = vmatprep.mubr.msk.bf16.mxu1 %vm433_vm1, %v12292_v43  ;;  %v1866_v43 = vrot.slane %v1864_v1, 5  ;;  %v1830_v1 = vrot.slane %v1829_v49, 4  ;;  %v1853_v0 = vor.u32 %v1852_v51, %v10251_v5  ;;  %v1877_v58 = vor.u32 %v1876_v9, %v10256_v24 }
  0xa0   : > { %8034 = vmatmul.mubr.msk.bf16.gmra.mrb[4].mxu0 %vm433_vm1, %v10055_v11  ;;  %v1806_v11 = vrot.slane %v1805_v7, 4  ;;  %v1880_v7 = vshll.u32 %v10254_v48, 16  ;;  %v1887_v49 = vrot.slane %v1885_v32, 4  ;;  %v1890_v36 = vrot.slane %v1888_v57, 5  ;;  %v10298_v57 = vld [vmem:[%s9226_s29 + $0x84] sm:$0xf] }
  0xa1   : > { %8037 = vmatprep.mubr.msk.bf16.mxu0 %vm433_vm1, %v10092_v31  ;;  %v1912_v31 = vshll.u32 %v10242_v44, 16  ;;  %v1867_v47 = vor.u32 %v1866_v43, %v1863_v16  ;;  %v1922_v10 = vshrl.u32 %v10269_v23, 16  ;;  %v10284_v59 = vrot.slane %v1894_v40, 5  ;;  %12297 = vst [vmem:[#allocation32_spill] sm:$0xff] %v10298_v57  ;;  %v10301_v43 = vld [vmem:[%s9226_s29 + $0x74] sm:$0x1] }
  0xa2   : > { %v1900_v16 = vrot.slane %v1898_v62, 4  ;;  %v1918_v35 = vshll.u32 %v10269_v23, 16  ;;  %v1811_v52 = vsel %vm9310_vm4, %v1806_v11, %v10219_v50  ;;  %v10295_v9 = vcombine.low %v10242_v44, %v10269_v23  ;;  %v10306_v11 = vld [vmem:[%s9226_s29 + $0x88] sm:$0xf] }
  0xa3   : > { %v1858_v32 = vrot.slane %v1856_v34, 5  ;;  %v1844_v51 = vrot.slane %v1843_v6, 4  ;;  %v1868_v62 = vrot.slane %v1867_v47, 4  ;;  %12298 = vst [vmem:[#allocation33_spill] sm:$0xff] %v10306_v11  ;;  %v1911_v50 = vrot.slane %v1909_v20, 4 }
  0xa4   : > { %12296 = vst [vmem:[#allocation31_spill] sm:$0xff] %v10295_v9  ;;  %v1854_v40 = vrot.slane %v1853_v0, 4  ;;  %v1882_v34 = vrot.slane %v1880_v7, 5  ;;  %v1891_v27 = vor.u32 %v1890_v36, %v1887_v49  ;;  %v1901_v22 = vor.u32 %v1900_v16, %v10284_v59  ;;  %v10327_v7 = vld [vmem:[%s9226_s29 + $0x90] sm:$0xf] }
  0xa5   : > { %v1904_v37 = vshll.u32 %v10301_v43, 16  ;;  %v10315_v6 = vrot.slane %v1918_v35, 5  ;;  %v1924_v47 = vrot.slane %v1922_v10, 4  ;;  %v10317_v20 = vcombine.low %v1801_v33, %v1811_v52  ;;  %12303 = vst [vmem:[#allocation38_spill] sm:$0xff] %v10327_v7  ;;  %v10337_v49 = vld [vmem:[%s9226_s29 + $0x94] sm:$0xf] }
  0xa6   : > { %8160 = vmatmul.mubr.msk.bf16.gmra.mrb[28].mxu1 %vm433_vm1, %v12295_v60  ;;  %v1835_v60 = vsel %vm9310_vm4, %v1830_v1, %v10237_v55  ;;  %v1914_v55 = vrot.slane %v1912_v31, 5  ;;  %v1878_v1 = vrot.slane %v1877_v58, 4  ;;  %v10323_v0 = vcombine.low %v10298_v57, %v10306_v11  ;;  %12304 = vst [vmem:[#allocation39_spill] sm:$0xff] %v10337_v49  ;;  %v10342_v16 = vld [vmem:[%s12104_s1 + $0x18] sm:$0x3] }
  0xa7   : > { %8165 = vmatprep.mubr.msk.bf16.mxu1 %vm433_vm1, %v10152_v26  ;;  %12300 = vst [vmem:[#allocation35_spill] sm:$0xff] %v10317_v20  ;;  %v10319_v31 = vcombine.low %v1825_v41, %v1835_v60  ;;  %v1933_v36 = vshrl.u32 %v10298_v57, 16  ;;  %v1849_v58 = vsel %vm9310_vm4, %v1844_v51, %v10251_v5  ;;  %v1873_v33 = vsel %vm9310_vm4, %v1868_v62, %v10256_v24  ;;  %v10352_v60 = vld [vmem:[%s9226_s29 + $0x9c] sm:$0xf]  ;;  %v10355_v51 = vld [vmem:[%s9226_s29 + $0xa0] sm:$0xf] }
  0xa8   : > { %8038 = vmatmul.mubr.msk.bf16.gmra.mrb[8].mxu0 %vm433_vm1, %v10126_v3  ;;  %v10313_v3 = vld [vmem:[%s9226_s29 + $0x80] sm:$0x1]  ;;  %12302 = vst [vmem:[#allocation37_spill] sm:$0xff] %v10323_v0  ;;  %v1936_v41 = vshll.u32 %v10298_v57, 16  ;;  %v1915_v10 = vor.u32 %v1914_v55, %v1911_v50  ;;  %12305 = vst [vmem:[#allocation40_spill] sm:$0xff] %v10342_v16  ;;  %v1859_v5 = vsel %vm9310_vm4, %v1854_v40, %v1858_v32  ;;  %v1892_v24 = vrot.slane %v1891_v27, 4 }
  0xa9   : > { %8041 = vmatprep.mubr.msk.bf16.mxu0 %vm433_vm1, %v10158_v61  ;;  %12299 = vst [vmem:[#allocation34_spill] sm:$0xff] %v10313_v3  ;;  %12301 = vst [vmem:[#allocation36_spill] sm:$0xff] %v10319_v31  ;;  %v1883_v35 = vsel %vm9310_vm4, %v1878_v1, %v1882_v34  ;;  %v1928_v52 = vshll.u32 %v10313_v3, 16  ;;  %v1946_v62 = vshrl.u32 %v10306_v11, 16  ;;  %v1902_v32 = vrot.slane %v1901_v22, 4 }
  0xaa   : > { %12306 = vst [vmem:[#allocation41_spill] sm:$0xff] %v10352_v60  ;;  %12307 = vst [vmem:[#allocation42_spill] sm:$0xff] %v10355_v51  ;;  %v1906_v50 = vrot.slane %v1904_v37, 5  ;;  %v1925_v55 = vor.u32 %v1924_v47, %v10315_v6  ;;  %v10364_v27 = vcombine.low %v10327_v7, %v10337_v49  ;;  %v1957_v40 = vshrl.u32 %v10327_v7, 16  ;;  %v10384_v61 = vld [vmem:[%s9226_s29 + $0xa8] sm:$0xf] }
  0xab   : > { %v1970_v1 = vshrl.u32 %v10337_v49, 16  ;;  %v10373_v22 = vcombine.low %v1849_v58, %v1859_v5  ;;  %v10375_v37 = vcombine.low %v1873_v33, %v1883_v35  ;;  %v10377_v34 = vrot.slane %v1915_v10, 4  ;;  %12310 = vst [vmem:[#allocation45_spill] sm:$0xff] %v10384_v61  ;;  %v10399_v35 = vld [vmem:[%s9226_s29 + $0xac] sm:$0xf] }
  0xac   : > { %12308 = vst [vmem:[#allocation43_spill] sm:$0xff] %v10364_v27  ;;  %v10381_v47 = vcombine.low %v10352_v60, %v10355_v51  ;;  %v1897_v58 = vsel %vm9310_vm4, %v1892_v24, %v10284_v59  ;;  %v10394_v5 = vrot.slane %v1928_v52, 5  ;;  %v1981_v33 = vshrl.u32 %v10352_v60, 16  ;;  %12312 = vst [vmem:[#allocation47_spill] sm:$0xff] %v10399_v35  ;;  %v10472_v26 = vld [vmem:[%s9226_s29 + $0xb0] sm:$0x1] }
  0xad   : > { %12309 = vst [vmem:[#allocation44_spill] sm:$0xff] %v10373_v22  ;;  %v1984_v10 = vshll.u32 %v10352_v60, 16  ;;  %v1935_v30 = vrot.slane %v1933_v36, 4  ;;  %v1938_v21 = vrot.slane %v1936_v41, 5  ;;  %v1959_v59 = vrot.slane %v1957_v40, 4  ;;  %12315 = vst [vmem:[#allocation50_spill] sm:$0xff] %v10472_v26 }
  0xae   : > { %8166 = vmatmul.mubr.msk.bf16.vlgmr.msra.gmra.mrb[0].mxu1 %vm433_vm1, %v10154_v28  ;;  %v1994_v19 = vshrl.u32 %v10355_v51, 16  ;;  %v1966_v36 = vshll.u32 %v10337_v49, 16  ;;  %v2018_v40 = vshrl.u32 %v10399_v35, 16  ;;  %v10431_v28 = vld [vmem:[%s9226_s29 + $0xb4] sm:$0xf]  ;;  %v2014_v49 = vshll.u32 %v10399_v35, 16 }
  0xaf   : > { %8198 = vmatpush3.bf16.msra.mxu1 %v10088_v2  ;;  %8169 = vmatprep.mubr.msk.bf16.mxu1 %vm433_vm1, %v10208_v46  ;;  %v1960_v2 = vshll.u32 %v10327_v7, 16  ;;  %v1939_v52 = vor.u32 %v1938_v21, %v1935_v30  ;;  %v1948_v46 = vrot.slane %v1946_v62, 4  ;;  %v10442_v60 = vld [vmem:[%s9226_s29 + $0x98] sm:$0x1]  ;;  %v1972_v30 = vrot.slane %v1970_v1, 4 }
  0xb0   : > { %9027 = vmatprep.subr.msk.bf16.mxu1 %vm482_vm0, %v10342_v16  ;;  %8042 = vmatmul.mubr.msk.bf16.gmra.mrb[12].mxu0 %vm433_vm1, %v10200_v15  ;;  %v1907_v15 = vsel %vm9310_vm4, %v1902_v32, %v1906_v50  ;;  %v10403_v16 = vrot.slane %v1925_v55, 4  ;;  %v10414_v32 = vcombine.low %v10384_v61, %v10399_v35  ;;  %v2005_v50 = vshrl.u32 %v10384_v61, 16  ;;  %12313 = vst [vmem:[#allocation48_spill] sm:$0xff] %v10442_v60 }
  0xb1   : > { %8045 = vmatprep.mubr.msk.bf16.mxu0 %vm433_vm1, %v10234_v63  ;;  %v1942_v63 = vshll.u32 %v10306_v11, 16  ;;  %v1962_v24 = vrot.slane %v1960_v2, 5  ;;  %v10419_v41 = vcombine.low %v1897_v58, %v1907_v15  ;;  %v2008_v55 = vshll.u32 %v10384_v61, 16  ;;  %v10434_v15 = vld [vmem:[%s9226_s29 + $0xb8] sm:$0xf] }
  0xb2   : > { %v1990_v58 = vshll.u32 %v10355_v51, 16  ;;  %v10439_v61 = vrot.slane %v1952_v29, 5  ;;  %v10447_v21 = vrot.slane %v1966_v36, 5  ;;  %v1983_v62 = vrot.slane %v1981_v33, 4 }
  0xb3   : > { %v1986_v2 = vrot.slane %v1984_v10, 5  ;;  %v2029_v29 = vshrl.u32 %v10431_v28, 16  ;;  %v2038_v35 = vshll.u32 %v10434_v15, 16  ;;  %v10458_v36 = vrot.slane %v1939_v52, 4 }
  0xb4   : > { %v1976_v1 = vshll.u32 %v10442_v60, 16  ;;  %v10461_v33 = vrot.slane %v1990_v58, 5  ;;  %v1996_v10 = vrot.slane %v1994_v19, 4  ;;  %v2010_v51 = vrot.slane %v2008_v55, 5  ;;  %v10477_v19 = vld [vmem:[%s9226_s29 + $0xc4] sm:$0xf] }
  0xb5   : > { %v10466_v7 = vrot.slane %v2014_v49, 5  ;;  %v2020_v14 = vrot.slane %v2018_v40, 4  ;;  %v1973_v57 = vor.u32 %v1972_v30, %v10447_v21  ;;  %v1987_v3 = vor.u32 %v1986_v2, %v1983_v62  ;;  %v10487_v62 = vld [vmem:[%s9226_s29 + $0xbc] sm:$0x1] }
  0xb6   : > { %8170 = vmatmul.mubr.msk.bf16.gmra.mrb[4].mxu1 %vm433_vm1, %v10217_v17  ;;  %v10437_v17 = vrot.slane %v1942_v63, 5  ;;  %v2032_v63 = vshll.u32 %v10431_v28, 16  ;;  %v10479_v49 = vrot.slane %v2038_v35, 5  ;;  %v1997_v30 = vor.u32 %v1996_v10, %v10461_v33 }
  0xb7   : > { %8173 = vmatprep.mubr.msk.bf16.mxu1 %vm433_vm1, %v10317_v20  ;;  %v1963_v20 = vor.u32 %v1962_v24, %v1959_v59  ;;  %v2042_v59 = vshrl.u32 %v10434_v15, 16  ;;  %v10455_v24 = vld [vmem:[%s9226_s29 + $0xa4] sm:$0x1]  ;;  %v2024_v35 = vshll.u32 %v10472_v26, 16  ;;  %v1988_v10 = vrot.slane %v1987_v3, 4 }
  0xb8   : > { %8046 = vmatmul.mubr.msk.bf16.gmra.mrb[16].mxu0 %vm433_vm1, %v10295_v9  ;;  %12314 = vst [vmem:[#allocation49_spill] sm:$0xff] %v10455_v24  ;;  %v2007_v9 = vrot.slane %v2005_v50, 4  ;;  %v1949_v11 = vor.u32 %v1948_v46, %v10437_v17  ;;  %v2000_v52 = vshll.u32 %v10455_v24, 16  ;;  %v2031_v50 = vrot.slane %v2029_v29, 4 }
  0xb9   : > { %8049 = vmatprep.mubr.msk.bf16.mxu0 %vm433_vm1, %v10323_v0  ;;  %v10464_v0 = vld [vmem:[%s9226_s29 + $0xc0] sm:$0xf]  ;;  %v2034_v55 = vrot.slane %v2032_v63, 5  ;;  %v2044_v40 = vrot.slane %v2042_v59, 4  ;;  %v1964_v46 = vrot.slane %v1963_v20, 4  ;;  %v2021_v29 = vor.u32 %v2020_v14, %v10466_v7 }
  0xba   : > { %v2053_v2 = vshrl.u32 %v10464_v0, 16  ;;  %v2056_v58 = vshll.u32 %v10464_v0, 16  ;;  %v2011_v24 = vor.u32 %v2010_v51, %v2007_v9  ;;  %v1950_v63 = vrot.slane %v1949_v11, 4 }
  0xbb   : > { %v1974_v59 = vrot.slane %v1973_v57, 4  ;;  %v2066_v20 = vshrl.u32 %v10477_v19, 16  ;;  %v2035_v60 = vor.u32 %v2034_v55, %v2031_v50  ;;  %v2045_v9 = vor.u32 %v2044_v40, %v10479_v49 }
  0xbc   : > { %v2048_v14 = vshll.u32 %v10487_v62, 16  ;;  %v1998_v51 = vrot.slane %v1997_v30, 4  ;;  %v2058_v26 = vrot.slane %v2056_v58, 5  ;;  %v10501_v57 = vcombine.low %v10431_v28, %v10434_v15 }
  0xbd   : > { %v2012_v11 = vrot.slane %v2011_v24, 4  ;;  %v2026_v23 = vrot.slane %v2024_v35, 5  ;;  %v1945_v3 = vsel %vm9310_vm4, %v10458_v36, %v10437_v17  ;;  %v1955_v50 = vsel %vm9310_vm4, %v1950_v63, %v10439_v61 }
  0xbe   : > { %8174 = vmatmul.mubr.msk.bf16.gmra.mrb[8].mxu1 %vm433_vm1, %v10319_v31  ;;  %v1978_v31 = vrot.slane %v1976_v1, 5  ;;  %v2055_v1 = vrot.slane %v2053_v2, 4  ;;  %v1969_v55 = vsel %vm9310_vm4, %v1964_v46, %v10447_v21  ;;  %v10516_v2 = vld [vmem:[%s9226_s29 + $0xc8] sm:$0x1]  ;;  %v1993_v17 = vsel %vm9310_vm4, %v1988_v10, %v10461_v33 }
  0xbf   : > { %8177 = vmatprep.mubr.msk.bf16.mxu1 %vm433_vm1, %v10373_v22  ;;  %v2002_v22 = vrot.slane %v2000_v52, 5  ;;  %v2022_v52 = vrot.slane %v2021_v29, 4  ;;  %v2036_v24 = vrot.slane %v2035_v60, 4  ;;  %v2046_v36 = vrot.slane %v2045_v9, 4 }
  0xc0   : > { %8050 = vmatmul.mubr.msk.bf16.gmra.mrb[20].mxu0 %vm433_vm1, %v10364_v27  ;;  %v2062_v27 = vshll.u32 %v10477_v19, 16  ;;  %v1979_v40 = vsel %vm9310_vm4, %v1974_v59, %v1978_v31  ;;  %v2050_v58 = vrot.slane %v2048_v14, 5  ;;  %v2059_v21 = vor.u32 %v2058_v26, %v2055_v1 }
  0xc1   : > { %8053 = vmatprep.mubr.msk.bf16.mxu0 %vm433_vm1, %v10381_v47  ;;  %v2003_v61 = vsel %vm9310_vm4, %v1998_v51, %v2002_v22  ;;  %v2068_v46 = vrot.slane %v2066_v20, 4  ;;  %v2017_v30 = vsel %vm9310_vm4, %v2012_v11, %v10466_v7  ;;  %v2027_v33 = vsel %vm9310_vm4, %v2022_v52, %v2026_v23 }
  0xc2   : > { %v10527_v31 = vrot.slane %v2062_v27, 5  ;;  %v2072_v60 = vshll.u32 %v10516_v2, 16  ;;  %v12316_v29 = vsel %vm9310_vm4, %v10403_v16, %v10394_v5  ;;  %v12317_v26 = vsel %vm9310_vm4, %v10377_v34, %v10315_v6 }
  0xc3   : > { %v10545_v27 = vcombine.low %v12317_v26, %v12316_v29  ;;  %v10549_v7 = vcombine.low %v1945_v3, %v1955_v50  ;;  %v10551_v23 = vcombine.low %v1969_v55, %v1979_v40  ;;  %v10555_v22 = vcombine.low %v10464_v0, %v10477_v19  ;;  %v12321_v26 = vld [vmem:[#allocation32_spill] sm:$0xff] }
  0xc4   : > { %v10559_v16 = vcombine.low %v1993_v17, %v2003_v61  ;;  %v2041_v6 = vsel %vm9310_vm4, %v2036_v24, %v10479_v49  ;;  %v2051_v34 = vsel %vm9310_vm4, %v2046_v36, %v2050_v58  ;;  %v3370_v5 = vrot.slane %v9979_v38, 5  ;;  %v12338_v38 = vld [vmem:[#allocation35_spill] sm:$0xff] }
  0xc5   : > { %v10567_v35 = vcombine.low %v2017_v30, %v2027_v33  ;;  %v10569_v63 = vrot.slane %v2059_v21, 4  ;;  %v2069_v59 = vor.u32 %v2068_v46, %v10527_v31  ;;  %v7121_v20 = vrot.slane %v10130_v42, 9  ;;  %v12319_v46 = vld [vmem:[#allocation21_spill] sm:$0xff]  ;;  %v12320_v30 = vld [vmem:[#allocation34_spill] sm:$0xff] }
  0xc6   : > { %8178 = vmatmul.mubr.msk.bf16.gmra.mrb[12].mxu1 %vm433_vm1, %v10375_v37  ;;  %v10573_v10 = vrot.slane %v2072_v60, 5  ;;  %v7115_v9 = vrot.slane %v9976_v8, 9  ;;  %v3373_v14 = vrot.slane %v10032_v4, 5  ;;  %v3412_v49 = vrot.slane %v10135_v39, 5 }
  0xc7   : > { %8181 = vmatprep.mubr.msk.bf16.mxu1 %vm433_vm1, %v10419_v41  ;;  %v10578_v51 = vcombine.low %v2041_v6, %v2051_v34  ;;  %v3415_v1 = vrot.slane %v10247_v45, 5  ;;  %v7122_v11 = vrot.slane %v10146_v12, 9  ;;  %v3419_v52 = vrot.slane %v10161_v13, 5 }
  0xc8   : > { %8054 = vmatmul.mubr.msk.bf16.gmra.mrb[24].mxu0 %vm433_vm1, %v10414_v32  ;;  %v10587_v42 = vrot.slane %v3370_v5, 4  ;;  %v3938_v3 = vsel %vm482_vm0, %v10167_v56, 0  ;;  %v3413_v39 = vsel %vm9697_vm7, %v7121_v20, %v3412_v49  ;;  %v3414_v50 = vrot.slane %v3412_v49, 4  ;;  %v12323_v20 = vld [vmem:[#allocation46_spill] sm:$0xff] }
  0xc9   : > { %8057 = vmatprep.mubr.msk.bf16.mxu0 %vm433_vm1, %v10501_v57  ;;  %v10595_v12 = vrot.slane %v2069_v59, 4  ;;  %v3420_v13 = vsel %vm9697_vm7, %v7122_v11, %v3419_v52  ;;  %v3421_v45 = vrot.slane %v3419_v52, 4  ;;  %v3422_v55 = vrot.slane %v10254_v48, 5  ;;  %v12318_v48 = vld [vmem:[#allocation30_spill] sm:$0xff]  ;;  %v12325_v52 = vld [vmem:[#allocation39_spill] sm:$0xff] }
  0xca   : > { %v3416_v40 = vsel %vm9697_vm7, %v3414_v50, %v3415_v1  ;;  %v7123_v56 = vrot.slane %v10194_v25, 9  ;;  %v3426_v17 = vrot.slane %v10206_v54, 5  ;;  %v3429_v24 = vrot.slane %v10301_v43, 5  ;;  %v12324_v1 = vld [vmem:[#allocation38_spill] sm:$0xff] }
  0xcb   : > { %v10607_v36 = vcombine.low %v3413_v39, %v3416_v40  ;;  %v3423_v58 = vsel %vm9697_vm7, %v3421_v45, %v3422_v55  ;;  %v7124_v61 = vrot.slane %v10242_v44, 9  ;;  %v3433_v21 = vrot.slane %v12318_v48, 5  ;;  %v12322_v44 = vld [vmem:[#allocation33_spill] sm:$0xff] }
  0xcc   : > { %v10615_v25 = vcombine.low %v3420_v13, %v3423_v58  ;;  %v3427_v54 = vsel %vm9697_vm7, %v7123_v56, %v3426_v17  ;;  %v3428_v43 = vrot.slane %v3426_v17, 4  ;;  %v3436_v33 = vrot.slane %v12320_v30, 5  ;;  %v12327_v48 = vld [vmem:[#allocation41_spill] sm:$0xff] }
  0xcd   : > { %v3434_v60 = vsel %vm9697_vm7, %v7124_v61, %v3433_v21  ;;  %v3435_v29 = vrot.slane %v3433_v21, 4  ;;  %v7125_v6 = vrot.slane %v12321_v26, 9  ;;  %v3440_v34 = vrot.slane %v12322_v44, 5  ;;  %v12329_v30 = vld [vmem:[#allocation49_spill] sm:$0xff]  ;;  %v12331_v44 = vld [vmem:[#allocation47_spill] sm:$0xff] }
  0xce   : > { %8182 = vmatmul.mubr.msk.bf16.gmra.mrb[16].mxu1 %vm433_vm1, %v10545_v27  ;;  %v3430_v59 = vsel %vm9697_vm7, %v3428_v43, %v3429_v24  ;;  %v3443_v49 = vrot.slane %v12323_v20, 5  ;;  %v7126_v11 = vrot.slane %v12324_v1, 9  ;;  %v3447_v39 = vrot.slane %v12325_v52, 5  ;;  %v12326_v24 = vld [vmem:[#allocation48_spill] sm:$0xff]  ;;  %v12330_v26 = vld [vmem:[#allocation45_spill] sm:$0xff]  ;;  %v12332_v20 = vld [vmem:[#allocation22_spill] sm:$0xff] }
  0xcf   : > { %8185 = vmatprep.mubr.msk.bf16.mxu1 %vm433_vm1, %v10549_v7  ;;  %v10629_v50 = vcombine.low %v3427_v54, %v3430_v59  ;;  %v3437_v13 = vsel %vm9697_vm7, %v3435_v29, %v3436_v33  ;;  %v3441_v45 = vsel %vm9697_vm7, %v7125_v6, %v3440_v34  ;;  %v3442_v55 = vrot.slane %v3440_v34, 4  ;;  %v12328_v54 = vld [vmem:[#allocation42_spill] sm:$0xff]  ;;  %v10658_v59 = vld [vmem:[%s12104_s1 + $0x12] sm:$0x3] }
  0xd0   : > { %8058 = vmatmul.mubr.msk.bf16.gmra.mrb[28].mxu0 %vm433_vm1, %v10555_v22  ;;  %v10637_v40 = vcombine.low %v3434_v60, %v3437_v13  ;;  %v3448_v56 = vsel %vm9697_vm7, %v7126_v11, %v3447_v39  ;;  %v3449_v17 = vrot.slane %v3447_v39, 4  ;;  %v3450_v58 = vrot.slane %v12326_v24, 5  ;;  %v12333_v52 = vld [vmem:[#allocation50_spill] sm:$0xff]  ;;  %v12334_v13 = vld [vmem:[#allocation27_spill] sm:$0xff] }
  0xd1   : > { %8063 = vmatprep.mubr.msk.bf16.mxu0 %vm433_vm1, %v12319_v46  ;;  %v3444_v61 = vsel %vm9697_vm7, %v3442_v55, %v3443_v49  ;;  %v7127_v21 = vrot.slane %v12327_v48, 9  ;;  %v3454_v43 = vrot.slane %v12328_v54, 5  ;;  %v3457_v33 = vrot.slane %v12329_v30, 5 }
  0xd2   : > { %v10649_v60 = vcombine.low %v3441_v45, %v3444_v61  ;;  %v3451_v29 = vsel %vm9697_vm7, %v3449_v17, %v3450_v58  ;;  %v7128_v6 = vrot.slane %v12330_v26, 9  ;;  %v3461_v34 = vrot.slane %v12331_v44, 5 }
  0xd3   : > { %v10662_v49 = vcombine.low %v3448_v56, %v3451_v29  ;;  %v3455_v1 = vsel %vm9697_vm7, %v7127_v21, %v3454_v43  ;;  %v3456_v11 = vrot.slane %v3454_v43, 4  ;;  %v3464_v39 = vrot.slane %v12333_v52, 5 }
  0xd4   : > { %v3462_v45 = vsel %vm9697_vm7, %v7128_v6, %v3461_v34  ;;  %v3463_v55 = vrot.slane %v3461_v34, 4  ;;  %v7129_v17 = vrot.slane %v10431_v28, 9  ;;  %v3468_v24 = vrot.slane %v10434_v15, 5  ;;  %v12337_v34 = vld [vmem:[#allocation28_spill] sm:$0xff] }
  0xd5   : > { %v3458_v56 = vsel %vm9697_vm7, %v3456_v11, %v3457_v33  ;;  %v3471_v58 = vrot.slane %v10487_v62, 5  ;;  %v7130_v61 = vrot.slane %v10464_v0, 9  ;;  %v3475_v48 = vrot.slane %v10477_v19, 5  ;;  %v12340_v11 = vld [vmem:[#allocation7_spill] sm:$0xff] }
  0xd6   : > { %8186 = vmatmul.mubr.msk.bf16.gmra.mrb[20].mxu1 %vm433_vm1, %v10551_v23  ;;  %v3465_v21 = vsel %vm9697_vm7, %v3463_v55, %v3464_v39  ;;  %v3469_v28 = vsel %vm9697_vm7, %v7129_v17, %v3468_v24  ;;  %v3470_v15 = vrot.slane %v3468_v24, 4  ;;  %v3478_v19 = vrot.slane %v10516_v2, 5  ;;  %v12335_v2 = vld [vmem:[#allocation2_spill] sm:$0xff] }
  0xd7   : > { %8189 = vmatprep.mubr.msk.bf16.mxu1 %vm433_vm1, %v10559_v16  ;;  %v10686_v54 = vcombine.low %v3462_v45, %v3465_v21  ;;  %v3476_v62 = vsel %vm9697_vm7, %v7130_v61, %v3475_v48  ;;  %v3477_v0 = vrot.slane %v3475_v48, 4  ;;  %v2065_v43 = vsel %vm9310_vm4, %v10569_v63, %v10527_v31  ;;  %v12342_v45 = vld [vmem:[#allocation11_spill] sm:$0xff]  ;;  %v12344_v21 = vld [vmem:[#allocation10_spill] sm:$0xff] }
  0xd8   : > { %8064 = vmatmul.mubr.msk.bf16.vlgmr.msra.gmra.mrb[0].mxu0 %vm433_vm1, %v12332_v20  ;;  %v3472_v30 = vsel %vm9697_vm7, %v3470_v15, %v3471_v58  ;;  %v2075_v33 = vsel %vm9310_vm4, %v10595_v12, %v10573_v10  ;;  %v3377_v29 = vrot.slane %v12335_v2, 5  ;;  %v3371_v31 = vsel %vm9697_vm7, %v7115_v9, %v3370_v5  ;;  %v12336_v10 = vld [vmem:[#allocation3_spill] sm:$0xff]  ;;  %v12339_v5 = vld [vmem:[#allocation4_spill] sm:$0xff]  ;;  %v12348_v2 = vld [vmem:[#allocation13_spill] sm:$0xff] }
  0xd9   : > { %8067 = vmatprep.mubr.msk.bf16.mxu0 %vm433_vm1, %v12334_v13  ;;  %8232 = vmatpush3.bf16.msra.mxu0 %v3938_v3  ;;  %v10680_v3 = vcombine.low %v3455_v1, %v3458_v56  ;;  %v10706_v26 = vcombine.low %v3469_v28, %v3472_v30  ;;  %v3479_v6 = vsel %vm9697_vm7, %v3477_v0, %v3478_v19  ;;  %v3384_v12 = vrot.slane %v12336_v10, 5  ;;  %v12343_v56 = vld [vmem:[#allocation15_spill] sm:$0xff]  ;;  %v12345_v15 = vld [vmem:[#allocation36_spill] sm:$0xff] }
  0xda   : > { %9024 = vmatprep.subr.msk.bf16.mxu0 %vm482_vm0, %v10658_v59  ;;  %v3374_v63 = vsel %vm9697_vm7, %v10587_v42, %v3373_v14  ;;  %v10722_v44 = vcombine.low %v3476_v62, %v3479_v6  ;;  %v10726_v1 = vcombine.low %v2065_v43, %v2075_v33  ;;  %v7116_v4 = vrot.slane %v12339_v5, 9  ;;  %v12341_v14 = vld [vmem:[#allocation12_spill] sm:$0xff]  ;;  %v12347_v43 = vld [vmem:[#allocation6_spill] sm:$0xff]  ;;  %v12351_v5 = vld [vmem:[#allocation25_spill] sm:$0xff] }
  0xdb   : > { %v10730_v8 = vcombine.low %v3371_v31, %v3374_v63  ;;  %v3379_v9 = vrot.slane %v3377_v29, 4  ;;  %v3380_v52 = vrot.slane %v12340_v11, 5  ;;  %v7117_v42 = vrot.slane %v12341_v14, 9  ;;  %v12346_v0 = vld [vmem:[#allocation44_spill] sm:$0xff]  ;;  %v12350_v63 = vld [vmem:[#allocation17_spill] sm:$0xff] }
  0xdc   : > { %v3386_v39 = vrot.slane %v3384_v12, 4  ;;  %v3387_v55 = vrot.slane %v12342_v45, 5  ;;  %v3378_v17 = vsel %vm9697_vm7, %v7116_v4, %v3377_v29  ;;  %v3391_v58 = vrot.slane %v12343_v56, 5  ;;  %v12349_v6 = vld [vmem:[#allocation40_spill] sm:$0xff] }
  0xdd   : > { %v3381_v24 = vsel %vm9697_vm7, %v3379_v9, %v3380_v52  ;;  %v3385_v61 = vsel %vm9697_vm7, %v7117_v42, %v3384_v12  ;;  %v3398_v28 = vrot.slane %v12344_v21, 5  ;;  %v7118_v30 = vrot.slane %v12347_v43, 9  ;;  %v7409_v9 = vld [vmem:[%s12104_s1 + $0x1a] sm:$0x3]  ;;  %v12352_v14 = vld [vmem:[#allocation20_spill] sm:$0xff] }
  0xde   : > { %8190 = vmatmul.mubr.msk.bf16.gmra.mrb[24].mxu1 %vm433_vm1, %v10567_v35  ;;  %v3388_v48 = vsel %vm9697_vm7, %v3386_v39, %v3387_v55  ;;  %v10752_v62 = vcombine.low %v3378_v17, %v3381_v24  ;;  %v3393_v33 = vrot.slane %v3391_v58, 4  ;;  %v3394_v29 = vrot.slane %v12348_v2, 5  ;;  %v12353_v24 = vld [vmem:[#allocation14_spill] sm:$0xff]  ;;  %v7262_v2 = vld [vmem:[%s12104_s1 + $0x14] sm:$0x3] }
  0xdf   : > { %8193 = vmatprep.mubr.msk.bf16.mxu1 %vm433_vm1, %v10578_v51  ;;  %v10756_v19 = vcombine.low %v3385_v61, %v3388_v48  ;;  %v5499_v31 = vsel %vm482_vm0, %v12349_v6, 0  ;;  %v7119_v10 = vrot.slane %v12350_v63, 9  ;;  %v3400_v12 = vrot.slane %v3398_v28, 4  ;;  %v12354_v61 = vld [vmem:[#allocation24_spill] sm:$0xff]  ;;  %v12357_v6 = vld [vmem:[#allocation5_spill] sm:$0xff]  ;;  %v12360_v63 = vld [vmem:[#allocation18_spill] sm:$0xff] }
  0xe0   : > { %8068 = vmatmul.mubr.msk.bf16.gmra.mrb[4].mxu0 %vm433_vm1, %v12337_v34  ;;  %v3401_v4 = vrot.slane %v12351_v5, 5  ;;  %v3392_v11 = vsel %vm9697_vm7, %v7118_v30, %v3391_v58  ;;  %v3395_v52 = vsel %vm9697_vm7, %v3393_v33, %v3394_v29  ;;  %v3405_v42 = vrot.slane %v12352_v14, 5  ;;  %v12355_v30 = vld [vmem:[#allocation9_spill] sm:$0xff]  ;;  %v12356_v29 = vld [vmem:[#allocation16_spill] sm:$0xff]  ;;  %v12366_v14 = vld [vmem:[#allocation43_spill] sm:$0xff] }
  0xe1   : > { %8071 = vmatprep.mubr.msk.bf16.mxu0 %vm433_vm1, %v12338_v38  ;;  %v3399_v39 = vsel %vm9697_vm7, %v7119_v10, %v3398_v28  ;;  %v10783_v55 = vcombine.low %v3392_v11, %v3395_v52  ;;  %v7120_v56 = vrot.slane %v12353_v24, 9  ;;  %v3408_v48 = vrot.slane %v12354_v61, 5  ;;  %v12361_v10 = vld [vmem:[#allocation23_spill] sm:$0xff]  ;;  %v7426_v5 = vld [vmem:[%s12104_s1 + $0x1c] sm:$0x3] }
  0xe2   : > { %v3402_v45 = vsel %vm9697_vm7, %v3400_v12, %v3401_v4  ;;  %v3407_v58 = vrot.slane %v3405_v42, 4  ;;  %v4136_v33 = vsel %vm482_vm0, %v10658_v59, 0  ;;  %v12358_v59 = vld [vmem:[#allocation8_spill] sm:$0xff]  ;;  %v5697_v12 = vsel %vm482_vm0, %v7409_v9, 0  ;;  %v12362_v4 = vld [vmem:[#allocation26_spill] sm:$0xff]  ;;  %v12363_v11 = vld [vmem:[#allocation29_spill] sm:$0xff] }
  0xe3   : > { %v10787_v17 = vcombine.low %v3399_v39, %v3402_v45  ;;  %v3406_v21 = vsel %vm9697_vm7, %v7120_v56, %v3405_v42  ;;  %v12365_v52 = vld [vmem:[#allocation37_spill] sm:$0xff]  ;;  %v10987_v45 = vld [vmem:[%s9226_s29 + $0x30] sm:$0xf] }
  0xe4   : > { %v3409_v28 = vsel %vm9697_vm7, %v3407_v58, %v3408_v48 }
  0xe5   : > { %v10801_v43 = vcombine.low %v3406_v21, %v3409_v28  ;;  %v4706_v21 = vshrl.u32 %v10987_v45, 16  ;;  %v4709_v28 = vshll.u32 %v10987_v45, 16 }
  0xe6   : > { %8194 = vmatmul.mubr.msk.bf16.gmra.mrb[28].mxu1 %vm433_vm1, %v10726_v1 }
  0xe7   : > { %8199 = vmatprep.mubr.msk.bf16.mxu1 %vm433_vm1, %v10730_v8 }
  0xe8   : > { %8072 = vmatmul.mubr.msk.bf16.gmra.mrb[8].mxu0 %vm433_vm1, %v12345_v15 }
  0xe9   : > { %8075 = vmatprep.mubr.msk.bf16.mxu0 %vm433_vm1, %v12346_v0 }
  0xee   : > { %8200 = vmatmul.mubr.msk.bf16.vlgmr.msra.gmra.mrb[0].mxu1 %vm433_vm1, %v10752_v62 }
  0xef   : > { %8368 = vmatpush3.bf16.msra.mxu1 %v5499_v31  ;;  %8203 = vmatprep.mubr.msk.bf16.mxu1 %vm433_vm1, %v10756_v19  ;;  %v12359_v31 = vld [vmem:[#allocation19_spill] sm:$0xff] }
  0xf0   : > { %9028 = vmatprep.subr.msk.bf16.mxu1 %vm482_vm0, %v7409_v9  ;;  %8076 = vmatmul.mubr.msk.bf16.gmra.mrb[12].mxu0 %vm433_vm1, %v10375_v37  ;;  %v12364_v9 = vld [vmem:[#allocation31_spill] sm:$0xff] }
  0xf1   : > { %8079 = vmatprep.mubr.msk.bf16.mxu0 %vm433_vm1, %v10419_v41 }
  0xf6   : > { %8204 = vmatmul.mubr.msk.bf16.gmra.mrb[4].mxu1 %vm433_vm1, %v10783_v55 }
  0xf7   : > { %8207 = vmatprep.mubr.msk.bf16.mxu1 %vm433_vm1, %v10787_v17 }
  0xf8   : > { %8080 = vmatmul.mubr.msk.bf16.gmra.mrb[16].mxu0 %vm433_vm1, %v10545_v27 }
  0xf9   : > { %8083 = vmatprep.mubr.msk.bf16.mxu0 %vm433_vm1, %v10549_v7 }
  0xfe   : > { %8208 = vmatmul.mubr.msk.bf16.gmra.mrb[8].mxu1 %vm433_vm1, %v10801_v43 }
  0xff   : > { %8211 = vmatprep.mubr.msk.bf16.mxu1 %vm433_vm1, %v10607_v36 }
 0x100   : > { %8084 = vmatmul.mubr.msk.bf16.gmra.mrb[20].mxu0 %vm433_vm1, %v10551_v23 }
 0x101   : > { %8087 = vmatprep.mubr.msk.bf16.mxu0 %vm433_vm1, %v10559_v16 }
 0x106   : > { %8212 = vmatmul.mubr.msk.bf16.gmra.mrb[12].mxu1 %vm433_vm1, %v10615_v25 }
 0x107   : > { %8215 = vmatprep.mubr.msk.bf16.mxu1 %vm433_vm1, %v10629_v50 }
 0x108   : > { %8088 = vmatmul.mubr.msk.bf16.gmra.mrb[24].mxu0 %vm433_vm1, %v10567_v35 }
 0x109   : > { %8091 = vmatprep.mubr.msk.bf16.mxu0 %vm433_vm1, %v10578_v51 }
 0x10e   : > { %8216 = vmatmul.mubr.msk.bf16.gmra.mrb[16].mxu1 %vm433_vm1, %v10637_v40 }
 0x10f   : > { %8219 = vmatprep.mubr.msk.bf16.mxu1 %vm433_vm1, %v10649_v60 }
 0x110   : > { %8092 = vmatmul.mubr.msk.bf16.gmra.mrb[28].mxu0 %vm433_vm1, %v10726_v1 }
 0x111   : > { %8233 = vmatprep.mubr.msk.bf16.mxu0 %vm433_vm1, %v12355_v30  ;;  %v6825_v30 = vld [vmem:[%s9226_s29 + $0x2c] sm:$0x1] }
 0x116   : > { %8220 = vmatmul.mubr.msk.bf16.gmra.mrb[20].mxu1 %vm433_vm1, %v10662_v49 }
 0x117   : > { %8223 = vmatprep.mubr.msk.bf16.mxu1 %vm433_vm1, %v10680_v3 }
 0x118   : > { %8234 = vmatmul.mubr.msk.bf16.vlgmr.msra.gmra.mrb[32].mxu0 %vm433_vm1, %v12356_v29 }
 0x119   : > { %8237 = vmatprep.mubr.msk.bf16.mxu0 %vm433_vm1, %v12357_v6  ;;  %8266 = vmatpush3.bf16.msra.mxu0 %v4136_v33 }
 0x11a   : > { %9025 = vmatprep.subr.msk.bf16.mxu0 %vm482_vm0, %v7262_v2 }
 0x11e   : > { %8224 = vmatmul.mubr.msk.bf16.gmra.mrb[24].mxu1 %vm433_vm1, %v10686_v54 }
 0x11f   : > { %8227 = vmatprep.mubr.msk.bf16.mxu1 %vm433_vm1, %v10706_v26 }
 0x120   : > { %8238 = vmatmul.mubr.msk.bf16.gmra.mrb[36].mxu0 %vm433_vm1, %v12358_v59 }
 0x121   : > { %8241 = vmatprep.mubr.msk.bf16.mxu0 %vm433_vm1, %v12359_v31 }
 0x126   : > { %8228 = vmatmul.mubr.msk.bf16.gmra.mrb[28].mxu1 %vm433_vm1, %v10722_v44 }
 0x127   : > { %8369 = vmatprep.mubr.msk.bf16.mxu1 %vm433_vm1, %v12319_v46 }
 0x128   : > { %8242 = vmatmul.mubr.msk.bf16.gmra.mrb[40].mxu0 %vm433_vm1, %v12360_v63 }
 0x129   : > { %8245 = vmatprep.mubr.msk.bf16.mxu0 %vm433_vm1, %v12361_v10  ;;  %v4701_v10 = vshll.u32 %v6825_v30, 16 }
 0x12e   : > { %8370 = vmatmul.mubr.msk.bf16.vlgmr.msra.gmra.mrb[32].mxu1 %vm433_vm1, %v12332_v20 }
 0x12f   : > { %8402 = vmatpush3.bf16.msra.mxu1 %v5697_v12  ;;  %8373 = vmatprep.mubr.msk.bf16.mxu1 %vm433_vm1, %v12334_v13  ;;  %v4708_v12 = vrot.slane %v4706_v21, 4  ;;  %v11070_v21 = vld [vmem:[%s9226_s29 + $0x58] sm:$0xf] }
 0x130   : > { %9029 = vmatprep.subr.msk.bf16.mxu1 %vm482_vm0, %v7426_v5  ;;  %8246 = vmatmul.mubr.msk.bf16.gmra.mrb[44].mxu0 %vm433_vm1, %v12362_v4 }
 0x131   : > { %8249 = vmatprep.mubr.msk.bf16.mxu0 %vm433_vm1, %v12363_v11 }
 0x136   : > { %8374 = vmatmul.mubr.msk.bf16.gmra.mrb[36].mxu1 %vm433_vm1, %v12337_v34 }
 0x137   : > { %8377 = vmatprep.mubr.msk.bf16.mxu1 %vm433_vm1, %v12338_v38 }
 0x138   : > { %8250 = vmatmul.mubr.msk.bf16.gmra.mrb[48].mxu0 %vm433_vm1, %v12364_v9 }
 0x139   : > { %8253 = vmatprep.mubr.msk.bf16.mxu0 %vm433_vm1, %v12365_v52 }
 0x13e   : > { %8378 = vmatmul.mubr.msk.bf16.gmra.mrb[40].mxu1 %vm433_vm1, %v12345_v15 }
 0x13f   : > { %8381 = vmatprep.mubr.msk.bf16.mxu1 %vm433_vm1, %v12346_v0 }
 0x140   : > { %8254 = vmatmul.mubr.msk.bf16.gmra.mrb[52].mxu0 %vm433_vm1, %v12366_v14  ;;  %v11024_v14 = vld [vmem:[%s9226_s29 + $0x48] sm:$0xf] }
 0x141   : > { %8257 = vmatprep.mubr.msk.bf16.mxu0 %vm433_vm1, %v10381_v47  ;;  %v4462_v47 = vsel %vm482_vm0, %v7262_v2, 0  ;;  %v11006_v2 = vld [vmem:[%s9226_s29 + $0x3c] sm:$0xf] }
 0x142   : > { %v4730_v4 = vshrl.u32 %v11006_v2, 16 }
 0x146   : > { %8382 = vmatmul.mubr.msk.bf16.gmra.mrb[44].mxu1 %vm433_vm1, %v10375_v37 }
 0x147   : > { %8385 = vmatprep.mubr.msk.bf16.mxu1 %vm433_vm1, %v10419_v41 }
 0x148   : > { %8258 = vmatmul.mubr.msk.bf16.gmra.mrb[56].mxu0 %vm433_vm1, %v10414_v32  ;;  %v10912_v32 = vld [vmem:[%s12104_s1 + $0x16] sm:$0x3] }
 0x149   : > { %8261 = vmatprep.mubr.msk.bf16.mxu0 %vm433_vm1, %v10501_v57  ;;  %v5895_v57 = vsel %vm482_vm0, %v7426_v5, 0  ;;  %v4711_v5 = vrot.slane %v4709_v28, 5 }
 0x14e   : > { %8386 = vmatmul.mubr.msk.bf16.gmra.mrb[48].mxu1 %vm433_vm1, %v10545_v27 }
 0x14f   : > { %8389 = vmatprep.mubr.msk.bf16.mxu1 %vm433_vm1, %v10549_v7 }
 0x150   : > { %8262 = vmatmul.mubr.msk.bf16.gmra.mrb[60].mxu0 %vm433_vm1, %v10555_v22  ;;  %v10940_v22 = vld [vmem:[%s12104_s1 + $0x1e] sm:$0x3] }
 0x151   : > { %8267 = vmatprep.mubr.msk.bf16.mxu0 %vm433_vm1, %v12319_v46  ;;  %v10957_v46 = vld [vmem:[%s9226_s29 + $0x18] sm:$0xf] }
 0x156   : > { %8390 = vmatmul.mubr.msk.bf16.gmra.mrb[52].mxu1 %vm433_vm1, %v10551_v23 }
 0x157   : > { %8393 = vmatprep.mubr.msk.bf16.mxu1 %vm433_vm1, %v10559_v16 }
 0x158   : > { %8268 = vmatmul.mubr.msk.bf16.vlgmr.msra.gmra.mrb[32].mxu0 %vm433_vm1, %v12332_v20  ;;  %v10960_v20 = vld [vmem:[%s9226_s29 + $0x1c] sm:$0xf] }
 0x159   : > { %8271 = vmatprep.mubr.msk.bf16.mxu0 %vm433_vm1, %v12334_v13  ;;  %8300 = vmatpush3.bf16.msra.mxu0 %v4462_v47  ;;  %v10965_v13 = vld [vmem:[%s9226_s29 + $0x24] sm:$0xf] }
 0x15a   : > { %9026 = vmatprep.subr.msk.bf16.mxu0 %vm482_vm0, %v10912_v32 }
 0x15e   : > { %8394 = vmatmul.mubr.msk.bf16.gmra.mrb[56].mxu1 %vm433_vm1, %v10567_v35 }
 0x15f   : > { %8397 = vmatprep.mubr.msk.bf16.mxu1 %vm433_vm1, %v10578_v51 }
 0x160   : > { %8272 = vmatmul.mubr.msk.bf16.gmra.mrb[36].mxu0 %vm433_vm1, %v12337_v34  ;;  %v4671_v34 = vshrl.u32 %v10960_v20, 16 }
 0x161   : > { %8275 = vmatprep.mubr.msk.bf16.mxu0 %vm433_vm1, %v12338_v38  ;;  %v10973_v38 = vld [vmem:[%s9226_s29 + $0x28] sm:$0xf] }
 0x162   : > { %v4673_v39 = vrot.slane %v4671_v34, 4 }
 0x166   : > { %8398 = vmatmul.mubr.msk.bf16.gmra.mrb[60].mxu1 %vm433_vm1, %v10726_v1 }
 0x167   : > { %8403 = vmatprep.mubr.msk.bf16.mxu1 %vm433_vm1, %v10730_v8  ;;  %v4667_v8 = vshll.u32 %v10960_v20, 16 }
 0x168   : > { %8276 = vmatmul.mubr.msk.bf16.gmra.mrb[40].mxu0 %vm433_vm1, %v12345_v15  ;;  %v4685_v15 = vshll.u32 %v10965_v13, 16 }
 0x169   : > { %8279 = vmatprep.mubr.msk.bf16.mxu0 %vm433_vm1, %v12346_v0  ;;  %v10982_v42 = vrot.slane %v4667_v8, 5 }
 0x16a   : > { %v4687_v56 = vrot.slane %v4685_v15, 5  ;;  %v4712_v15 = vor.u32 %v4711_v5, %v4708_v12 }
 0x16b   : > { %v4674_v61 = vor.u32 %v4673_v39, %v10982_v42 }
 0x16c   : > { %v4713_v28 = vrot.slane %v4712_v15, 4 }
 0x16d   : > { %v4675_v6 = vrot.slane %v4674_v61, 4  ;;  %v5140_v61 = vsel %vm482_vm0, %v10912_v32, 0 }
 0x16e   : > { %8404 = vmatmul.mubr.msk.bf16.vlgmr.msra.gmra.mrb[32].mxu1 %vm433_vm1, %v10752_v62  ;;  %v4695_v62 = vshrl.u32 %v10973_v38, 16 }
 0x16f   : > { %8436 = vmatpush3.bf16.msra.mxu1 %v5895_v57  ;;  %8407 = vmatprep.mubr.msk.bf16.mxu1 %vm433_vm1, %v10756_v19  ;;  %v7263_v57 = vcombine.low %v10957_v46, %v10960_v20 }
 0x170   : > { %9030 = vmatprep.subr.msk.bf16.mxu1 %vm482_vm0, %v10940_v22  ;;  %8280 = vmatmul.mubr.msk.bf16.gmra.mrb[44].mxu0 %vm433_vm1, %v10375_v37  ;;  %v4658_v37 = vshrl.u32 %v10957_v46, 16  ;;  %v4697_v48 = vrot.slane %v4695_v62, 4  ;;  %v11040_v62 = vld [vmem:[%s9226_s29 + $0x4c] sm:$0xf] }
 0x171   : > { %8283 = vmatprep.mubr.msk.bf16.mxu0 %vm433_vm1, %v10419_v41  ;;  %v4661_v41 = vshll.u32 %v10957_v46, 16  ;;  %v4757_v46 = vshll.u32 %v11024_v14, 16 }
 0x172   : > { %v4660_v0 = vrot.slane %v4658_v37, 4  ;;  %v7264_v37 = vcombine.low %v10965_v13, %v10973_v38 }
 0x173   : > { %v4663_v19 = vrot.slane %v4661_v41, 5 }
 0x175   : > { %v4664_v58 = vor.u32 %v4663_v19, %v4660_v0  ;;  %v6831_v0 = vld [vmem:[%s9226_s29 + $0x44] sm:$0x1]  ;;  %v4732_v19 = vrot.slane %v4730_v4, 4 }
 0x176   : > { %8408 = vmatmul.mubr.msk.bf16.gmra.mrb[36].mxu1 %vm433_vm1, %v10783_v55  ;;  %v6822_v55 = vld [vmem:[%s9226_s29 + $0x20] sm:$0x1]  ;;  %v4749_v32 = vshll.u32 %v6831_v0, 16  ;;  %v11097_v4 = vld [vmem:[%s9226_s29 + $0x64] sm:$0xf] }
 0x177   : > { %8411 = vmatprep.mubr.msk.bf16.mxu1 %vm433_vm1, %v10787_v17  ;;  %v10993_v17 = vld [vmem:[%s9226_s29 + $0x34] sm:$0xf]  ;;  %v4665_v29 = vrot.slane %v4664_v58, 4  ;;  %v4815_v15 = vshrl.u32 %v11097_v4, 16 }
 0x178   : > { %8284 = vmatmul.mubr.msk.bf16.gmra.mrb[48].mxu0 %vm433_vm1, %v10545_v27  ;;  %v4682_v27 = vshrl.u32 %v10965_v13, 16  ;;  %v4715_v33 = vshll.u32 %v10993_v17, 16 }
 0x179   : > { %8287 = vmatprep.mubr.msk.bf16.mxu0 %vm433_vm1, %v10549_v7  ;;  %v4691_v7 = vshll.u32 %v10973_v38, 16 }
 0x17a   : > { %v4684_v24 = vrot.slane %v4682_v27, 4  ;;  %v11018_v11 = vrot.slane %v4715_v33, 5  ;;  %v4703_v27 = vrot.slane %v4701_v10, 5  ;;  %v7267_v10 = vcombine.low %v11024_v14, %v11040_v62 }
 0x17c   : > { %v4688_v59 = vor.u32 %v4687_v56, %v4684_v24  ;;  %v7265_v24 = vcombine.low %v10987_v45, %v10993_v17  ;;  %v4767_v45 = vshrl.u32 %v11040_v62, 16  ;;  %v4718_v5 = vsel %vm9310_vm4, %v4713_v28, %v11018_v11 }
 0x17e   : > { %8412 = vmatmul.mubr.msk.bf16.gmra.mrb[40].mxu1 %vm433_vm1, %v10801_v43  ;;  %v4677_v43 = vshll.u32 %v6822_v55, 16  ;;  %v4689_v41 = vrot.slane %v4688_v59, 4 }
 0x17f   : > { %8415 = vmatprep.mubr.msk.bf16.mxu1 %vm433_vm1, %v10607_v36  ;;  %v10998_v36 = vrot.slane %v4691_v7, 5 }
 0x180   : > { %8288 = vmatmul.mubr.msk.bf16.gmra.mrb[52].mxu0 %vm433_vm1, %v10551_v23  ;;  %v4719_v23 = vshrl.u32 %v10993_v17, 16  ;;  %v4679_v63 = vrot.slane %v4677_v43, 5  ;;  %v11067_v17 = vld [vmem:[%s9226_s29 + $0x54] sm:$0xf] }
 0x181   : > { %8291 = vmatprep.mubr.msk.bf16.mxu0 %vm433_vm1, %v10559_v16  ;;  %v11011_v16 = vld [vmem:[%s9226_s29 + $0x40] sm:$0xf]  ;;  %v4698_v31 = vor.u32 %v4697_v48, %v10998_v36  ;;  %v4694_v48 = vsel %vm9310_vm4, %v4689_v41, %v10998_v36  ;;  %v4778_v59 = vshrl.u32 %v11067_v17, 16  ;;  %v7268_v12 = vcombine.low %v11067_v17, %v11070_v21 }
 0x182   : > { %v4721_v9 = vrot.slane %v4719_v23, 4  ;;  %v4743_v52 = vshrl.u32 %v11011_v16, 16  ;;  %v4739_v47 = vshll.u32 %v11011_v16, 16  ;;  %v4680_v34 = vsel %vm9310_vm4, %v4675_v6, %v4679_v63 }
 0x183   : > { %v4699_v8 = vrot.slane %v4698_v31, 4  ;;  %v7266_v56 = vcombine.low %v11006_v2, %v11011_v16  ;;  %v11079_v6 = vsel %vm482_vm0, %v10940_v22, 0  ;;  %v4781_v31 = vshll.u32 %v11067_v17, 16  ;;  %v11094_v22 = vld [vmem:[%s9226_s29 + $0x60] sm:$0xf] }
 0x184   : > { %v4722_v20 = vor.u32 %v4721_v9, %v11018_v11  ;;  %v11046_v39 = vrot.slane %v4739_v47, 5  ;;  %v4745_v55 = vrot.slane %v4743_v52, 4  ;;  %v4791_v63 = vshrl.u32 %v11070_v21, 16  ;;  %v6834_v52 = vld [vmem:[%s9226_s29 + $0x50] sm:$0x1] }
 0x185   : > { %v4769_v47 = vrot.slane %v4767_v45, 4  ;;  %v4783_v0 = vrot.slane %v4781_v31, 5  ;;  %v7269_v28 = vcombine.low %v11094_v22, %v11097_v4  ;;  %v11147_v31 = vld [vmem:[%s9226_s29 + $0x7c] sm:$0xf] }
 0x186   : > { %8416 = vmatmul.mubr.msk.bf16.gmra.mrb[44].mxu1 %vm433_vm1, %v10615_v25  ;;  %v4733_v25 = vshll.u32 %v11006_v2, 16  ;;  %v4723_v43 = vrot.slane %v4722_v20, 4  ;;  %v4746_v30 = vor.u32 %v4745_v55, %v11046_v39  ;;  %v6837_v20 = vld [vmem:[%s9226_s29 + $0x5c] sm:$0x1] }
 0x187   : > { %8419 = vmatprep.mubr.msk.bf16.mxu1 %vm433_vm1, %v10629_v50  ;;  %v6828_v50 = vld [vmem:[%s9226_s29 + $0x38] sm:$0x1]  ;;  %v4797_v38 = vshll.u32 %v6837_v20, 16 }
 0x188   : > { %8292 = vmatmul.mubr.msk.bf16.gmra.mrb[56].mxu0 %vm433_vm1, %v10567_v35  ;;  %v4670_v35 = vsel %vm9310_vm4, %v4665_v29, %v10982_v42  ;;  %v4725_v7 = vshll.u32 %v6828_v50, 16  ;;  %v4735_v42 = vrot.slane %v4733_v25, 5  ;;  %v4759_v29 = vrot.slane %v4757_v46, 5  ;;  %v11100_v25 = vld [vmem:[%s9226_s29 + $0x6c] sm:$0xf] }
 0x189   : > { %8295 = vmatprep.mubr.msk.bf16.mxu0 %vm433_vm1, %v10578_v51  ;;  %v4754_v51 = vshrl.u32 %v11024_v14, 16  ;;  %v11054_v58 = vcombine.low %v4670_v35, %v4680_v34  ;;  %v4747_v41 = vrot.slane %v4746_v30, 4  ;;  %v4751_v34 = vrot.slane %v4749_v32, 5 }
 0x18a   : > { %v4727_v23 = vrot.slane %v4725_v7, 5  ;;  %v4736_v36 = vor.u32 %v4735_v42, %v4732_v19  ;;  %v4773_v46 = vshll.u32 %v6834_v52, 16  ;;  %v4780_v7 = vrot.slane %v4778_v59, 4 }
 0x18b   : > { %v4756_v33 = vrot.slane %v4754_v51, 4  ;;  %v4826_v51 = vshrl.u32 %v11100_v25, 16  ;;  %v4811_v19 = vshll.u32 %v11097_v4, 16  ;;  %v4752_v45 = vsel %vm9310_vm4, %v4747_v41, %v4751_v34 }
 0x18c   : > { %v4728_v9 = vsel %vm9310_vm4, %v4723_v43, %v4727_v23  ;;  %v4737_v35 = vrot.slane %v4736_v36, 4  ;;  %v11136_v43 = vld [vmem:[%s9226_s29 + $0x70] sm:$0xf]  ;;  %v6840_v36 = vld [vmem:[%s9226_s29 + $0x68] sm:$0x1]  ;;  %v4799_v34 = vrot.slane %v4797_v38, 5 }
 0x18d   : > { %v4760_v11 = vor.u32 %v4759_v29, %v4756_v33  ;;  %v11143_v30 = vrot.slane %v4811_v19, 5  ;;  %v4817_v33 = vrot.slane %v4815_v15, 4  ;;  %v4835_v52 = vshll.u32 %v11136_v43, 16 }
 0x18e   : > { %8420 = vmatmul.mubr.msk.bf16.gmra.mrb[48].mxu1 %vm433_vm1, %v10637_v40  ;;  %v4704_v40 = vsel %vm9310_vm4, %v4699_v8, %v4703_v27  ;;  %v4802_v8 = vshrl.u32 %v11094_v22, 16  ;;  %v4805_v27 = vshll.u32 %v11094_v22, 16  ;;  %v4821_v41 = vshll.u32 %v6840_v36, 16  ;;  %v11204_v36 = vld [vmem:[%s9226_s29 + $0x90] sm:$0xf] }
 0x18f   : > { %8423 = vmatprep.mubr.msk.bf16.mxu1 %vm433_vm1, %v10649_v60  ;;  %v4763_v60 = vshll.u32 %v11040_v62, 16  ;;  %v4761_v13 = vrot.slane %v4760_v11, 4  ;;  %v4863_v11 = vshrl.u32 %v11147_v31, 16  ;;  %v11175_v20 = vrot.slane %v4835_v52, 5 }
 0x190   : > { %8296 = vmatmul.mubr.msk.bf16.gmra.mrb[60].mxu0 %vm433_vm1, %v10726_v1  ;;  %v11084_v1 = vcombine.low %v4694_v48, %v4704_v40  ;;  %v4793_v48 = vrot.slane %v4791_v63, 4  ;;  %v4742_v40 = vsel %vm9310_vm4, %v4737_v35, %v11046_v39  ;;  %v4804_v23 = vrot.slane %v4802_v8, 4  ;;  %v11164_v8 = vld [vmem:[%s9226_s29 + $0x84] sm:$0xf] }
 0x191   : > { %8301 = vmatprep.mubr.msk.bf16.mxu0 %vm433_vm1, %v7263_v57  ;;  %v11105_v50 = vrot.slane %v4763_v60, 5  ;;  %v4787_v57 = vshll.u32 %v11070_v21, 16  ;;  %v4807_v32 = vrot.slane %v4805_v27, 5  ;;  %v4775_v60 = vrot.slane %v4773_v46, 5 }
 0x192   : > { %v4784_v39 = vor.u32 %v4783_v0, %v4780_v7  ;;  %v4839_v63 = vshrl.u32 %v11136_v43, 16  ;;  %v4859_v27 = vshll.u32 %v11147_v31, 16  ;;  %v4874_v2 = vshrl.u32 %v11164_v8, 16 }
 0x193   : > { %v4770_v42 = vor.u32 %v4769_v47, %v11105_v50  ;;  %v11120_v55 = vrot.slane %v4787_v57, 5  ;;  %v11155_v47 = vcombine.low %v4742_v40, %v4752_v45  ;;  %v4766_v57 = vsel %vm9310_vm4, %v4761_v13, %v11105_v50  ;;  %v6846_v45 = vld [vmem:[%s9226_s29 + $0x80] sm:$0x1] }
 0x194   : > { %v4808_v35 = vor.u32 %v4807_v32, %v4804_v23  ;;  %v4841_v7 = vrot.slane %v4839_v63, 4  ;;  %v11189_v13 = vrot.slane %v4859_v27, 5  ;;  %v4865_v38 = vrot.slane %v4863_v11, 4  ;;  %v11219_v63 = vld [vmem:[%s9226_s29 + $0x94] sm:$0xf] }
 0x195   : > { %v4771_v29 = vrot.slane %v4770_v42, 4  ;;  %v4794_v59 = vor.u32 %v4793_v48, %v11120_v55  ;;  %v11184_v42 = vld [vmem:[%s9226_s29 + $0x88] sm:$0xf]  ;;  %v4877_v48 = vshll.u32 %v11164_v8, 16  ;;  %v7273_v21 = vcombine.low %v11204_v36, %v11219_v63 }
 0x196   : > { %8424 = vmatmul.mubr.msk.bf16.gmra.mrb[52].mxu1 %vm433_vm1, %v10662_v49  ;;  %v4829_v49 = vshll.u32 %v11100_v25, 16  ;;  %v4809_v16 = vrot.slane %v4808_v35, 4  ;;  %v11227_v35 = vld [vmem:[%s9226_s29 + $0x9c] sm:$0xf] }
 0x197   : > { %8427 = vmatprep.mubr.msk.bf16.mxu1 %vm433_vm1, %v10680_v3  ;;  %v11126_v3 = vcombine.low %v4718_v5, %v4728_v9  ;;  %v4776_v15 = vsel %vm9310_vm4, %v4771_v29, %v4775_v60  ;;  %v4795_v50 = vrot.slane %v4794_v59, 4  ;;  %v4842_v60 = vor.u32 %v4841_v7, %v11175_v20 }
 0x198   : > { %8302 = vmatmul.mubr.msk.bf16.vlgmr.msra.gmra.mrb[32].mxu0 %vm433_vm1, %v7264_v37  ;;  %v11140_v37 = vld [vmem:[%s9226_s29 + $0x78] sm:$0xf]  ;;  %v11191_v14 = vcombine.low %v4766_v57, %v4776_v15  ;;  %v4887_v29 = vshrl.u32 %v11184_v42, 16  ;;  %v4814_v59 = vsel %vm9310_vm4, %v4809_v16, %v11143_v30  ;;  %v4898_v57 = vshrl.u32 %v11204_v36, 16  ;;  %v11243_v15 = vld [vmem:[%s12105_s2] ss:$0 sm:$0xff] }
 0x199   : > { %8305 = vmatprep.mubr.msk.bf16.mxu0 %vm433_vm1, %v7265_v24  ;;  %8334 = vmatpush3.bf16.msra.mxu0 %v5140_v61  ;;  %v4828_v24 = vrot.slane %v4826_v51, 4  ;;  %v4831_v61 = vrot.slane %v4829_v49, 5  ;;  %v4850_v5 = vshrl.u32 %v11140_v37, 16  ;;  %v4853_v9 = vshll.u32 %v11140_v37, 16 }
 0x19a   : > { %v4785_v51 = vrot.slane %v4784_v39, 4  ;;  %v7270_v49 = vcombine.low %v11100_v25, %v11136_v43  ;;  %v7271_v23 = vcombine.low %v11140_v37, %v11147_v31  ;;  %v4843_v11 = vrot.slane %v4842_v60, 4 }
 0x19b   : > { %v4832_v46 = vor.u32 %v4831_v61, %v4828_v24  ;;  %v4852_v0 = vrot.slane %v4850_v5, 4  ;;  %v4855_v19 = vrot.slane %v4853_v9, 5  ;;  %v4869_v24 = vshll.u32 %v6846_v45, 16 }
 0x19c   : > { %v4790_v62 = vsel %vm9310_vm4, %v4785_v51, %v11120_v55  ;;  %v7272_v55 = vcombine.low %v11164_v8, %v11184_v42  ;;  %v4876_v5 = vrot.slane %v4874_v2, 4  ;;  %v4879_v9 = vrot.slane %v4877_v48, 5 }
 0x19d   : > { %v11200_v32 = vrot.slane %v4832_v46, 4  ;;  %v4907_v51 = vshll.u32 %v11219_v63, 16  ;;  %v4925_v48 = vshll.u32 %v11227_v35, 16 }
 0x19e   : > { %8428 = vmatmul.mubr.msk.bf16.gmra.mrb[56].mxu1 %vm433_vm1, %v10686_v54  ;;  %v4818_v54 = vor.u32 %v4817_v33, %v11143_v30  ;;  %v4856_v33 = vor.u32 %v4855_v19, %v4852_v0  ;;  %v4901_v30 = vshll.u32 %v11204_v36, 16  ;;  %v4880_v7 = vor.u32 %v4879_v9, %v4876_v5  ;;  %v11298_v5 = vld [vmem:[%s9226_s29 + $0xa8] sm:$0xf]  ;;  %v11301_v9 = vld [vmem:[%s9226_s29 + $0xac] sm:$0xf] }
 0x19f   : > { %8431 = vmatprep.mubr.msk.bf16.mxu1 %vm433_vm1, %v10706_v26  ;;  %v6843_v26 = vld [vmem:[%s9226_s29 + $0x74] sm:$0x1]  ;;  %v4900_v0 = vrot.slane %v4898_v57, 4  ;;  %v7275_v37 = vcombine.low %v11298_v5, %v11301_v9 }
 0x1a0   : > { %8306 = vmatmul.mubr.msk.bf16.gmra.mrb[36].mxu0 %vm433_vm1, %v7266_v56  ;;  %v4823_v56 = vrot.slane %v4821_v41, 5  ;;  %v4819_v40 = vrot.slane %v4818_v54, 4  ;;  %v4845_v39 = vshll.u32 %v6843_v26, 16  ;;  %v4883_v41 = vshll.u32 %v11184_v42, 16 }
 0x1a1   : > { %8309 = vmatprep.mubr.msk.bf16.mxu0 %vm433_vm1, %v7267_v10  ;;  %v4800_v10 = vsel %vm9310_vm4, %v4795_v50, %v4799_v34  ;;  %v4838_v34 = vsel %vm9310_vm4, %v11200_v32, %v11175_v20  ;;  %v11238_v27 = vrot.slane %v4856_v33, 4  ;;  %v4922_v50 = vshrl.u32 %v11227_v35, 16  ;;  %v11258_v20 = vld [vmem:[%s9226_s29 + $0x8c] sm:$0x1] }
 0x1a2   : > { %v4824_v61 = vsel %vm9310_vm4, %v4819_v40, %v4823_v56  ;;  %v11222_v52 = vcombine.low %v4790_v62, %v4800_v10  ;;  %v4847_v54 = vrot.slane %v4845_v39, 5  ;;  %v4871_v26 = vrot.slane %v4869_v24, 5  ;;  %v11280_v10 = vld [vmem:[%s9226_s29 + $0x98] sm:$0x1] }
 0x1a3   : > { %v11249_v17 = vcombine.low %v4814_v59, %v4824_v61  ;;  %v11260_v4 = vrot.slane %v4883_v41, 5  ;;  %v4903_v19 = vrot.slane %v4901_v30, 5  ;;  %v4862_v40 = vsel %vm9310_vm4, %v11238_v27, %v11189_v13 }
 0x1a4   : > { %v4848_v56 = vsel %vm9310_vm4, %v4843_v11, %v4847_v54  ;;  %v4893_v62 = vshll.u32 %v11258_v20, 16  ;;  %v11282_v32 = vrot.slane %v4907_v51, 5  ;;  %v11293_v24 = vrot.slane %v4880_v7, 4  ;;  %v11337_v7 = vld [vmem:[%s9226_s29 + $0xa4] sm:$0x1] }
 0x1a5   : > { %v4904_v57 = vor.u32 %v4903_v19, %v4900_v0  ;;  %v4917_v41 = vshll.u32 %v11280_v10, 16  ;;  %v4924_v11 = vrot.slane %v4922_v50, 4  ;;  %v4927_v54 = vrot.slane %v4925_v48, 5  ;;  %v11341_v0 = vld [vmem:[%s9226_s29 + $0xb4] sm:$0xf] }
 0x1a6   : > { %8432 = vmatmul.mubr.msk.bf16.gmra.mrb[60].mxu1 %vm433_vm1, %v10722_v44  ;;  %v4866_v44 = vor.u32 %v4865_v38, %v11189_v13  ;;  %v4895_v50 = vrot.slane %v4893_v62, 5  ;;  %v11347_v48 = vld [vmem:[%s9226_s29 + $0xb8] sm:$0xf]  ;;  %v4973_v36 = vshll.u32 %v11341_v0, 16 }
 0x1a7   : > { %8437 = vmatprep.mubr.msk.bf16.mxu1 %vm433_vm1, %v11054_v58  ;;  %v4905_v19 = vrot.slane %v4904_v57, 4  ;;  %v7276_v57 = vcombine.low %v11341_v0, %v11347_v48 }
 0x1a8   : > { %8310 = vmatmul.mubr.msk.bf16.gmra.mrb[40].mxu0 %vm433_vm1, %v7268_v12  ;;  %v4911_v12 = vshrl.u32 %v11219_v63, 16  ;;  %v4867_v46 = vrot.slane %v4866_v44, 4  ;;  %v4983_v63 = vshrl.u32 %v11347_v48, 16 }
 0x1a9   : > { %8313 = vmatprep.mubr.msk.bf16.mxu0 %vm433_vm1, %v7269_v28  ;;  %v4889_v28 = vrot.slane %v4887_v29, 4  ;;  %v11289_v29 = vld [vmem:[%s9226_s29 + $0xa0] sm:$0xf]  ;;  %v4910_v8 = vsel %vm9310_vm4, %v4905_v19, %v11282_v32 }
 0x1aa   : > { %v4913_v13 = vrot.slane %v4911_v12, 4  ;;  %v4872_v59 = vsel %vm9310_vm4, %v4867_v46, %v4871_v26  ;;  %v4935_v12 = vshrl.u32 %v11289_v29, 16  ;;  %v4931_v43 = vshll.u32 %v11289_v29, 16 }
 0x1ab   : > { %v8065_v22 = vpop.f32.mrb[0].mxu0  ;;  %v7274_v51 = vcombine.low %v11227_v35, %v11289_v29  ;;  %v4886_v46 = vsel %vm9310_vm4, %v11293_v24, %v11260_v4  ;;  %v4946_v26 = vshrl.u32 %v11298_v5, 16 }
 0x1ac   : > { %v8503_v2 = vadd.f32 %v8065_v22, %v11243_v15  ;;  %v2211_v16 = vpop.f32.mrb[1].mxu0  ;;  %v4914_v25 = vor.u32 %v4913_v13, %v11282_v32 }
 0x1ad   : > { %v8504_v45 = vadd.f32 %v11243_v15, %v2211_v16  ;;  %v8066_v38 = vpop.f32.mrb[2].mxu0  ;;  %v4928_v16 = vor.u32 %v4927_v54, %v4924_v11  ;;  %v11372_v11 = vld [vmem:[%s9226_s29 + $0xc0] sm:$0xf]  ;;  %v11375_v54 = vld [vmem:[%s9226_s29 + $0xc4] sm:$0xf] }
 0x1ae   : > { %8438 = vmatmul.mubr.msk.bf16.vlgmr.msra.gmra.mrb[32].mxu1 %vm433_vm1, %v11084_v1  ;;  %v7561_v60 = vpack.c.bf16 %v8503_v2, %v8503_v2  ;;  %v8505_v39 = vadd.f32 %v8066_v38, %v11243_v15  ;;  %v2214_v33 = vpop.f32.mrb[3].mxu0  ;;  %v4919_v2 = vrot.slane %v4917_v41, 5  ;;  %v4937_v38 = vrot.slane %v4935_v12, 4  ;;  %v11390_v12 = vld [vmem:[%s9226_s29 + $0xcc] sm:$0xf] }
 0x1af   : > { %8470 = vmatpush3.bf16.msra.mxu1 %v11079_v6  ;;  %8441 = vmatprep.mubr.msk.bf16.mxu1 %vm433_vm1, %v11126_v3  ;;  %v7559_v61 = vpack.c.bf16 %v8504_v45, %v8504_v45  ;;  %v8506_v44 = vadd.f32 %v11243_v15, %v2214_v33  ;;  %v4890_v6 = vor.u32 %v4889_v28, %v11260_v4  ;;  %v11349_v45 = vrot.slane %v4931_v43, 5 }
 0x1b0   : > { %2501 = vst.msk [vmem:[%s11275_s7 + $0x8] sm:$0xf] %vm2498_vm8, %v7561_v60  ;;  %v7562_v30 = vpack.c.bf16 %v8505_v39, %v8505_v39  ;;  %8314 = vmatmul.mubr.msk.bf16.gmra.mrb[44].mxu0 %vm433_vm1, %v7270_v49  ;;  %v11321_v49 = vcombine.low %v4838_v34, %v4848_v56  ;;  %v4949_v39 = vshll.u32 %v11298_v5, 16  ;;  %v4941_v33 = vshll.u32 %v11337_v7, 16 }
 0x1b1   : > { %2499 = vst.msk [vmem:[%s11275_s7] sm:$0xf] %vm2498_vm8, %v7559_v61  ;;  %v7560_v27 = vpack.c.bf16 %v8506_v44, %v8506_v44  ;;  %8317 = vmatprep.mubr.msk.bf16.mxu0 %vm433_vm1, %v7271_v23  ;;  %v11329_v23 = vcombine.low %v4862_v40, %v4872_v59  ;;  %v4891_v34 = vrot.slane %v4890_v6, 4  ;;  %v4915_v40 = vrot.slane %v4914_v25, 4  ;;  %v11393_v25 = vld [vmem:[%s9226_s29 + $0xd0] sm:$0xf] }
 0x1b2   : > { %2502 = vst.msk [vmem:[%s11275_s7 + $0xc] sm:$0xf] %vm2498_vm8, %v7562_v30  ;;  %v4959_v44 = vshrl.u32 %v11301_v9, 16  ;;  %v4970_v30 = vshrl.u32 %v11341_v0, 16  ;;  %v11369_v41 = vrot.slane %v4928_v16, 4  ;;  %v7278_v16 = vcombine.low %v11390_v12, %v11393_v25 }
 0x1b3   : > { %2500 = vst.msk [vmem:[%s11275_s7 + $0x4] sm:$0xf] %vm2498_vm8, %v7560_v27  ;;  %v8069_v31 = vpop.f32.mrb[4].mxu0  ;;  %v4896_v61 = vsel %vm9310_vm4, %v4891_v34, %v4895_v50  ;;  %v4920_v42 = vsel %vm9310_vm4, %v4915_v40, %v4919_v2  ;;  %v7277_v50 = vcombine.low %v11372_v11, %v11375_v54  ;;  %v4997_v34 = vshll.u32 %v11372_v11, 16 }
 0x1b4   : > { %v8507_v22 = vadd.f32 %v8069_v31, %v11243_v15  ;;  %v2227_v28 = vpop.f32.mrb[5].mxu0  ;;  %v11397_v43 = vcombine.low %v4886_v46, %v4896_v61  ;;  %v4994_v31 = vshrl.u32 %v11372_v11, 16  ;;  %v11411_v19 = vcombine.low %v4910_v8, %v4920_v42 }
 0x1b5   : > { %v8508_v56 = vadd.f32 %v11243_v15, %v2227_v28  ;;  %v8070_v4 = vpop.f32.mrb[6].mxu0  ;;  %v4934_v2 = vsel %vm9310_vm4, %v11369_v41, %v11349_v45  ;;  %v11434_v8 = vrot.slane %v4973_v36, 5  ;;  %v5031_v36 = vshrl.u32 %v11393_v25, 16 }
 0x1b6   : > { %8442 = vmatmul.mubr.msk.bf16.gmra.mrb[36].mxu1 %vm433_vm1, %v11155_v47  ;;  %v7565_v62 = vpack.c.bf16 %v8507_v22, %v8507_v22  ;;  %v8509_v13 = vadd.f32 %v8070_v4, %v11243_v15  ;;  %v2230_v60 = vpop.f32.mrb[7].mxu0  ;;  %v5007_v22 = vshrl.u32 %v11375_v54, 16  ;;  %v4999_v41 = vrot.slane %v4997_v34, 5 }
 0x1b7   : > { %8445 = vmatprep.mubr.msk.bf16.mxu1 %vm433_vm1, %v11191_v14  ;;  %v7563_v59 = vpack.c.bf16 %v8508_v56, %v8508_v56  ;;  %v8510_v24 = vadd.f32 %v11243_v15, %v2230_v60 }
 0x1b8   : > { %2505 = vst.msk [vmem:[%s11275_s7 + $0x18] sm:$0xf] %vm2498_vm8, %v7565_v62  ;;  %v7566_v6 = vpack.c.bf16 %v8509_v13, %v8509_v13  ;;  %8318 = vmatmul.mubr.msk.bf16.gmra.mrb[48].mxu0 %vm433_vm1, %v7272_v55  ;;  %v4938_v55 = vor.u32 %v4937_v38, %v11349_v45  ;;  %v4948_v38 = vrot.slane %v4946_v26, 4  ;;  %v4955_v62 = vshll.u32 %v11301_v9, 16 }
 0x1b9   : > { %2503 = vst.msk [vmem:[%s11275_s7 + $0x10] sm:$0xf] %vm2498_vm8, %v7563_v59  ;;  %v7564_v27 = vpack.c.bf16 %v8510_v24, %v8510_v24  ;;  %8321 = vmatprep.mubr.msk.bf16.mxu0 %vm433_vm1, %v7273_v21  ;;  %v11401_v21 = vrot.slane %v4941_v33, 5  ;;  %v4951_v59 = vrot.slane %v4949_v39, 5  ;;  %v11428_v24 = vrot.slane %v4970_v30, 4 }
 0x1ba   : > { %2506 = vst.msk [vmem:[%s11275_s7 + $0x1c] sm:$0xf] %vm2498_vm8, %v7566_v6  ;;  %v11422_v40 = vrot.slane %v4938_v55, 4  ;;  %v4979_v26 = vshll.u32 %v11347_v48, 16  ;;  %v5018_v39 = vshrl.u32 %v11390_v12, 16  ;;  %v5021_v30 = vshll.u32 %v11390_v12, 16 }
 0x1bb   : > { %2504 = vst.msk [vmem:[%s11275_s7 + $0x14] sm:$0xf] %vm2498_vm8, %v7564_v27  ;;  %v8073_v32 = vpop.f32.mrb[8].mxu0  ;;  %v11432_v27 = vld [vmem:[%s9226_s29 + $0xb0] sm:$0x1]  ;;  %v11453_v35 = vrot.slane %v4955_v62, 5 }
 0x1bc   : > { %v8511_v46 = vadd.f32 %v8073_v32, %v11243_v15  ;;  %v2243_v28 = vpop.f32.mrb[9].mxu0  ;;  %v4996_v45 = vrot.slane %v4994_v31, 4 }
 0x1bd   : > { %v8512_v56 = vadd.f32 %v11243_v15, %v2243_v28  ;;  %v8074_v4 = vpop.f32.mrb[10].mxu0 }
 0x1be   : > { %8446 = vmatmul.mubr.msk.bf16.gmra.mrb[40].mxu1 %vm433_vm1, %v11222_v52  ;;  %v7569_v13 = vpack.c.bf16 %v8511_v46, %v8511_v46  ;;  %v8513_v60 = vadd.f32 %v8074_v4, %v11243_v15  ;;  %v2246_v33 = vpop.f32.mrb[11].mxu0 }
 0x1bf   : > { %8449 = vmatprep.mubr.msk.bf16.mxu1 %vm433_vm1, %v11249_v17  ;;  %v7567_v61 = vpack.c.bf16 %v8512_v56, %v8512_v56  ;;  %v8514_v6 = vadd.f32 %v11243_v15, %v2246_v33  ;;  %v4965_v33 = vshll.u32 %v11432_v27, 16 }
 0x1c0   : > { %2509 = vst.msk [vmem:[%s11275_s7 + $0x28] sm:$0xf] %vm2498_vm8, %v7569_v13  ;;  %v7570_v55 = vpack.c.bf16 %v8513_v60, %v8513_v60  ;;  %8322 = vmatmul.mubr.msk.bf16.gmra.mrb[52].mxu0 %vm433_vm1, %v7274_v51  ;;  %v4961_v51 = vrot.slane %v4959_v44, 4  ;;  %v4944_v13 = vsel %vm9310_vm4, %v11422_v40, %v11401_v21  ;;  %v4952_v60 = vor.u32 %v4951_v59, %v4948_v38 }
 0x1c1   : > { %v8201_v42 = vpop.f32.mrb[0].mxu1  ;;  %2507 = vst.msk [vmem:[%s11275_s7 + $0x20] sm:$0xf] %vm2498_vm8, %v7567_v61  ;;  %v7568_v28 = vpack.c.bf16 %v8514_v6, %v8514_v6  ;;  %8325 = vmatprep.mubr.msk.bf16.mxu0 %vm433_vm1, %v7275_v37  ;;  %v11464_v61 = vld [vmem:[%s9226_s29 + $0xbc] sm:$0x1] }
 0x1c2   : > { %v8535_v32 = vadd.f32 %v8201_v42, %v11243_v15  ;;  %v3615_v46 = vpop.f32.mrb[1].mxu1  ;;  %2510 = vst.msk [vmem:[%s11275_s7 + $0x2c] sm:$0xf] %vm2498_vm8, %v7570_v55  ;;  %v4976_v42 = vor.u32 %v11434_v8, %v11428_v24  ;;  %v11471_v55 = vrot.slane %v4979_v26, 5  ;;  %v4962_v8 = vor.u32 %v4961_v51, %v11453_v35 }
 0x1c3   : > { %v8536_v56 = vadd.f32 %v11243_v15, %v3615_v46  ;;  %v8202_v4 = vpop.f32.mrb[2].mxu1  ;;  %2508 = vst.msk [vmem:[%s11275_s7 + $0x24] sm:$0xf] %vm2498_vm8, %v7568_v28  ;;  %v8077_v6 = vpop.f32.mrb[12].mxu0  ;;  %v4989_v26 = vshll.u32 %v11464_v61, 16 }
 0x1c4   : > { %v7593_v37 = vpack.c.bf16 %v8535_v32, %v8535_v32  ;;  %v8537_v62 = vadd.f32 %v8202_v4, %v11243_v15  ;;  %v3618_v44 = vpop.f32.mrb[3].mxu1  ;;  %v8515_v38 = vadd.f32 %v8077_v6, %v11243_v15  ;;  %v2259_v59 = vpop.f32.mrb[13].mxu0  ;;  %v4985_v32 = vrot.slane %v4983_v63, 4 }
 0x1c5   : > { %v7591_v21 = vpack.c.bf16 %v8536_v56, %v8536_v56  ;;  %v8538_v40 = vadd.f32 %v11243_v15, %v3618_v44  ;;  %v8516_v28 = vadd.f32 %v11243_v15, %v2259_v59  ;;  %v8078_v24 = vpop.f32.mrb[14].mxu0  ;;  %v11497_v6 = vcombine.low %v4934_v2, %v4944_v13 }
 0x1c6   : > { %7198 = vst.msk [vmem:[%s11275_s7 + $0x88] sm:$0xf] %vm2498_vm8, %v7593_v37  ;;  %v7594_v46 = vpack.c.bf16 %v8537_v62, %v8537_v62  ;;  %8450 = vmatmul.mubr.msk.bf16.gmra.mrb[44].mxu1 %vm433_vm1, %v11321_v49  ;;  %v7573_v63 = vpack.c.bf16 %v8515_v38, %v8515_v38  ;;  %v8517_v4 = vadd.f32 %v8078_v24, %v11243_v15  ;;  %v2262_v37 = vpop.f32.mrb[15].mxu0  ;;  %v11487_v62 = vrot.slane %v4952_v60, 4 }
 0x1c7   : > { %7196 = vst.msk [vmem:[%s11275_s7 + $0x80] sm:$0xf] %vm2498_vm8, %v7591_v21  ;;  %v7592_v56 = vpack.c.bf16 %v8538_v40, %v8538_v40  ;;  %8453 = vmatprep.mubr.msk.bf16.mxu1 %vm433_vm1, %v11329_v23  ;;  %v7571_v44 = vpack.c.bf16 %v8516_v28, %v8516_v28  ;;  %v8518_v51 = vadd.f32 %v11243_v15, %v2262_v37  ;;  %v5003_v21 = vshll.u32 %v11375_v54, 16 }
 0x1c8   : > { %7199 = vst.msk [vmem:[%s11275_s7 + $0x8c] sm:$0xf] %vm2498_vm8, %v7594_v46  ;;  %2513 = vst.msk [vmem:[%s11275_s7 + $0x38] sm:$0xf] %vm2498_vm8, %v7573_v63  ;;  %v7574_v60 = vpack.c.bf16 %v8517_v4, %v8517_v4  ;;  %8326 = vmatmul.mubr.msk.bf16.gmra.mrb[56].mxu0 %vm433_vm1, %v7276_v57  ;;  %v4967_v38 = vrot.slane %v4965_v33, 5  ;;  %v4963_v57 = vrot.slane %v4962_v8, 4  ;;  %v4986_v33 = vor.u32 %v4985_v32, %v11471_v55 }
 0x1c9   : > { %7197 = vst.msk [vmem:[%s11275_s7 + $0x84] sm:$0xf] %vm2498_vm8, %v7592_v56  ;;  %v8205_v40 = vpop.f32.mrb[4].mxu1  ;;  %2511 = vst.msk [vmem:[%s11275_s7 + $0x30] sm:$0xf] %vm2498_vm8, %v7571_v44  ;;  %v7572_v59 = vpack.c.bf16 %v8518_v51, %v8518_v51  ;;  %8329 = vmatprep.mubr.msk.bf16.mxu0 %vm433_vm1, %v7277_v50  ;;  %v4958_v34 = vsel %vm9310_vm4, %v11487_v62, %v11453_v35  ;;  %v11527_v28 = vrot.slane %v4976_v42, 4 }
 0x1ca   : > { %v8539_v2 = vadd.f32 %v8205_v40, %v11243_v15  ;;  %v3631_v13 = vpop.f32.mrb[5].mxu1  ;;  %2514 = vst.msk [vmem:[%s11275_s7 + $0x3c] sm:$0xf] %vm2498_vm8, %v7574_v60  ;;  %v11529_v24 = vrot.slane %v4989_v26, 5  ;;  %v11534_v63 = vrot.slane %v5003_v21, 5  ;;  %v5009_v4 = vrot.slane %v5007_v22, 4 }
 0x1cb   : > { %v8540_v31 = vadd.f32 %v11243_v15, %v3631_v13  ;;  %v8206_v46 = vpop.f32.mrb[6].mxu1  ;;  %2512 = vst.msk [vmem:[%s11275_s7 + $0x34] sm:$0xf] %vm2498_vm8, %v7572_v59  ;;  %v8081_v56 = vpop.f32.mrb[16].mxu0  ;;  %v11541_v62 = vld [vmem:[%s9226_s29 + $0xc8] sm:$0x1]  ;;  %v5000_v44 = vor.u32 %v4999_v41, %v4996_v45  ;;  %v4968_v40 = vsel %vm9310_vm4, %v4963_v57, %v4967_v38 }
 0x1cc   : > { %v7597_v50 = vpack.c.bf16 %v8539_v2, %v8539_v2  ;;  %v8541_v8 = vadd.f32 %v8206_v46, %v11243_v15  ;;  %v3634_v32 = vpop.f32.mrb[7].mxu1  ;;  %v8519_v42 = vadd.f32 %v8081_v56, %v11243_v15  ;;  %v2275_v26 = vpop.f32.mrb[17].mxu0  ;;  %v11550_v60 = vrot.slane %v4986_v33, 4 }
 0x1cd   : > { %v7595_v37 = vpack.c.bf16 %v8540_v31, %v8540_v31  ;;  %v8542_v35 = vadd.f32 %v11243_v15, %v3634_v32  ;;  %v8520_v21 = vadd.f32 %v11243_v15, %v2275_v26  ;;  %v8082_v22 = vpop.f32.mrb[18].mxu0  ;;  %v5027_v59 = vshll.u32 %v11393_v25, 16  ;;  %v11596_v26 = vld [vmem:[%s9226_s29 + $0xd4] sm:$0x1] }
 0x1ce   : > { %7202 = vst.msk [vmem:[%s11275_s7 + $0x98] sm:$0xf] %vm2498_vm8, %v7597_v50  ;;  %v7598_v51 = vpack.c.bf16 %v8541_v8, %v8541_v8  ;;  %8454 = vmatmul.mubr.msk.bf16.gmra.mrb[48].mxu1 %vm433_vm1, %v11397_v43  ;;  %v7577_v45 = vpack.c.bf16 %v8519_v42, %v8519_v42  ;;  %v8521_v41 = vadd.f32 %v8082_v22, %v11243_v15  ;;  %v2278_v13 = vpop.f32.mrb[19].mxu0  ;;  %v5013_v33 = vshll.u32 %v11541_v62, 16 }
 0x1cf   : > { %7200 = vst.msk [vmem:[%s11275_s7 + $0x90] sm:$0xf] %vm2498_vm8, %v7595_v37  ;;  %v7596_v2 = vpack.c.bf16 %v8542_v35, %v8542_v35  ;;  %8457 = vmatprep.mubr.msk.bf16.mxu1 %vm433_vm1, %v11411_v19  ;;  %v7575_v31 = vpack.c.bf16 %v8520_v21, %v8520_v21  ;;  %v8522_v38 = vadd.f32 %v11243_v15, %v2278_v13  ;;  %v11575_v32 = vrot.slane %v5000_v44, 4 }
 0x1d0   : > { %7203 = vst.msk [vmem:[%s11275_s7 + $0x9c] sm:$0xf] %vm2498_vm8, %v7598_v51  ;;  %v5010_v57 = vor.u32 %v5009_v4, %v11534_v63  ;;  %2517 = vst.msk [vmem:[%s11275_s7 + $0x48] sm:$0xf] %vm2498_vm8, %v7577_v45  ;;  %v7578_v50 = vpack.c.bf16 %v8521_v41, %v8521_v41  ;;  %8330 = vmatmul.mubr.msk.bf16.gmra.mrb[60].mxu0 %vm433_vm1, %v7278_v16  ;;  %v4982_v8 = vsel %vm9310_vm4, %v11527_v28, %v11471_v55 }
 0x1d1   : > { %7201 = vst.msk [vmem:[%s11275_s7 + $0x94] sm:$0xf] %vm2498_vm8, %v7596_v2  ;;  %v8209_v46 = vpop.f32.mrb[8].mxu1  ;;  %v5020_v56 = vrot.slane %v5018_v39, 4  ;;  %2515 = vst.msk [vmem:[%s11275_s7 + $0x40] sm:$0xf] %vm2498_vm8, %v7575_v31  ;;  %v7576_v35 = vpack.c.bf16 %v8522_v38, %v8522_v38  ;;  %v11582_v42 = vcombine.low %v4958_v34, %v4968_v40  ;;  %8335 = vmatprep.mubr.msk.bf16.mxu0 %vm433_vm1, %v11054_v58 }
 0x1d2   : > { %v8543_v4 = vadd.f32 %v8209_v46, %v11243_v15  ;;  %v3647_v37 = vpop.f32.mrb[9].mxu1  ;;  %v5023_v16 = vrot.slane %v5021_v30, 5  ;;  %2518 = vst.msk [vmem:[%s11275_s7 + $0x4c] sm:$0xf] %vm2498_vm8, %v7578_v50  ;;  %v4992_v39 = vsel %vm9310_vm4, %v11550_v60, %v11529_v24  ;;  %v11598_v34 = vrot.slane %v5027_v59, 5 }
 0x1d3   : > { %v8544_v55 = vadd.f32 %v11243_v15, %v3647_v37  ;;  %v8210_v28 = vpop.f32.mrb[10].mxu1  ;;  %v5033_v58 = vrot.slane %v5031_v36, 4  ;;  %2516 = vst.msk [vmem:[%s11275_s7 + $0x44] sm:$0xf] %vm2498_vm8, %v7576_v35  ;;  %v8085_v21 = vpop.f32.mrb[20].mxu0  ;;  %v5011_v22 = vrot.slane %v5010_v57, 4  ;;  %v5006_v36 = vsel %vm9310_vm4, %v11575_v32, %v11534_v63 }
 0x1d4   : > { %v7601_v44 = vpack.c.bf16 %v8543_v4, %v8543_v4  ;;  %v8545_v30 = vadd.f32 %v8210_v28, %v11243_v15  ;;  %v3650_v51 = vpop.f32.mrb[11].mxu1  ;;  %v5015_v40 = vrot.slane %v5013_v33, 5  ;;  %v8523_v60 = vadd.f32 %v8085_v21, %v11243_v15  ;;  %v2291_v45 = vpop.f32.mrb[21].mxu0  ;;  %v9104_v37 = vld [vmem:[%s9226_s29 + $0x1c] sm:$0xf] }
 0x1d5   : > { %v7599_v2 = vpack.c.bf16 %v8544_v55, %v8544_v55  ;;  %v8546_v24 = vadd.f32 %v11243_v15, %v3650_v51  ;;  %v8524_v13 = vadd.f32 %v11243_v15, %v2291_v45  ;;  %v8086_v59 = vpop.f32.mrb[22].mxu0  ;;  %v5024_v31 = vor.u32 %v5023_v16, %v5020_v56 }
 0x1d6   : > { %7206 = vst.msk [vmem:[%s11275_s7 + $0xa8] sm:$0xf] %vm2498_vm8, %v7601_v44  ;;  %v7602_v41 = vpack.c.bf16 %v8545_v30, %v8545_v30  ;;  %8458 = vmatmul.mubr.msk.bf16.gmra.mrb[52].mxu1 %vm433_vm1, %v11497_v6  ;;  %v5037_v38 = vshll.u32 %v11596_v26, 16  ;;  %v7581_v63 = vpack.c.bf16 %v8523_v60, %v8523_v60  ;;  %v8525_v33 = vadd.f32 %v8086_v59, %v11243_v15  ;;  %v2294_v46 = vpop.f32.mrb[23].mxu0 }
 0x1d7   : > { %7204 = vst.msk [vmem:[%s11275_s7 + $0xa0] sm:$0xf] %vm2498_vm8, %v7599_v2  ;;  %v7600_v57 = vpack.c.bf16 %v8546_v24, %v8546_v24  ;;  %8461 = vmatprep.mubr.msk.bf16.mxu1 %vm433_vm1, %v11582_v42  ;;  %v5034_v50 = vor.u32 %v5033_v58, %v11598_v34  ;;  %v7579_v32 = vpack.c.bf16 %v8524_v13, %v8524_v13  ;;  %v6108_v35 = vrot.slane %v9104_v37, 5  ;;  %v9106_v13 = vld [vmem:[%s9226_s29 + $0x20] sm:$0x1] }
 0x1d8   : > { %7207 = vst.msk [vmem:[%s11275_s7 + $0xac] sm:$0xf] %vm2498_vm8, %v7602_v41  ;;  %v8526_v56 = vadd.f32 %v11243_v15, %v2294_v46  ;;  %v5016_v4 = vsel %vm9310_vm4, %v5011_v22, %v5015_v40  ;;  %v11631_v55 = vcombine.low %v4982_v8, %v4992_v39  ;;  %2521 = vst.msk [vmem:[%s11275_s7 + $0x58] sm:$0xf] %vm2498_vm8, %v7581_v63  ;;  %8336 = vmatmul.mubr.msk.bf16.vlgmr.msra.gmra.mrb[32].mxu0 %vm433_vm1, %v11084_v1  ;;  %v9105_v8 = vld [vmem:[%s9226_s29 + $0x18] sm:$0xf] }
 0x1d9   : > { %7205 = vst.msk [vmem:[%s11275_s7 + $0xa4] sm:$0xf] %vm2498_vm8, %v7600_v57  ;;  %v8213_v16 = vpop.f32.mrb[12].mxu1  ;;  %v7582_v28 = vpack.c.bf16 %v8525_v33, %v8525_v33  ;;  %2519 = vst.msk [vmem:[%s11275_s7 + $0x50] sm:$0xf] %vm2498_vm8, %v7579_v32  ;;  %v5025_v51 = vrot.slane %v5024_v31, 4  ;;  %8339 = vmatprep.mubr.msk.bf16.mxu0 %vm433_vm1, %v11126_v3  ;;  %v11646_v1 = vcombine.low %v5006_v36, %v5016_v4 }
 0x1da   : > { %v8547_v58 = vadd.f32 %v8213_v16, %v11243_v15  ;;  %v3663_v44 = vpop.f32.mrb[13].mxu1  ;;  %v7580_v30 = vpack.c.bf16 %v8526_v56, %v8526_v56  ;;  %v7443_v39 = vrot.slane %v9105_v8, 9  ;;  %v5035_v40 = vrot.slane %v5034_v50, 4  ;;  %v9107_v33 = vld [vmem:[%s9226_s29 + $0x28] sm:$0xf] }
 0x1db   : > { %v8548_v21 = vadd.f32 %v11243_v15, %v3663_v44  ;;  %v8214_v22 = vpop.f32.mrb[14].mxu1  ;;  %2522 = vst.msk [vmem:[%s11275_s7 + $0x5c] sm:$0xf] %vm2498_vm8, %v7582_v28  ;;  %v5039_v2 = vrot.slane %v5037_v38, 5  ;;  %v8089_v3 = vpop.f32.mrb[24].mxu0  ;;  %v6110_v41 = vrot.slane %v6108_v35, 4  ;;  %v5030_v50 = vsel %vm9310_vm4, %v5025_v51, %v11598_v34 }
 0x1dc   : > { %v7605_v24 = vpack.c.bf16 %v8547_v58, %v8547_v58  ;;  %v8549_v60 = vadd.f32 %v8214_v22, %v11243_v15  ;;  %v3666_v45 = vpop.f32.mrb[15].mxu1  ;;  %2520 = vst.msk [vmem:[%s11275_s7 + $0x54] sm:$0xf] %vm2498_vm8, %v7580_v30  ;;  %v6111_v59 = vrot.slane %v9106_v13, 5  ;;  %v8527_v36 = vadd.f32 %v8089_v3, %v11243_v15  ;;  %v2307_v63 = vpop.f32.mrb[25].mxu0 }
 0x1dd   : > { %v7603_v31 = vpack.c.bf16 %v8548_v21, %v8548_v21  ;;  %v8550_v57 = vadd.f32 %v11243_v15, %v3666_v45  ;;  %v6115_v38 = vrot.slane %v9107_v33, 5  ;;  %v8528_v32 = vadd.f32 %v11243_v15, %v2307_v63  ;;  %v8090_v56 = vpop.f32.mrb[26].mxu0  ;;  %v9108_v51 = vld [vmem:[%s9226_s29 + $0x34] sm:$0xf]  ;;  %v9109_v21 = vld [vmem:[%s9226_s29 + $0x24] sm:$0xf] }
 0x1de   : > { %7210 = vst.msk [vmem:[%s11275_s7 + $0xb8] sm:$0xf] %vm2498_vm8, %v7605_v24  ;;  %v7606_v46 = vpack.c.bf16 %v8549_v60, %v8549_v60  ;;  %8462 = vmatmul.mubr.msk.bf16.gmra.mrb[56].mxu1 %vm433_vm1, %v11631_v55  ;;  %v6109_v4 = vsel %vm9697_vm7, %v7443_v39, %v6108_v35  ;;  %v5040_v16 = vsel %vm9310_vm4, %v5035_v40, %v5039_v2  ;;  %v2310_v58 = vpop.f32.mrb[27].mxu0  ;;  %v6122_v8 = vrot.slane %v9108_v51, 5  ;;  %v9110_v3 = vld [vmem:[%s9226_s29 + $0x2c] sm:$0x1] }
 0x1df   : > { %7208 = vst.msk [vmem:[%s11275_s7 + $0xb0] sm:$0xf] %vm2498_vm8, %v7603_v31  ;;  %v7604_v37 = vpack.c.bf16 %v8550_v57, %v8550_v57  ;;  %8465 = vmatprep.mubr.msk.bf16.mxu1 %vm433_vm1, %v11646_v1  ;;  %v7585_v28 = vpack.c.bf16 %v8527_v36, %v8527_v36  ;;  %v8529_v34 = vadd.f32 %v8090_v56, %v11243_v15  ;;  %v7444_v22 = vrot.slane %v9109_v21, 9  ;;  %v9111_v31 = vld [vmem:[%s9226_s29 + $0x30] sm:$0xf] }
 0x1e0   : > { %7211 = vst.msk [vmem:[%s11275_s7 + $0xbc] sm:$0xf] %vm2498_vm8, %v7606_v46  ;;  %v7583_v44 = vpack.c.bf16 %v8528_v32, %v8528_v32  ;;  %v8530_v35 = vadd.f32 %v11243_v15, %v2310_v58  ;;  %v6112_v30 = vsel %vm9697_vm7, %v6110_v41, %v6111_v59  ;;  %8340 = vmatmul.mubr.msk.bf16.gmra.mrb[36].mxu0 %vm433_vm1, %v11155_v47  ;;  %v6117_v40 = vrot.slane %v6115_v38, 4 }
 0x1e1   : > { %7209 = vst.msk [vmem:[%s11275_s7 + $0xb4] sm:$0xf] %vm2498_vm8, %v7604_v37  ;;  %v8217_v53 = vpop.f32.mrb[16].mxu1  ;;  %2525 = vst.msk [vmem:[%s11275_s7 + $0x68] sm:$0xf] %vm2498_vm8, %v7585_v28  ;;  %v7586_v39 = vpack.c.bf16 %v8529_v34, %v8529_v34  ;;  %v11686_v60 = vcombine.low %v5030_v50, %v5040_v16  ;;  %v6118_v41 = vrot.slane %v9110_v3, 5  ;;  %8343 = vmatprep.mubr.msk.bf16.mxu0 %vm433_vm1, %v11191_v14 }
 0x1e2   : > { %v8551_v2 = vadd.f32 %v8217_v53, %v11243_v15  ;;  %v3679_v24 = vpop.f32.mrb[17].mxu1  ;;  %2523 = vst.msk [vmem:[%s11275_s7 + $0x60] sm:$0xf] %vm2498_vm8, %v7583_v44  ;;  %v7584_v45 = vpack.c.bf16 %v8530_v35, %v8530_v35  ;;  %v7460_v59 = vcombine.low %v6109_v4, %v6112_v30  ;;  %v7445_v57 = vrot.slane %v9111_v31, 9  ;;  %v9112_v14 = vld [vmem:[%s9226_s29 + $0x38] sm:$0x1] }
 0x1e3   : > { %v8552_v47 = vadd.f32 %v11243_v15, %v3679_v24  ;;  %v8218_v13 = vpop.f32.mrb[18].mxu1  ;;  %2526 = vst.msk [vmem:[%s11275_s7 + $0x6c] sm:$0xf] %vm2498_vm8, %v7586_v39  ;;  %v8093_v46 = vpop.f32.mrb[28].mxu0  ;;  %v6124_v50 = vrot.slane %v6122_v8, 4  ;;  %v6125_v32 = vrot.slane %v9112_v14, 5  ;;  %v6116_v4 = vsel %vm9697_vm7, %v7444_v22, %v6115_v38 }
 0x1e4   : > { %v7609_v36 = vpack.c.bf16 %v8551_v2, %v8551_v2  ;;  %v8553_v63 = vadd.f32 %v8218_v13, %v11243_v15  ;;  %v3682_v33 = vpop.f32.mrb[19].mxu1  ;;  %2524 = vst.msk [vmem:[%s11275_s7 + $0x64] sm:$0xf] %vm2498_vm8, %v7584_v45  ;;  %v8531_v16 = vadd.f32 %v8093_v46, %v11243_v15  ;;  %v2323_v28 = vpop.f32.mrb[29].mxu0  ;;  %v6119_v58 = vsel %vm9697_vm7, %v6117_v40, %v6118_v41  ;;  %v9113_v30 = vld [vmem:[%s9226_s29 + $0x40] sm:$0xf] }
 0x1e5   : > { %v7607_v56 = vpack.c.bf16 %v8552_v47, %v8552_v47  ;;  %v8554_v37 = vadd.f32 %v11243_v15, %v3682_v33  ;;  %v8532_v44 = vadd.f32 %v11243_v15, %v2323_v28  ;;  %v8094_v35 = vpop.f32.mrb[30].mxu0  ;;  %v6129_v38 = vrot.slane %v9113_v30, 5  ;;  %v9114_v45 = vld [vmem:[%s9226_s29 + $0x4c] sm:$0xf]  ;;  %v9118_v28 = vld [vmem:[%s9226_s29 + $0x50] sm:$0x1] }
 0x1e6   : > { %7214 = vst.msk [vmem:[%s11275_s7 + $0xc8] sm:$0xf] %vm2498_vm8, %v7609_v36  ;;  %v7610_v34 = vpack.c.bf16 %v8553_v63, %v8553_v63  ;;  %8466 = vmatmul.mubr.msk.bf16.gmra.mrb[60].mxu1 %vm433_vm1, %v11686_v60  ;;  %v7589_v53 = vpack.c.bf16 %v8531_v16, %v8531_v16  ;;  %v8533_v39 = vadd.f32 %v8094_v35, %v11243_v15  ;;  %v2326_v21 = vpop.f32.mrb[31].mxu0  ;;  %v6136_v3 = vrot.slane %v9114_v45, 5  ;;  %v9119_v30 = vld [vmem:[%s9226_s29 + $0x58] sm:$0xf] }
 0x1e7   : > { %7212 = vst.msk [vmem:[%s11275_s7 + $0xc0] sm:$0xf] %vm2498_vm8, %v7607_v56  ;;  %v7608_v51 = vpack.c.bf16 %v8554_v37, %v8554_v37  ;;  %8471 = vmatprep.mubr.msk.bf16.mxu1 %vm433_vm1, %v7460_v59  ;;  %v6123_v22 = vsel %vm9697_vm7, %v7445_v57, %v6122_v8  ;;  %v7587_v40 = vpack.c.bf16 %v8532_v44, %v8532_v44  ;;  %v9115_v57 = vld [vmem:[%s9226_s29 + $0x3c] sm:$0xf]  ;;  %v6131_v63 = vrot.slane %v6129_v38, 4 }
 0x1e8   : > { %7215 = vst.msk [vmem:[%s11275_s7 + $0xcc] sm:$0xf] %vm2498_vm8, %v7610_v34  ;;  %v8534_v2 = vadd.f32 %v11243_v15, %v2326_v21  ;;  %v6126_v24 = vsel %vm9697_vm7, %v6124_v50, %v6125_v32  ;;  %v7461_v47 = vcombine.low %v6116_v4, %v6119_v58  ;;  %2529 = vst.msk [vmem:[%s11275_s7 + $0x78] sm:$0xf] %vm2498_vm8, %v7589_v53  ;;  %8344 = vmatmul.mubr.msk.bf16.gmra.mrb[40].mxu0 %vm433_vm1, %v11222_v52  ;;  %v9116_v50 = vld [vmem:[%s9226_s29 + $0x44] sm:$0x1] }
 0x1e9   : > { %7213 = vst.msk [vmem:[%s11275_s7 + $0xc4] sm:$0xf] %vm2498_vm8, %v7608_v51  ;;  %v8221_v41 = vpop.f32.mrb[20].mxu1  ;;  %v7590_v8 = vpack.c.bf16 %v8533_v39, %v8533_v39  ;;  %2527 = vst.msk [vmem:[%s11275_s7 + $0x70] sm:$0xf] %vm2498_vm8, %v7587_v40  ;;  %v7446_v36 = vrot.slane %v9115_v57, 9  ;;  %8347 = vmatprep.mubr.msk.bf16.mxu0 %vm433_vm1, %v11249_v17  ;;  %v7462_v52 = vcombine.low %v6123_v22, %v6126_v24 }
 0x1ea   : > { %v8555_v13 = vadd.f32 %v8221_v41, %v11243_v15  ;;  %v3695_v59 = vpop.f32.mrb[21].mxu1  ;;  %v7588_v31 = vpack.c.bf16 %v8534_v2, %v8534_v2  ;;  %v6132_v14 = vrot.slane %v9116_v50, 5  ;;  %v9117_v32 = vld [vmem:[%s9226_s29 + $0x48] sm:$0xf]  ;;  %v6138_v17 = vrot.slane %v6136_v3, 4 }
 0x1eb   : > { %v8556_v33 = vadd.f32 %v11243_v15, %v3695_v59  ;;  %v8222_v46 = vpop.f32.mrb[22].mxu1  ;;  %2530 = vst.msk [vmem:[%s11275_s7 + $0x7c] sm:$0xf] %vm2498_vm8, %v7590_v8  ;;  %v7447_v56 = vrot.slane %v9117_v32, 9  ;;  %v6139_v34 = vrot.slane %v9118_v28, 5  ;;  %v6143_v51 = vrot.slane %v9119_v30, 5 }
 0x1ec   : > { %v7613_v37 = vpack.c.bf16 %v8555_v13, %v8555_v13  ;;  %v8557_v4 = vadd.f32 %v8222_v46, %v11243_v15  ;;  %v3698_v16 = vpop.f32.mrb[23].mxu1  ;;  %2528 = vst.msk [vmem:[%s11275_s7 + $0x74] sm:$0xf] %vm2498_vm8, %v7588_v31  ;;  %v6130_v39 = vsel %vm9697_vm7, %v7446_v36, %v6129_v38  ;;  %v6133_v21 = vsel %vm9697_vm7, %v6131_v63, %v6132_v14  ;;  %v9120_v2 = vld [vmem:[%s9226_s29 + $0x64] sm:$0xf] }
 0x1ed   : > { %v7611_v58 = vpack.c.bf16 %v8556_v33, %v8556_v33  ;;  %v8558_v44 = vadd.f32 %v11243_v15, %v3698_v16  ;;  %v6137_v22 = vsel %vm9697_vm7, %v7447_v56, %v6136_v3  ;;  %v6140_v40 = vsel %vm9697_vm7, %v6138_v17, %v6139_v34  ;;  %v9121_v8 = vld [vmem:[%s9226_s29 + $0x54] sm:$0xf]  ;;  %v9122_v36 = vld [vmem:[%s9226_s29 + $0x5c] sm:$0x1]  ;;  %v9124_v32 = vld [vmem:[%s9226_s29 + $0x68] sm:$0x1] }
 0x1ee   : > { %7218 = vst.msk [vmem:[%s11275_s7 + $0xd8] sm:$0xf] %vm2498_vm8, %v7613_v37  ;;  %v7614_v35 = vpack.c.bf16 %v8557_v4, %v8557_v4  ;;  %8472 = vmatmul.mubr.msk.bf16.vlgmr.msra.gmra.mrb[32].mxu1 %vm433_vm1, %v7461_v47  ;;  %v6150_v24 = vrot.slane %v9120_v2, 5  ;;  %v7463_v47 = vcombine.low %v6130_v39, %v6133_v21  ;;  %v7448_v3 = vrot.slane %v9121_v8, 9  ;;  %v9125_v16 = vld [vmem:[%s9226_s29 + $0x70] sm:$0xf] }
 0x1ef   : > { %7216 = vst.msk [vmem:[%s11275_s7 + $0xd0] sm:$0xf] %vm2498_vm8, %v7611_v58  ;;  %v7612_v53 = vpack.c.bf16 %v8558_v44, %v8558_v44  ;;  %8475 = vmatprep.mubr.msk.bf16.mxu1 %vm433_vm1, %v7462_v52  ;;  %v6145_v13 = vrot.slane %v6143_v51, 4  ;;  %v7464_v57 = vcombine.low %v6137_v22, %v6140_v40  ;;  %v6146_v63 = vrot.slane %v9122_v36, 5  ;;  %v9126_v30 = vld [vmem:[%s9226_s29 + $0x7c] sm:$0xf] }
 0x1f0   : > { %7219 = vst.msk [vmem:[%s11275_s7 + $0xdc] sm:$0xf] %vm2498_vm8, %v7614_v35  ;;  %8348 = vmatmul.mubr.msk.bf16.gmra.mrb[44].mxu0 %vm433_vm1, %v11321_v49  ;;  %v9123_v49 = vld [vmem:[%s9226_s29 + $0x60] sm:$0xf]  ;;  %v6152_v14 = vrot.slane %v6150_v24, 4  ;;  %v6153_v56 = vrot.slane %v9124_v32, 5  ;;  %v6144_v34 = vsel %vm9697_vm7, %v7448_v3, %v6143_v51 }
 0x1f1   : > { %7217 = vst.msk [vmem:[%s11275_s7 + $0xd4] sm:$0xf] %vm2498_vm8, %v7612_v53  ;;  %v8225_v45 = vpop.f32.mrb[24].mxu1  ;;  %8351 = vmatprep.mubr.msk.bf16.mxu0 %vm433_vm1, %v11329_v23  ;;  %v7449_v33 = vrot.slane %v9123_v49, 9  ;;  %v6157_v17 = vrot.slane %v9125_v16, 5  ;;  %v6147_v58 = vsel %vm9697_vm7, %v6145_v13, %v6146_v63  ;;  %v6164_v53 = vrot.slane %v9126_v30, 5 }
 0x1f2   : > { %v8559_v38 = vadd.f32 %v8225_v45, %v11243_v15  ;;  %v3711_v41 = vpop.f32.mrb[25].mxu1  ;;  %v6154_v35 = vsel %vm9697_vm7, %v6152_v14, %v6153_v56  ;;  %v7465_v22 = vcombine.low %v6144_v34, %v6147_v58  ;;  %v9127_v40 = vld [vmem:[%s9226_s29 + $0x6c] sm:$0xf]  ;;  %v9130_v36 = vld [vmem:[%s9226_s29 + $0x80] sm:$0x1]  ;;  %v6174_v58 = vrot.slane %v11258_v20, 5 }
 0x1f3   : > { %v8560_v59 = vadd.f32 %v11243_v15, %v3711_v41  ;;  %v8226_v31 = vpop.f32.mrb[26].mxu1  ;;  %v6151_v44 = vsel %vm9697_vm7, %v7449_v33, %v6150_v24  ;;  %v7450_v2 = vrot.slane %v9127_v40, 9  ;;  %v6159_v24 = vrot.slane %v6157_v17, 4  ;;  %v9131_v14 = vld [vmem:[%s9226_s29 + $0x88] sm:$0xf] }
 0x1f4   : > { %v7617_v46 = vpack.c.bf16 %v8559_v38, %v8559_v38  ;;  %v8561_v52 = vadd.f32 %v8226_v31, %v11243_v15  ;;  %v3714_v50 = vpop.f32.mrb[27].mxu1  ;;  %v7466_v41 = vcombine.low %v6151_v44, %v6154_v35  ;;  %v6167_v63 = vrot.slane %v9130_v36, 5  ;;  %v9134_v44 = vld [vmem:[%s9226_s29 + $0x90] sm:$0xf]  ;;  %v9135_v40 = vld [vmem:[%s9226_s29 + $0x9c] sm:$0xf] }
 0x1f5   : > { %v7615_v23 = vpack.c.bf16 %v8560_v59, %v8560_v59  ;;  %v8562_v37 = vadd.f32 %v11243_v15, %v3714_v50  ;;  %v7453_v35 = vrot.slane %v9134_v44, 9  ;;  %v7458_v36 = vrot.slane %v11390_v12, 9 }
 0x1f6   : > { %7222 = vst.msk [vmem:[%s11275_s7 + $0xe8] sm:$0xf] %vm2498_vm8, %v7617_v46  ;;  %v7618_v4 = vpack.c.bf16 %v8561_v52, %v8561_v52  ;;  %8476 = vmatmul.mubr.msk.bf16.gmra.mrb[36].mxu1 %vm433_vm1, %v7463_v47  ;;  %v9128_v47 = vld [vmem:[%s9226_s29 + $0x74] sm:$0x1]  ;;  %v6158_v52 = vsel %vm9697_vm7, %v7450_v2, %v6157_v17  ;;  %v9133_v17 = vld [vmem:[%s9226_s29 + $0x84] sm:$0xf] }
 0x1f7   : > { %7220 = vst.msk [vmem:[%s11275_s7 + $0xe0] sm:$0xf] %vm2498_vm8, %v7615_v23  ;;  %v7616_v28 = vpack.c.bf16 %v8562_v37, %v8562_v37  ;;  %8479 = vmatprep.mubr.msk.bf16.mxu1 %vm433_vm1, %v7464_v57  ;;  %v6160_v8 = vrot.slane %v9128_v47, 5  ;;  %v6166_v57 = vrot.slane %v6164_v53, 4  ;;  %v9132_v23 = vld [vmem:[%s9226_s29 + $0x94] sm:$0xf] }
 0x1f8   : > { %7223 = vst.msk [vmem:[%s11275_s7 + $0xec] sm:$0xf] %vm2498_vm8, %v7618_v4  ;;  %8352 = vmatmul.mubr.msk.bf16.gmra.mrb[48].mxu0 %vm433_vm1, %v11397_v43  ;;  %v9129_v43 = vld [vmem:[%s9226_s29 + $0x78] sm:$0xf]  ;;  %v6178_v37 = vrot.slane %v9132_v23, 5  ;;  %v7454_v2 = vrot.slane %v9135_v40, 9 }
 0x1f9   : > { %7221 = vst.msk [vmem:[%s11275_s7 + $0xe4] sm:$0xf] %vm2498_vm8, %v7616_v28  ;;  %v8229_v39 = vpop.f32.mrb[28].mxu1  ;;  %8355 = vmatprep.mubr.msk.bf16.mxu0 %vm433_vm1, %v11411_v19  ;;  %v7451_v3 = vrot.slane %v9129_v43, 9  ;;  %v6161_v50 = vsel %vm9697_vm7, %v6159_v24, %v6160_v8  ;;  %v6168_v56 = vsel %vm9697_vm7, %v6166_v57, %v6167_v63  ;;  %v7452_v28 = vrot.slane %v9133_v17, 9 }
 0x1fa   : > { %v8563_v51 = vadd.f32 %v8229_v39, %v11243_v15  ;;  %v3727_v21 = vpop.f32.mrb[29].mxu1  ;;  %v7467_v4 = vcombine.low %v6158_v52, %v6161_v50  ;;  %v6180_v30 = vrot.slane %v6178_v37, 4  ;;  %v6185_v39 = vrot.slane %v11289_v29, 5 }
 0x1fb   : > { %v8564_v45 = vadd.f32 %v11243_v15, %v3727_v21  ;;  %v8230_v38 = vpop.f32.mrb[30].mxu1  ;;  %v6165_v32 = vsel %vm9697_vm7, %v7451_v3, %v6164_v53  ;;  %v6181_v53 = vrot.slane %v11280_v10, 5  ;;  %v6179_v20 = vsel %vm9697_vm7, %v7453_v35, %v6178_v37 }
 0x1fc   : > { %v7621_v13 = vpack.c.bf16 %v8563_v51, %v8563_v51  ;;  %v8565_v59 = vadd.f32 %v8230_v38, %v11243_v15  ;;  %v3730_v31 = vpop.f32.mrb[31].mxu1  ;;  %v7468_v16 = vcombine.low %v6165_v32, %v6168_v56  ;;  %v6192_v10 = vrot.slane %v11301_v9, 5 }
 0x1fd   : > { %v7619_v19 = vpack.c.bf16 %v8564_v45, %v8564_v45  ;;  %v8566_v49 = vadd.f32 %v11243_v15, %v3730_v31  ;;  %v6171_v15 = vrot.slane %v9131_v14, 5  ;;  %v6182_v51 = vsel %vm9697_vm7, %v6180_v30, %v6181_v53 }
 0x1fe   : > { %7226 = vst.msk [vmem:[%s11275_s7 + $0xf8] sm:$0xf] %vm2498_vm8, %v7621_v13  ;;  %v7622_v33 = vpack.c.bf16 %v8565_v59, %v8565_v59  ;;  %8480 = vmatmul.mubr.msk.bf16.gmra.mrb[40].mxu1 %vm433_vm1, %v7465_v22  ;;  %v7470_v22 = vcombine.low %v6179_v20, %v6182_v51  ;;  %v6187_v24 = vrot.slane %v6185_v39, 4  ;;  %v6188_v29 = vrot.slane %v11337_v7, 5 }
 0x1ff   : > { %7224 = vst.msk [vmem:[%s11275_s7 + $0xf0] sm:$0xf] %vm2498_vm8, %v7619_v19  ;;  %v7620_v46 = vpack.c.bf16 %v8566_v49, %v8566_v49  ;;  %8483 = vmatprep.mubr.msk.bf16.mxu1 %vm433_vm1, %v7466_v41  ;;  %v6173_v34 = vrot.slane %v6171_v15, 4  ;;  %v7455_v45 = vrot.slane %v11298_v5, 9  ;;  %v6194_v38 = vrot.slane %v6192_v10, 4 }
 0x200   : > { %7227 = vst.msk [vmem:[%s11275_s7 + $0xfc] sm:$0xf] %vm2498_vm8, %v7622_v33  ;;  %8356 = vmatmul.mubr.msk.bf16.gmra.mrb[52].mxu0 %vm433_vm1, %v11497_v6  ;;  %v6172_v6 = vsel %vm9697_vm7, %v7452_v28, %v6171_v15  ;;  %v6195_v41 = vrot.slane %v11432_v27, 5  ;;  %v6186_v9 = vsel %vm9697_vm7, %v7454_v2, %v6185_v39  ;;  %v6206_v27 = vrot.slane %v11375_v54, 5 }
 0x201   : > { %7225 = vst.msk [vmem:[%s11275_s7 + $0xf4] sm:$0xf] %vm2498_vm8, %v7620_v46  ;;  %8359 = vmatprep.mubr.msk.bf16.mxu0 %vm433_vm1, %v11582_v42  ;;  %v6175_v42 = vsel %vm9697_vm7, %v6173_v34, %v6174_v58  ;;  %v6193_v7 = vsel %vm9697_vm7, %v7455_v45, %v6192_v10  ;;  %v7456_v43 = vrot.slane %v11341_v0, 9  ;;  %v6202_v13 = vrot.slane %v11464_v61, 5 }
 0x202   : > { %v7469_v21 = vcombine.low %v6172_v6, %v6175_v42  ;;  %v6196_v5 = vsel %vm9697_vm7, %v6194_v38, %v6195_v41  ;;  %v6208_v59 = vrot.slane %v6206_v27, 4  ;;  %v6209_v31 = vrot.slane %v11541_v62, 5 }
 0x203   : > { %v7472_v8 = vcombine.low %v6193_v7, %v6196_v5  ;;  %v6213_v0 = vrot.slane %v11393_v25, 5  ;;  %v6216_v19 = vrot.slane %v11596_v26, 5  ;;  %v11900_v26 = vld [vmem:[%s12105_s2] ss:$0 sm:$0xff] }
 0x205   : > { %v6215_v63 = vrot.slane %v6213_v0, 4  ;;  %v6214_v25 = vsel %vm9697_vm7, %v7458_v36, %v6213_v0 }
 0x206   : > { %8484 = vmatmul.mubr.msk.bf16.gmra.mrb[44].mxu1 %vm433_vm1, %v7467_v4 }
 0x207   : > { %8487 = vmatprep.mubr.msk.bf16.mxu1 %vm433_vm1, %v7468_v16  ;;  %v6217_v49 = vsel %vm9697_vm7, %v6215_v63, %v6216_v19 }
 0x208   : > { %8360 = vmatmul.mubr.msk.bf16.gmra.mrb[56].mxu0 %vm433_vm1, %v11631_v55  ;;  %v6189_v55 = vsel %vm9697_vm7, %v6187_v24, %v6188_v29  ;;  %v7475_v33 = vcombine.low %v6214_v25, %v6217_v49 }
 0x209   : > { %8363 = vmatprep.mubr.msk.bf16.mxu0 %vm433_vm1, %v11646_v1  ;;  %v6199_v1 = vrot.slane %v11347_v48, 5  ;;  %v7471_v47 = vcombine.low %v6186_v9, %v6189_v55  ;;  %v7457_v48 = vrot.slane %v11372_v11, 9  ;;  %v6210_v11 = vsel %vm9697_vm7, %v6208_v59, %v6209_v31 }
 0x20b   : > { %v6201_v3 = vrot.slane %v6199_v1, 4  ;;  %v6200_v54 = vsel %vm9697_vm7, %v7456_v43, %v6199_v1  ;;  %v6207_v61 = vsel %vm9697_vm7, %v7457_v48, %v6206_v27 }
 0x20c   : > { %v7474_v62 = vcombine.low %v6207_v61, %v6210_v11 }
 0x20e   : > { %8488 = vmatmul.mubr.msk.bf16.gmra.mrb[48].mxu1 %vm433_vm1, %v7469_v21 }
 0x20f   : > { %8491 = vmatprep.mubr.msk.bf16.mxu1 %vm433_vm1, %v7470_v22 }
 0x210   : > { %8364 = vmatmul.mubr.msk.bf16.gmra.mrb[60].mxu0 %vm433_vm1, %v11686_v60  ;;  %v6203_v60 = vsel %vm9697_vm7, %v6201_v3, %v6202_v13 }
 0x211   : > { %v7473_v57 = vcombine.low %v6200_v54, %v6203_v60 }
 0x216   : > { %8492 = vmatmul.mubr.msk.bf16.gmra.mrb[52].mxu1 %vm433_vm1, %v7471_v47 }
 0x217   : > { %8495 = vmatprep.mubr.msk.bf16.mxu1 %vm433_vm1, %v7472_v8 }
 0x21e   : > { %8496 = vmatmul.mubr.msk.bf16.gmra.mrb[56].mxu1 %vm433_vm1, %v7473_v57 }
 0x21f   : > { %8499 = vmatprep.mubr.msk.bf16.mxu1 %vm433_vm1, %v7474_v62 }
 0x226   : > { %8500 = vmatmul.mubr.msk.bf16.gmra.mrb[60].mxu1 %vm433_vm1, %v7475_v33 }
 0x2ab   : > { %v8337_v12 = vpop.f32.mrb[32].mxu0 }
 0x2ac   : > { %v8567_v46 = vadd.f32 %v11900_v26, %v8337_v12  ;;  %v5176_v52 = vpop.f32.mrb[33].mxu0 }
 0x2ad   : > { %v8568_v50 = vadd.f32 %v11900_v26, %v5176_v52  ;;  %v8338_v14 = vpop.f32.mrb[34].mxu0 }
 0x2ae   : > { %v7625_v18 = vpack.c.bf16 %v8567_v46, %v8567_v46  ;;  %v8569_v15 = vadd.f32 %v11900_v26, %v8338_v14  ;;  %v5179_v32 = vpop.f32.mrb[35].mxu0 }
 0x2af   : > { %v7623_v56 = vpack.c.bf16 %v8568_v50, %v8568_v50  ;;  %v8570_v23 = vadd.f32 %v11900_v26, %v5179_v32 }
 0x2b0   : > { %7362 = vst.msk [vmem:[%s11275_s7 + $0x108] sm:$0xf] %vm2498_vm8, %v7625_v18  ;;  %v7626_v37 = vpack.c.bf16 %v8569_v15, %v8569_v15 }
 0x2b1   : > { %7360 = vst.msk [vmem:[%s11275_s7 + $0x100] sm:$0xf] %vm2498_vm8, %v7623_v56  ;;  %v7624_v4 = vpack.c.bf16 %v8570_v23, %v8570_v23 }
 0x2b2   : > { %7363 = vst.msk [vmem:[%s11275_s7 + $0x10c] sm:$0xf] %vm2498_vm8, %v7626_v37 }
 0x2b3   : > { %7361 = vst.msk [vmem:[%s11275_s7 + $0x104] sm:$0xf] %vm2498_vm8, %v7624_v4  ;;  %v8341_v16 = vpop.f32.mrb[36].mxu0 }
 0x2b4   : > { %v8571_v17 = vadd.f32 %v11900_v26, %v8341_v16  ;;  %v5192_v28 = vpop.f32.mrb[37].mxu0 }
 0x2b5   : > { %v8572_v34 = vadd.f32 %v11900_v26, %v5192_v28  ;;  %v8342_v58 = vpop.f32.mrb[38].mxu0 }
 0x2b6   : > { %v7629_v44 = vpack.c.bf16 %v8571_v17, %v8571_v17  ;;  %v8573_v35 = vadd.f32 %v11900_v26, %v8342_v58  ;;  %v5195_v30 = vpop.f32.mrb[39].mxu0 }
 0x2b7   : > { %v7627_v53 = vpack.c.bf16 %v8572_v34, %v8572_v34  ;;  %v8574_v6 = vadd.f32 %v11900_v26, %v5195_v30 }
 0x2b8   : > { %7366 = vst.msk [vmem:[%s11275_s7 + $0x118] sm:$0xf] %vm2498_vm8, %v7629_v44  ;;  %v7630_v42 = vpack.c.bf16 %v8573_v35, %v8573_v35 }
 0x2b9   : > { %7364 = vst.msk [vmem:[%s11275_s7 + $0x110] sm:$0xf] %vm2498_vm8, %v7627_v53  ;;  %v7628_v39 = vpack.c.bf16 %v8574_v6, %v8574_v6 }
 0x2ba   : > { %7367 = vst.msk [vmem:[%s11275_s7 + $0x11c] sm:$0xf] %vm2498_vm8, %v7630_v42 }
 0x2bb   : > { %7365 = vst.msk [vmem:[%s11275_s7 + $0x114] sm:$0xf] %vm2498_vm8, %v7628_v39  ;;  %v8345_v20 = vpop.f32.mrb[40].mxu0 }
 0x2bc   : > { %v8575_v51 = vadd.f32 %v11900_v26, %v8345_v20  ;;  %v5208_v10 = vpop.f32.mrb[41].mxu0 }
 0x2bd   : > { %v8576_v21 = vadd.f32 %v11900_v26, %v5208_v10  ;;  %v8346_v22 = vpop.f32.mrb[42].mxu0 }
 0x2be   : > { %v7633_v40 = vpack.c.bf16 %v8575_v51, %v8575_v51  ;;  %v8577_v2 = vadd.f32 %v11900_v26, %v8346_v22  ;;  %v5211_v24 = vpop.f32.mrb[43].mxu0 }
 0x2bf   : > { %v7631_v29 = vpack.c.bf16 %v8576_v21, %v8576_v21  ;;  %v8578_v45 = vadd.f32 %v11900_v26, %v5211_v24 }
 0x2c0   : > { %7370 = vst.msk [vmem:[%s11275_s7 + $0x128] sm:$0xf] %vm2498_vm8, %v7633_v40  ;;  %v7634_v41 = vpack.c.bf16 %v8577_v2, %v8577_v2 }
 0x2c1   : > { %v8473_v38 = vpop.f32.mrb[32].mxu1  ;;  %7368 = vst.msk [vmem:[%s11275_s7 + $0x120] sm:$0xf] %vm2498_vm8, %v7631_v29  ;;  %v7632_v1 = vpack.c.bf16 %v8578_v45, %v8578_v45 }
 0x2c2   : > { %v8599_v9 = vadd.f32 %v11900_v26, %v8473_v38  ;;  %v6353_v55 = vpop.f32.mrb[33].mxu1  ;;  %7371 = vst.msk [vmem:[%s11275_s7 + $0x12c] sm:$0xf] %vm2498_vm8, %v7634_v41 }
 0x2c3   : > { %v8600_v7 = vadd.f32 %v11900_v26, %v6353_v55  ;;  %v8474_v5 = vpop.f32.mrb[34].mxu1  ;;  %7369 = vst.msk [vmem:[%s11275_s7 + $0x124] sm:$0xf] %vm2498_vm8, %v7632_v1  ;;  %v8349_v43 = vpop.f32.mrb[44].mxu0 }
 0x2c4   : > { %v7657_v27 = vpack.c.bf16 %v8599_v9, %v8599_v9  ;;  %v8601_v47 = vadd.f32 %v11900_v26, %v8474_v5  ;;  %v6356_v8 = vpop.f32.mrb[35].mxu1  ;;  %v8579_v48 = vadd.f32 %v11900_v26, %v8349_v43  ;;  %v5224_v59 = vpop.f32.mrb[45].mxu0 }
 0x2c5   : > { %v7655_v3 = vpack.c.bf16 %v8600_v7, %v8600_v7  ;;  %v8602_v13 = vadd.f32 %v11900_v26, %v6356_v8  ;;  %v8580_v54 = vadd.f32 %v11900_v26, %v5224_v59  ;;  %v8350_v60 = vpop.f32.mrb[46].mxu0 }
 0x2c6   : > { %7526 = vst.msk [vmem:[%s11275_s7 + $0x188] sm:$0xf] %vm2498_vm8, %v7657_v27  ;;  %v7658_v31 = vpack.c.bf16 %v8601_v47, %v8601_v47  ;;  %v7637_v61 = vpack.c.bf16 %v8579_v48, %v8579_v48  ;;  %v8581_v11 = vadd.f32 %v11900_v26, %v8350_v60  ;;  %v5227_v57 = vpop.f32.mrb[47].mxu0 }
 0x2c7   : > { %7524 = vst.msk [vmem:[%s11275_s7 + $0x180] sm:$0xf] %vm2498_vm8, %v7655_v3  ;;  %v7656_v0 = vpack.c.bf16 %v8602_v13, %v8602_v13  ;;  %v7635_v62 = vpack.c.bf16 %v8580_v54, %v8580_v54  ;;  %v8582_v36 = vadd.f32 %v11900_v26, %v5227_v57 }
 0x2c8   : > { %7527 = vst.msk [vmem:[%s11275_s7 + $0x18c] sm:$0xf] %vm2498_vm8, %v7658_v31  ;;  %7374 = vst.msk [vmem:[%s11275_s7 + $0x138] sm:$0xf] %vm2498_vm8, %v7637_v61  ;;  %v7638_v19 = vpack.c.bf16 %v8581_v11, %v8581_v11 }
 0x2c9   : > { %7525 = vst.msk [vmem:[%s11275_s7 + $0x184] sm:$0xf] %vm2498_vm8, %v7656_v0  ;;  %v8477_v63 = vpop.f32.mrb[36].mxu1  ;;  %7372 = vst.msk [vmem:[%s11275_s7 + $0x130] sm:$0xf] %vm2498_vm8, %v7635_v62  ;;  %v7636_v33 = vpack.c.bf16 %v8582_v36, %v8582_v36 }
 0x2ca   : > { %v8603_v25 = vadd.f32 %v11900_v26, %v8477_v63  ;;  %v6369_v49 = vpop.f32.mrb[37].mxu1  ;;  %7375 = vst.msk [vmem:[%s11275_s7 + $0x13c] sm:$0xf] %vm2498_vm8, %v7638_v19 }
 0x2cb   : > { %v8604_v12 = vadd.f32 %v11900_v26, %v6369_v49  ;;  %v8478_v46 = vpop.f32.mrb[38].mxu1  ;;  %7373 = vst.msk [vmem:[%s11275_s7 + $0x134] sm:$0xf] %vm2498_vm8, %v7636_v33  ;;  %v8353_v18 = vpop.f32.mrb[48].mxu0 }
 0x2cc   : > { %v7661_v52 = vpack.c.bf16 %v8603_v25, %v8603_v25  ;;  %v8605_v50 = vadd.f32 %v11900_v26, %v8478_v46  ;;  %v6372_v14 = vpop.f32.mrb[39].mxu1  ;;  %v8583_v56 = vadd.f32 %v11900_v26, %v8353_v18  ;;  %v5240_v23 = vpop.f32.mrb[49].mxu0 }
 0x2cd   : > { %v7659_v15 = vpack.c.bf16 %v8604_v12, %v8604_v12  ;;  %v8606_v32 = vadd.f32 %v11900_v26, %v6372_v14  ;;  %v8584_v4 = vadd.f32 %v11900_v26, %v5240_v23  ;;  %v8354_v16 = vpop.f32.mrb[50].mxu0 }
 0x2ce   : > { %7530 = vst.msk [vmem:[%s11275_s7 + $0x198] sm:$0xf] %vm2498_vm8, %v7661_v52  ;;  %v7662_v37 = vpack.c.bf16 %v8605_v50, %v8605_v50  ;;  %v7641_v28 = vpack.c.bf16 %v8583_v56, %v8583_v56  ;;  %v8585_v34 = vadd.f32 %v11900_v26, %v8354_v16  ;;  %v5243_v58 = vpop.f32.mrb[51].mxu0 }
 0x2cf   : > { %7528 = vst.msk [vmem:[%s11275_s7 + $0x190] sm:$0xf] %vm2498_vm8, %v7659_v15  ;;  %v7660_v17 = vpack.c.bf16 %v8606_v32, %v8606_v32  ;;  %v7639_v44 = vpack.c.bf16 %v8584_v4, %v8584_v4  ;;  %v8586_v35 = vadd.f32 %v11900_v26, %v5243_v58 }
 0x2d0   : > { %7531 = vst.msk [vmem:[%s11275_s7 + $0x19c] sm:$0xf] %vm2498_vm8, %v7662_v37  ;;  %7378 = vst.msk [vmem:[%s11275_s7 + $0x148] sm:$0xf] %vm2498_vm8, %v7641_v28  ;;  %v7642_v53 = vpack.c.bf16 %v8585_v34, %v8585_v34 }
 0x2d1   : > { %7529 = vst.msk [vmem:[%s11275_s7 + $0x194] sm:$0xf] %vm2498_vm8, %v7660_v17  ;;  %v8481_v30 = vpop.f32.mrb[40].mxu1  ;;  %7376 = vst.msk [vmem:[%s11275_s7 + $0x140] sm:$0xf] %vm2498_vm8, %v7639_v44  ;;  %v7640_v39 = vpack.c.bf16 %v8586_v35, %v8586_v35 }
 0x2d2   : > { %v8607_v6 = vadd.f32 %v11900_v26, %v8481_v30  ;;  %v6385_v42 = vpop.f32.mrb[41].mxu1  ;;  %7379 = vst.msk [vmem:[%s11275_s7 + $0x14c] sm:$0xf] %vm2498_vm8, %v7642_v53 }
 0x2d3   : > { %v8608_v20 = vadd.f32 %v11900_v26, %v6385_v42  ;;  %v8482_v51 = vpop.f32.mrb[42].mxu1  ;;  %7377 = vst.msk [vmem:[%s11275_s7 + $0x144] sm:$0xf] %vm2498_vm8, %v7640_v39  ;;  %v8357_v40 = vpop.f32.mrb[52].mxu0 }
 0x2d4   : > { %v7665_v10 = vpack.c.bf16 %v8607_v6, %v8607_v6  ;;  %v8609_v21 = vadd.f32 %v11900_v26, %v8482_v51  ;;  %v6388_v22 = vpop.f32.mrb[43].mxu1  ;;  %v8587_v29 = vadd.f32 %v11900_v26, %v8357_v40  ;;  %v5256_v45 = vpop.f32.mrb[53].mxu0 }
 0x2d5   : > { %v7663_v2 = vpack.c.bf16 %v8608_v20, %v8608_v20  ;;  %v8610_v24 = vadd.f32 %v11900_v26, %v6388_v22  ;;  %v8588_v41 = vadd.f32 %v11900_v26, %v5256_v45  ;;  %v8358_v9 = vpop.f32.mrb[54].mxu0 }
 0x2d6   : > { %7534 = vst.msk [vmem:[%s11275_s7 + $0x1a8] sm:$0xf] %vm2498_vm8, %v7665_v10  ;;  %v7666_v38 = vpack.c.bf16 %v8609_v21, %v8609_v21  ;;  %v7645_v1 = vpack.c.bf16 %v8587_v29, %v8587_v29  ;;  %v8589_v7 = vadd.f32 %v11900_v26, %v8358_v9  ;;  %v5259_v5 = vpop.f32.mrb[55].mxu0 }
 0x2d7   : > { %7532 = vst.msk [vmem:[%s11275_s7 + $0x1a0] sm:$0xf] %vm2498_vm8, %v7663_v2  ;;  %v7664_v55 = vpack.c.bf16 %v8610_v24, %v8610_v24  ;;  %v7643_v27 = vpack.c.bf16 %v8588_v41, %v8588_v41  ;;  %v8590_v47 = vadd.f32 %v11900_v26, %v5259_v5 }
 0x2d8   : > { %7535 = vst.msk [vmem:[%s11275_s7 + $0x1ac] sm:$0xf] %vm2498_vm8, %v7666_v38  ;;  %7382 = vst.msk [vmem:[%s11275_s7 + $0x158] sm:$0xf] %vm2498_vm8, %v7645_v1  ;;  %v7646_v43 = vpack.c.bf16 %v8589_v7, %v8589_v7 }
 0x2d9   : > { %7533 = vst.msk [vmem:[%s11275_s7 + $0x1a4] sm:$0xf] %vm2498_vm8, %v7664_v55  ;;  %v8485_v8 = vpop.f32.mrb[44].mxu1  ;;  %7380 = vst.msk [vmem:[%s11275_s7 + $0x150] sm:$0xf] %vm2498_vm8, %v7643_v27  ;;  %v7644_v48 = vpack.c.bf16 %v8590_v47, %v8590_v47 }
 0x2da   : > { %v8611_v3 = vadd.f32 %v11900_v26, %v8485_v8  ;;  %v6401_v13 = vpop.f32.mrb[45].mxu1  ;;  %7383 = vst.msk [vmem:[%s11275_s7 + $0x15c] sm:$0xf] %vm2498_vm8, %v7646_v43 }
 0x2db   : > { %v8612_v59 = vadd.f32 %v11900_v26, %v6401_v13  ;;  %v8486_v31 = vpop.f32.mrb[46].mxu1  ;;  %7381 = vst.msk [vmem:[%s11275_s7 + $0x154] sm:$0xf] %vm2498_vm8, %v7644_v48  ;;  %v8361_v61 = vpop.f32.mrb[56].mxu0 }
 0x2dc   : > { %v7669_v54 = vpack.c.bf16 %v8611_v3, %v8611_v3  ;;  %v8613_v60 = vadd.f32 %v11900_v26, %v8486_v31  ;;  %v6404_v0 = vpop.f32.mrb[47].mxu1  ;;  %v8591_v62 = vadd.f32 %v11900_v26, %v8361_v61  ;;  %v5272_v36 = vpop.f32.mrb[57].mxu0 }
 0x2dd   : > { %v7667_v11 = vpack.c.bf16 %v8612_v59, %v8612_v59  ;;  %v8614_v57 = vadd.f32 %v11900_v26, %v6404_v0  ;;  %v8592_v19 = vadd.f32 %v11900_v26, %v5272_v36  ;;  %v8362_v25 = vpop.f32.mrb[58].mxu0 }
 0x2de   : > { %7538 = vst.msk [vmem:[%s11275_s7 + $0x1b8] sm:$0xf] %vm2498_vm8, %v7669_v54  ;;  %v7670_v63 = vpack.c.bf16 %v8613_v60, %v8613_v60  ;;  %v7649_v33 = vpack.c.bf16 %v8591_v62, %v8591_v62  ;;  %v8593_v12 = vadd.f32 %v11900_v26, %v8362_v25  ;;  %v5275_v46 = vpop.f32.mrb[59].mxu0 }
 0x2df   : > { %7536 = vst.msk [vmem:[%s11275_s7 + $0x1b0] sm:$0xf] %vm2498_vm8, %v7667_v11  ;;  %v7668_v49 = vpack.c.bf16 %v8614_v57, %v8614_v57  ;;  %v7647_v52 = vpack.c.bf16 %v8592_v19, %v8592_v19  ;;  %v8594_v50 = vadd.f32 %v11900_v26, %v5275_v46 }
 0x2e0   : > { %7539 = vst.msk [vmem:[%s11275_s7 + $0x1bc] sm:$0xf] %vm2498_vm8, %v7670_v63  ;;  %7386 = vst.msk [vmem:[%s11275_s7 + $0x168] sm:$0xf] %vm2498_vm8, %v7649_v33  ;;  %v7650_v18 = vpack.c.bf16 %v8593_v12, %v8593_v12 }
 0x2e1   : > { %7537 = vst.msk [vmem:[%s11275_s7 + $0x1b4] sm:$0xf] %vm2498_vm8, %v7668_v49  ;;  %v8489_v14 = vpop.f32.mrb[48].mxu1  ;;  %7384 = vst.msk [vmem:[%s11275_s7 + $0x160] sm:$0xf] %vm2498_vm8, %v7647_v52  ;;  %v7648_v56 = vpack.c.bf16 %v8594_v50, %v8594_v50 }
 0x2e2   : > { %v8615_v15 = vadd.f32 %v11900_v26, %v8489_v14  ;;  %v6417_v32 = vpop.f32.mrb[49].mxu1  ;;  %7387 = vst.msk [vmem:[%s11275_s7 + $0x16c] sm:$0xf] %vm2498_vm8, %v7650_v18 }
 0x2e3   : > { %v8616_v23 = vadd.f32 %v11900_v26, %v6417_v32  ;;  %v8490_v37 = vpop.f32.mrb[50].mxu1  ;;  %7385 = vst.msk [vmem:[%s11275_s7 + $0x164] sm:$0xf] %vm2498_vm8, %v7648_v56  ;;  %v8365_v28 = vpop.f32.mrb[60].mxu0 }
 0x2e4   : > { %v7673_v4 = vpack.c.bf16 %v8615_v15, %v8615_v15  ;;  %v8617_v16 = vadd.f32 %v11900_v26, %v8490_v37  ;;  %v6420_v17 = vpop.f32.mrb[51].mxu1  ;;  %v8595_v44 = vadd.f32 %v11900_v26, %v8365_v28  ;;  %v5288_v35 = vpop.f32.mrb[61].mxu0 }
 0x2e5   : > { %v7671_v34 = vpack.c.bf16 %v8616_v23, %v8616_v23  ;;  %v8618_v58 = vadd.f32 %v11900_v26, %v6420_v17  ;;  %v8596_v53 = vadd.f32 %v11900_v26, %v5288_v35  ;;  %v8366_v6 = vpop.f32.mrb[62].mxu0 }
 0x2e6   : > { %7542 = vst.msk [vmem:[%s11275_s7 + $0x1c8] sm:$0xf] %vm2498_vm8, %v7673_v4  ;;  %v7674_v30 = vpack.c.bf16 %v8617_v16, %v8617_v16  ;;  %v7653_v39 = vpack.c.bf16 %v8595_v44, %v8595_v44  ;;  %v8597_v20 = vadd.f32 %v11900_v26, %v8366_v6  ;;  %v5291_v51 = vpop.f32.mrb[63].mxu0 }
 0x2e7   : > { %7540 = vst.msk [vmem:[%s11275_s7 + $0x1c0] sm:$0xf] %vm2498_vm8, %v7671_v34  ;;  %v7672_v42 = vpack.c.bf16 %v8618_v58, %v8618_v58  ;;  %v7651_v10 = vpack.c.bf16 %v8596_v53, %v8596_v53  ;;  %v8598_v21 = vadd.f32 %v11900_v26, %v5291_v51 }
 0x2e8   : > { %7543 = vst.msk [vmem:[%s11275_s7 + $0x1cc] sm:$0xf] %vm2498_vm8, %v7674_v30  ;;  %7390 = vst.msk [vmem:[%s11275_s7 + $0x178] sm:$0xf] %vm2498_vm8, %v7653_v39  ;;  %v7654_v40 = vpack.c.bf16 %v8597_v20, %v8597_v20 }
 0x2e9   : > { %7541 = vst.msk [vmem:[%s11275_s7 + $0x1c4] sm:$0xf] %vm2498_vm8, %v7672_v42  ;;  %v8493_v22 = vpop.f32.mrb[52].mxu1  ;;  %7388 = vst.msk [vmem:[%s11275_s7 + $0x170] sm:$0xf] %vm2498_vm8, %v7651_v10  ;;  %v7652_v29 = vpack.c.bf16 %v8598_v21, %v8598_v21 }
 0x2ea   : > { %v8619_v2 = vadd.f32 %v11900_v26, %v8493_v22  ;;  %v6433_v24 = vpop.f32.mrb[53].mxu1  ;;  %7391 = vst.msk [vmem:[%s11275_s7 + $0x17c] sm:$0xf] %vm2498_vm8, %v7654_v40 }
 0x2eb   : > { %v8620_v45 = vadd.f32 %v11900_v26, %v6433_v24  ;;  %v8494_v38 = vpop.f32.mrb[54].mxu1  ;;  %7389 = vst.msk [vmem:[%s11275_s7 + $0x174] sm:$0xf] %vm2498_vm8, %v7652_v29 }
 0x2ec   : > { %v7677_v41 = vpack.c.bf16 %v8619_v2, %v8619_v2  ;;  %v8621_v9 = vadd.f32 %v11900_v26, %v8494_v38  ;;  %v6436_v55 = vpop.f32.mrb[55].mxu1 }
 0x2ed   : > { %v7675_v1 = vpack.c.bf16 %v8620_v45, %v8620_v45  ;;  %v8622_v7 = vadd.f32 %v11900_v26, %v6436_v55 }
 0x2ee   : > { %7546 = vst.msk [vmem:[%s11275_s7 + $0x1d8] sm:$0xf] %vm2498_vm8, %v7677_v41  ;;  %v7678_v5 = vpack.c.bf16 %v8621_v9, %v8621_v9 }
 0x2ef   : > { %7544 = vst.msk [vmem:[%s11275_s7 + $0x1d0] sm:$0xf] %vm2498_vm8, %v7675_v1  ;;  %v7676_v27 = vpack.c.bf16 %v8622_v7, %v8622_v7 }
 0x2f0   : > { %7547 = vst.msk [vmem:[%s11275_s7 + $0x1dc] sm:$0xf] %vm2498_vm8, %v7678_v5 }
 0x2f1   : > { %7545 = vst.msk [vmem:[%s11275_s7 + $0x1d4] sm:$0xf] %vm2498_vm8, %v7676_v27  ;;  %v8497_v47 = vpop.f32.mrb[56].mxu1 }
 0x2f2   : > { %v8623_v8 = vadd.f32 %v11900_v26, %v8497_v47  ;;  %v6449_v43 = vpop.f32.mrb[57].mxu1 }
 0x2f3   : > { %v8624_v3 = vadd.f32 %v11900_v26, %v6449_v43  ;;  %v8498_v13 = vpop.f32.mrb[58].mxu1 }
 0x2f4   : > { %v7681_v48 = vpack.c.bf16 %v8623_v8, %v8623_v8  ;;  %v8625_v59 = vadd.f32 %v11900_v26, %v8498_v13  ;;  %v6452_v31 = vpop.f32.mrb[59].mxu1 }
 0x2f5   : > { %v7679_v54 = vpack.c.bf16 %v8624_v3, %v8624_v3  ;;  %v8626_v60 = vadd.f32 %v11900_v26, %v6452_v31 }
 0x2f6   : > { %7550 = vst.msk [vmem:[%s11275_s7 + $0x1e8] sm:$0xf] %vm2498_vm8, %v7681_v48  ;;  %v7682_v0 = vpack.c.bf16 %v8625_v59, %v8625_v59 }
 0x2f7   : > { %7548 = vst.msk [vmem:[%s11275_s7 + $0x1e0] sm:$0xf] %vm2498_vm8, %v7679_v54  ;;  %v7680_v61 = vpack.c.bf16 %v8626_v60, %v8626_v60 }
 0x2f8   : > { %7551 = vst.msk [vmem:[%s11275_s7 + $0x1ec] sm:$0xf] %vm2498_vm8, %v7682_v0 }
 0x2f9   : > { %7549 = vst.msk [vmem:[%s11275_s7 + $0x1e4] sm:$0xf] %vm2498_vm8, %v7680_v61  ;;  %v8501_v11 = vpop.f32.mrb[60].mxu1 }
 0x2fa   : > { %v8627_v57 = vadd.f32 %v11900_v26, %v8501_v11  ;;  %v6465_v62 = vpop.f32.mrb[61].mxu1 }
 0x2fb   : > { %v8628_v36 = vadd.f32 %v11900_v26, %v6465_v62  ;;  %v8502_v63 = vpop.f32.mrb[62].mxu1 }
 0x2fc   : > { %v7685_v19 = vpack.c.bf16 %v8627_v57, %v8627_v57  ;;  %v8629_v25 = vadd.f32 %v11900_v26, %v8502_v63  ;;  %v6468_v49 = vpop.f32.mrb[63].mxu1 }
 0x2fd   : > { %v7683_v33 = vpack.c.bf16 %v8628_v36, %v8628_v36  ;;  %v8630_v12 = vadd.f32 %v11900_v26, %v6468_v49 }
 0x2fe   : > { %7554 = vst.msk [vmem:[%s11275_s7 + $0x1f8] sm:$0xf] %vm2498_vm8, %v7685_v19  ;;  %v7686_v46 = vpack.c.bf16 %v8629_v25, %v8629_v25 }
 0x2ff   : > { %7552 = vst.msk [vmem:[%s11275_s7 + $0x1f0] sm:$0xf] %vm2498_vm8, %v7683_v33  ;;  %v7684_v52 = vpack.c.bf16 %v8630_v12, %v8630_v12 }
 0x300   : > { %7555 = vst.msk [vmem:[%s11275_s7 + $0x1fc] sm:$0xf] %vm2498_vm8, %v7686_v46 }
 0x301   : > { %7553 = vst.msk [vmem:[%s11275_s7 + $0x1f4] sm:$0xf] %vm2498_vm8, %v7684_v52 }
 0x302 PF: > { %s13_s14 = sadd.s32 1, %s9159_s14   ;;  %s12367_s12 = smov %s9155_s13 }
 0x303   : > { %p10_p5 = scmp.ge.s32.totalorder %s13_s14, 4   ;;  %s12368_s13 = smov %s12370_s15 }
 0x305   :  { %12 = sbr.rel (!%p10_p5) target bundleno = 2 (0x2), region = 83 }

</bundles_post_ra>
